<compile_context>
chip_gen: v5e
topology: v5e:2x2
jax: 0.10.0
libtpu: 0.0.40
codegen_flags: <defaults>
</compile_context>

<pallas_src>
import functools

import jax
import jax.numpy as jnp
from jax.experimental import pallas as pl
from jax.experimental.pallas import tpu as pltpu


# ---------------------------------------------------------------------------
# Pure-JAX helpers mirroring the PyTorch module (used for the reference and for
# folding the spectral-gating operator into dense token-space matrices).
# ---------------------------------------------------------------------------
def _token2patch(t, H, W):
    B, N, C = t.shape
    return jnp.transpose(t, (0, 2, 1)).reshape(B, C, H, W)


def _patch2token(p):
    B, C, H, W = p.shape
    return jnp.transpose(p.reshape(B, C, H * W), (0, 2, 1))


def _spectral_gating(p, w_complex):
    """SpectralGatingNetwork.forward on (B, C, H, W)."""
    xp = jnp.transpose(p, (0, 3, 2, 1))                        # (B, W, H, C)
    xf = jnp.fft.rfft2(xp, axes=(1, 2), norm="ortho")          # (B, W, H//2+1, C)
    xf = xf * w_complex                                        # broadcast over batch
    out = jnp.fft.irfft2(xf, s=(xp.shape[1], xp.shape[2]), axes=(1, 2), norm="ortho")
    return jnp.transpose(out, (0, 3, 2, 1))                    # (B, C, H, W)


def fold_spectral_operator(w_complex, H, W):
    """Fold rfft2 -> (*weight) -> irfft2 into per-channel token-space matrices.

    The gating is linear and channel-separable, so probing it with the N = H*W
    token basis vectors recovers it exactly.  Returns Mt (C, N, N) such that
    out_tokens[c, :] = in_tokens[c, :] @ Mt[c]  (already transposed for row@M).
    """
    N = H * W
    C = w_complex.shape[-1]
    basis = jnp.eye(N, dtype=jnp.float32)                      # probe index as batch
    tokens = jnp.broadcast_to(basis[:, :, None], (N, N, C))
    out = _patch2token(_spectral_gating(_token2patch(tokens, H, W), w_complex))
    # out[m, n, c] = M_c[n, m]  ->  Mt[c, m, n]
    return jnp.transpose(out, (2, 0, 1)).astype(jnp.float32)


# ---------------------------------------------------------------------------
# In-kernel math helpers.
# ---------------------------------------------------------------------------
def _layer_norm_cn(t, g, b, eps=1e-5):
    # t: (C, N) — normalize over channels (sublane axis); g, b: (C, 1).
    mu = jnp.mean(t, axis=0, keepdims=True)
    d = t - mu
    var = jnp.mean(d * d, axis=0, keepdims=True)
    return d * jax.lax.rsqrt(var + eps) * g + b


def _erf(v):
    # Abramowitz & Stegun 7.1.26 (|err| < 1.5e-7): exp + VPU ops only, so it is
    # guaranteed to lower in Mosaic (no dependence on a lax.erf lowering rule).
    a1, a2, a3, a4, a5 = 0.254829592, -0.284496736, 1.421413741, -1.453152027, 1.061405429
    p = 0.3275911
    s = jnp.where(v >= 0.0, 1.0, -1.0)
    av = jnp.abs(v)
    t = 1.0 / (1.0 + p * av)
    poly = ((((a5 * t + a4) * t + a3) * t + a2) * t + a1) * t
    return s * (1.0 - poly * jnp.exp(-av * av))


def _gelu(v):
    # Exact (erf-based) GELU, matching torch.nn.GELU().
    return 0.5 * v * (1.0 + _erf(v * 0.7071067811865476))


# ---------------------------------------------------------------------------
# Pallas kernel: one grid step == one batch element, both branches fused.
# ---------------------------------------------------------------------------
def _sgblock_kernel(xt_ref, zt_ref, mx_ref, mz_ref,
                    gx1_ref, bx1_ref, gx2_ref, bx2_ref,
                    w1x_ref, c1x_ref, w2x_ref, c2x_ref,
                    gz1_ref, bz1_ref, gz2_ref, bz2_ref,
                    w1z_ref, c1z_ref, w2z_ref, c2z_ref,
                    xo_ref, zo_ref, *, dim):
    def branch(t, m_ref, g1, b1, g2, b2, w1t, c1, w2t, c2):
        # t: (C, N) lane-dense tokens (channels on sublanes, tokens on lanes).
        u = _layer_norm_cn(t, g1, b1)
        # Spectral gating via the folded per-channel operator.  Each step is a
        # (1, N) @ (N, N) MXU matmul — the contraction feeds all N (>=64) lanes,
        # and the slice/concat are sublane-row ops, not 8-wide lane slices.
        rows = [jnp.dot(u[c:c + 1, :], m_ref[c], preferred_element_type=jnp.float32)
                for c in range(dim)]
        s = jnp.concatenate(rows, axis=0)                                      # (C, N)
        v = _layer_norm_cn(s, g2, b2)
        h = _gelu(jnp.dot(w1t, v, preferred_element_type=jnp.float32) + c1)    # (2C, N)
        m = jnp.dot(w2t, h, preferred_element_type=jnp.float32) + c2           # (C, N)
        return m + t                                                           # residual

    xo_ref[0] = branch(xt_ref[0], mx_ref,
                       gx1_ref[...], bx1_ref[...], gx2_ref[...], bx2_ref[...],
                       w1x_ref[...], c1x_ref[...], w2x_ref[...], c2x_ref[...])
    zo_ref[0] = branch(zt_ref[0], mz_ref,
                       gz1_ref[...], bz1_ref[...], gz2_ref[...], bz2_ref[...],
                       w1z_ref[...], c1z_ref[...], w2z_ref[...], c2z_ref[...])


def sgblock_pallas(x, m_x, m_z, params_x, params_z):
    """x: (B, 320, C) tokens.  m_x/m_z: folded (C, N, N) spectral operators.
    params_*: (g1, b1, g2, b2, W1^T, b1, W2^T, b2), shaped for the (C, N) layout."""
    B, n_total, C = x.shape
    n_z = 64
    n_x = n_total - n_z

    # Wrapper-side layout plumbing: split + transpose to lane-dense (B, C, N).
    z_t = jnp.transpose(x[:, :n_z, :], (0, 2, 1))              # (B, C, 64)
    x_t = jnp.transpose(x[:, n_z:, :], (0, 2, 1))              # (B, C, 256)

    consts = (m_x, m_z) + tuple(params_x) + tuple(params_z)

    def _const_spec(a):
        nd = a.ndim
        return pl.BlockSpec(a.shape, lambda b: (0,) * nd)      # resident, fetched once

    in_specs = [pl.BlockSpec((1, C, n_x), lambda b: (b, 0, 0)),
                pl.BlockSpec((1, C, n_z), lambda b: (b, 0, 0))]
    in_specs += [_const_spec(a) for a in consts]

    kernel = functools.partial(_sgblock_kernel, dim=C)
    xo_t, zo_t = pl.pallas_call(
        kernel,
        out_shape=(jax.ShapeDtypeStruct((B, C, n_x), jnp.float32),
                   jax.ShapeDtypeStruct((B, C, n_z), jnp.float32)),
        grid_spec=pltpu.PrefetchScalarGridSpec(
            num_scalar_prefetch=0,
            grid=(B,),
            in_specs=in_specs,
            out_specs=[pl.BlockSpec((1, C, n_x), lambda b: (b, 0, 0)),
                       pl.BlockSpec((1, C, n_z), lambda b: (b, 0, 0))],
        ),
        compiler_params=pltpu.CompilerParams(dimension_semantics=("parallel",)),
    )(x_t, z_t, *consts)

    xo = jnp.transpose(xo_t, (0, 2, 1))                        # (B, 256, C)
    zo = jnp.transpose(zo_t, (0, 2, 1))                        # (B, 64, C)
    return jnp.concatenate([zo, xo], axis=1)                   # (B, 320, C)


# ---------------------------------------------------------------------------
# Pure-JAX reference matching the PyTorch SGBlock.forward semantics.
# ---------------------------------------------------------------------------
def sgblock_ref(x, wc_x, wc_z, prm_x, prm_z):
    def layer_norm(t, g, b, eps=1e-5):
        mu = jnp.mean(t, axis=-1, keepdims=True)
        var = jnp.mean((t - mu) ** 2, axis=-1, keepdims=True)
        return (t - mu) / jnp.sqrt(var + eps) * g + b

    def branch(t, H, W, wc, prm):
        g1, b1, g2, b2, W1, c1, W2, c2 = prm
        u = layer_norm(t, g1, b1)
        s = _patch2token(_spectral_gating(_token2patch(u, H, W), wc))
        v = layer_norm(s, g2, b2)
        m = jax.nn.gelu(v @ W1 + c1, approximate=False) @ W2 + c2
        return m + t

    z = x[:, :64, :]
    xx = x[:, 64:, :]
    zo = branch(z, 8, 8, wc_z, prm_z)
    xo = branch(xx, 16, 16, wc_x, prm_x)
    return jnp.concatenate([zo, xo], axis=1)


if __name__ == "__main__":
    B, dim = 2, 8
    Hx = Wx = 16
    Hz = Wz = 8
    Nx, Nz = Hx * Wx, Hz * Wz            # 256, 64
    Ntot = Nx + Nz                       # 320

    key = jax.random.PRNGKey(0)
    ks = jax.random.split(key, 12)

    x = jax.random.normal(ks[0], (B, Ntot, dim), dtype=jnp.float32)

    # SpectralGatingNetwork complex weights: (h, w//2+1, dim, 2) * 0.02, as in torch.
    wx_raw = 0.02 * jax.random.normal(ks[1], (Hx, Wx // 2 + 1, dim, 2), dtype=jnp.float32)
    wz_raw = 0.02 * jax.random.normal(ks[2], (Hz, Wz // 2 + 1, dim, 2), dtype=jnp.float32)
    wc_x = wx_raw[..., 0] + 1j * wx_raw[..., 1]
    wc_z = wz_raw[..., 0] + 1j * wz_raw[..., 1]

    def ln_init(k):
        k1, k2 = jax.random.split(k)
        return (1.0 + 0.1 * jax.random.normal(k1, (dim,), dtype=jnp.float32),
                0.1 * jax.random.normal(k2, (dim,), dtype=jnp.float32))

    def linear_init(k, fin, fout):
        k1, k2 = jax.random.split(k)
        w = jax.random.normal(k1, (fin, fout), dtype=jnp.float32) / jnp.sqrt(jnp.float32(fin))
        b = 0.02 * jax.random.normal(k2, (fout,), dtype=jnp.float32)
        return w, b

    gx1, bx1 = ln_init(ks[3])
    gx2, bx2 = ln_init(ks[4])
    gz1, bz1 = ln_init(ks[5])
    gz2, bz2 = ln_init(ks[6])
    W1x, c1x = linear_init(ks[7], dim, 2 * dim)
    W2x, c2x = linear_init(ks[8], 2 * dim, dim)
    W1z, c1z = linear_init(ks[9], dim, 2 * dim)
    W2z, c2z = linear_init(ks[10], 2 * dim, dim)

    # One-time parameter preprocessing: fold rfft2 * weight -> irfft2 into dense
    # per-channel token-space operators (exact: the gating is linear).
    m_x = fold_spectral_operator(wc_x, Hx, Wx)   # (dim, 256, 256)
    m_z = fold_spectral_operator(wc_z, Hz, Wz)   # (dim, 64, 64)

    def kernel_branch_params(g1, b1, g2, b2, W1, c1, W2, c2):
        col = lambda a: a.reshape(a.shape[0], 1)
        return (col(g1), col(b1), col(g2), col(b2),
                W1.T, c1.reshape(-1, 1), W2.T, c2.reshape(-1, 1))

    params_x = kernel_branch_params(gx1, bx1, gx2, bx2, W1x, c1x, W2x, c2x)
    params_z = kernel_branch_params(gz1, bz1, gz2, bz2, W1z, c1z, W2z, c2z)

    out = sgblock_pallas(x, m_x, m_z, params_x, params_z)
    out = jax.block_until_ready(out)

    ref = sgblock_ref(x, wc_x, wc_z,
                      (gx1, bx1, gx2, bx2, W1x, c1x, W2x, c2x),
                      (gz1, bz1, gz2, bz2, W1z, c1z, W2z, c2z))
    assert out.shape == (B, Ntot, dim)
    max_err = float(jnp.max(jnp.abs(out - ref)))
    # Expected diff ~1e-5: f32 accumulation-order difference between the direct
    # FFT path (reference) and the folded-operator path (kernel), amplified by
    # the second LayerNorm; 1e-3 still catches any semantic error (O(0.1-1)).
    assert jnp.allclose(out, ref, atol=1e-3, rtol=1e-3), (
        f"mismatch vs reference (max |err| = {max_err})")
    print("KERNEL_OK")
</pallas_src>

<mosaic_0001>
module attributes {stable_mosaic.version = 11 : i64} {
  func.func @_sgblock_kernel(%arg0: i32, %arg1: memref<1x8x256xf32, #tpu.memory_space<vmem>>, %arg2: memref<1x8x64xf32, #tpu.memory_space<vmem>>, %arg3: memref<8x256x256xf32, #tpu.memory_space<vmem>>, %arg4: memref<8x64x64xf32, #tpu.memory_space<vmem>>, %arg5: memref<8x1xf32, #tpu.memory_space<vmem>>, %arg6: memref<8x1xf32, #tpu.memory_space<vmem>>, %arg7: memref<8x1xf32, #tpu.memory_space<vmem>>, %arg8: memref<8x1xf32, #tpu.memory_space<vmem>>, %arg9: memref<16x8xf32, #tpu.memory_space<vmem>>, %arg10: memref<16x1xf32, #tpu.memory_space<vmem>>, %arg11: memref<8x16xf32, #tpu.memory_space<vmem>>, %arg12: memref<8x1xf32, #tpu.memory_space<vmem>>, %arg13: memref<8x1xf32, #tpu.memory_space<vmem>>, %arg14: memref<8x1xf32, #tpu.memory_space<vmem>>, %arg15: memref<8x1xf32, #tpu.memory_space<vmem>>, %arg16: memref<8x1xf32, #tpu.memory_space<vmem>>, %arg17: memref<16x8xf32, #tpu.memory_space<vmem>>, %arg18: memref<16x1xf32, #tpu.memory_space<vmem>>, %arg19: memref<8x16xf32, #tpu.memory_space<vmem>>, %arg20: memref<8x1xf32, #tpu.memory_space<vmem>>, %arg21: memref<1x8x256xf32, #tpu.memory_space<vmem>>, %arg22: memref<1x8x64xf32, #tpu.memory_space<vmem>>) attributes {dimension_semantics = [#tpu.dimension_semantics<parallel>], iteration_bounds = array<i64: 2>, scalar_prefetch = 0 : i64, scratch_operands = 0 : i64, tpu.core_type = #tpu.core_type<tc>, window_params = [{transform_indices = @transform_0, window_bounds = array<i64: 1, 8, 256>}, {transform_indices = @transform_1, window_bounds = array<i64: 1, 8, 64>}, {pipeline_mode = #tpu.pipeline_mode<synchronous>, transform_indices = @transform_2, window_bounds = array<i64: 8, 256, 256>}, {pipeline_mode = #tpu.pipeline_mode<synchronous>, transform_indices = @transform_3, window_bounds = array<i64: 8, 64, 64>}, {pipeline_mode = #tpu.pipeline_mode<synchronous>, transform_indices = @transform_4, window_bounds = array<i64: 8, 1>}, {pipeline_mode = #tpu.pipeline_mode<synchronous>, transform_indices = @transform_5, window_bounds = array<i64: 8, 1>}, {pipeline_mode = #tpu.pipeline_mode<synchronous>, transform_indices = @transform_6, window_bounds = array<i64: 8, 1>}, {pipeline_mode = #tpu.pipeline_mode<synchronous>, transform_indices = @transform_7, window_bounds = array<i64: 8, 1>}, {pipeline_mode = #tpu.pipeline_mode<synchronous>, transform_indices = @transform_8, window_bounds = array<i64: 16, 8>}, {pipeline_mode = #tpu.pipeline_mode<synchronous>, transform_indices = @transform_9, window_bounds = array<i64: 16, 1>}, {pipeline_mode = #tpu.pipeline_mode<synchronous>, transform_indices = @transform_10, window_bounds = array<i64: 8, 16>}, {pipeline_mode = #tpu.pipeline_mode<synchronous>, transform_indices = @transform_11, window_bounds = array<i64: 8, 1>}, {pipeline_mode = #tpu.pipeline_mode<synchronous>, transform_indices = @transform_12, window_bounds = array<i64: 8, 1>}, {pipeline_mode = #tpu.pipeline_mode<synchronous>, transform_indices = @transform_13, window_bounds = array<i64: 8, 1>}, {pipeline_mode = #tpu.pipeline_mode<synchronous>, transform_indices = @transform_14, window_bounds = array<i64: 8, 1>}, {pipeline_mode = #tpu.pipeline_mode<synchronous>, transform_indices = @transform_15, window_bounds = array<i64: 8, 1>}, {pipeline_mode = #tpu.pipeline_mode<synchronous>, transform_indices = @transform_16, window_bounds = array<i64: 16, 8>}, {pipeline_mode = #tpu.pipeline_mode<synchronous>, transform_indices = @transform_17, window_bounds = array<i64: 16, 1>}, {pipeline_mode = #tpu.pipeline_mode<synchronous>, transform_indices = @transform_18, window_bounds = array<i64: 8, 16>}, {pipeline_mode = #tpu.pipeline_mode<synchronous>, transform_indices = @transform_19, window_bounds = array<i64: 8, 1>}, {transform_indices = @transform_20, window_bounds = array<i64: 1, 8, 256>}, {transform_indices = @transform_21, window_bounds = array<i64: 1, 8, 64>}]} {
    %c0 = arith.constant 0 : index
    %c0_0 = arith.constant 0 : index
    %c0_1 = arith.constant 0 : index
    %0 = vector.load %arg1[%c0, %c0_0, %c0_1] : memref<1x8x256xf32, #tpu.memory_space<vmem>>, vector<1x8x256xf32>
    %1 = vector.shape_cast %0 : vector<1x8x256xf32> to vector<8x256xf32>
    %c0_2 = arith.constant 0 : index
    %c0_3 = arith.constant 0 : index
    %2 = vector.load %arg5[%c0_2, %c0_3] : memref<8x1xf32, #tpu.memory_space<vmem>>, vector<8x1xf32>
    %c0_4 = arith.constant 0 : index
    %c0_5 = arith.constant 0 : index
    %3 = vector.load %arg6[%c0_4, %c0_5] : memref<8x1xf32, #tpu.memory_space<vmem>>, vector<8x1xf32>
    %c0_6 = arith.constant 0 : index
    %c0_7 = arith.constant 0 : index
    %4 = vector.load %arg7[%c0_6, %c0_7] : memref<8x1xf32, #tpu.memory_space<vmem>>, vector<8x1xf32>
    %c0_8 = arith.constant 0 : index
    %c0_9 = arith.constant 0 : index
    %5 = vector.load %arg8[%c0_8, %c0_9] : memref<8x1xf32, #tpu.memory_space<vmem>>, vector<8x1xf32>
    %c0_10 = arith.constant 0 : index
    %c0_11 = arith.constant 0 : index
    %6 = vector.load %arg9[%c0_10, %c0_11] : memref<16x8xf32, #tpu.memory_space<vmem>>, vector<16x8xf32>
    %c0_12 = arith.constant 0 : index
    %c0_13 = arith.constant 0 : index
    %7 = vector.load %arg10[%c0_12, %c0_13] : memref<16x1xf32, #tpu.memory_space<vmem>>, vector<16x1xf32>
    %c0_14 = arith.constant 0 : index
    %c0_15 = arith.constant 0 : index
    %8 = vector.load %arg11[%c0_14, %c0_15] : memref<8x16xf32, #tpu.memory_space<vmem>>, vector<8x16xf32>
    %c0_16 = arith.constant 0 : index
    %c0_17 = arith.constant 0 : index
    %9 = vector.load %arg12[%c0_16, %c0_17] : memref<8x1xf32, #tpu.memory_space<vmem>>, vector<8x1xf32>
    %cst = arith.constant dense<0.000000e+00> : vector<256xf32>
    %10 = vector.multi_reduction <add>, %1, %cst [0] : vector<8x256xf32> to vector<256xf32>
    %11 = vector.shape_cast %10 : vector<256xf32> to vector<1x256xf32>
    %cst_18 = arith.constant 8.000000e+00 : f32
    %12 = vector.broadcast %cst_18 : f32 to vector<1x256xf32>
    %13 = arith.divf %11, %12 : vector<1x256xf32>
    %14 = vector.broadcast %13 : vector<1x256xf32> to vector<8x256xf32>
    %15 = arith.subf %1, %14 : vector<8x256xf32>
    %16 = arith.mulf %15, %15 : vector<8x256xf32>
    %cst_19 = arith.constant dense<0.000000e+00> : vector<256xf32>
    %17 = vector.multi_reduction <add>, %16, %cst_19 [0] : vector<8x256xf32> to vector<256xf32>
    %18 = vector.shape_cast %17 : vector<256xf32> to vector<1x256xf32>
    %cst_20 = arith.constant 8.000000e+00 : f32
    %19 = vector.broadcast %cst_20 : f32 to vector<1x256xf32>
    %20 = arith.divf %18, %19 : vector<1x256xf32>
    %cst_21 = arith.constant 9.99999974E-6 : f32
    %21 = vector.broadcast %cst_21 : f32 to vector<1x256xf32>
    %22 = arith.addf %20, %21 : vector<1x256xf32>
    %23 = math.rsqrt %22 : vector<1x256xf32>
    %24 = vector.broadcast %23 : vector<1x256xf32> to vector<8x256xf32>
    %25 = arith.mulf %15, %24 : vector<8x256xf32>
    %26 = vector.broadcast %2 : vector<8x1xf32> to vector<8x256xf32>
    %27 = arith.mulf %25, %26 : vector<8x256xf32>
    %28 = vector.broadcast %3 : vector<8x1xf32> to vector<8x256xf32>
    %29 = arith.addf %27, %28 : vector<8x256xf32>
    %30 = vector.extract_strided_slice %29 {offsets = [0, 0], sizes = [1, 256], strides = [1, 1]} : vector<8x256xf32> to vector<1x256xf32>
    %c0_22 = arith.constant 0 : index
    %c0_23 = arith.constant 0 : index
    %c0_24 = arith.constant 0 : index
    %31 = vector.load %arg3[%c0_22, %c0_23, %c0_24] : memref<8x256x256xf32, #tpu.memory_space<vmem>>, vector<1x256x256xf32>
    %32 = vector.shape_cast %31 : vector<1x256x256xf32> to vector<256x256xf32>
    %cst_25 = arith.constant dense<0.000000e+00> : vector<1x256xf32>
    %33 = tpu.matmul %30, %32, %cst_25 {dimension_numbers = #tpu.dot_dimension_numbers<[1], [0], [0], [1], [0, 0, 1, 1], [], []>} : vector<1x256xf32>, vector<256x256xf32>, vector<1x256xf32> -> vector<1x256xf32>
    %34 = vector.extract_strided_slice %29 {offsets = [1, 0], sizes = [1, 256], strides = [1, 1]} : vector<8x256xf32> to vector<1x256xf32>
    %c1 = arith.constant 1 : index
    %c0_26 = arith.constant 0 : index
    %c0_27 = arith.constant 0 : index
    %35 = vector.load %arg3[%c1, %c0_26, %c0_27] : memref<8x256x256xf32, #tpu.memory_space<vmem>>, vector<1x256x256xf32>
    %36 = vector.shape_cast %35 : vector<1x256x256xf32> to vector<256x256xf32>
    %cst_28 = arith.constant dense<0.000000e+00> : vector<1x256xf32>
    %37 = tpu.matmul %34, %36, %cst_28 {dimension_numbers = #tpu.dot_dimension_numbers<[1], [0], [0], [1], [0, 0, 1, 1], [], []>} : vector<1x256xf32>, vector<256x256xf32>, vector<1x256xf32> -> vector<1x256xf32>
    %38 = vector.extract_strided_slice %29 {offsets = [2, 0], sizes = [1, 256], strides = [1, 1]} : vector<8x256xf32> to vector<1x256xf32>
    %c2 = arith.constant 2 : index
    %c0_29 = arith.constant 0 : index
    %c0_30 = arith.constant 0 : index
    %39 = vector.load %arg3[%c2, %c0_29, %c0_30] : memref<8x256x256xf32, #tpu.memory_space<vmem>>, vector<1x256x256xf32>
    %40 = vector.shape_cast %39 : vector<1x256x256xf32> to vector<256x256xf32>
    %cst_31 = arith.constant dense<0.000000e+00> : vector<1x256xf32>
    %41 = tpu.matmul %38, %40, %cst_31 {dimension_numbers = #tpu.dot_dimension_numbers<[1], [0], [0], [1], [0, 0, 1, 1], [], []>} : vector<1x256xf32>, vector<256x256xf32>, vector<1x256xf32> -> vector<1x256xf32>
    %42 = vector.extract_strided_slice %29 {offsets = [3, 0], sizes = [1, 256], strides = [1, 1]} : vector<8x256xf32> to vector<1x256xf32>
    %c3 = arith.constant 3 : index
    %c0_32 = arith.constant 0 : index
    %c0_33 = arith.constant 0 : index
    %43 = vector.load %arg3[%c3, %c0_32, %c0_33] : memref<8x256x256xf32, #tpu.memory_space<vmem>>, vector<1x256x256xf32>
    %44 = vector.shape_cast %43 : vector<1x256x256xf32> to vector<256x256xf32>
    %cst_34 = arith.constant dense<0.000000e+00> : vector<1x256xf32>
    %45 = tpu.matmul %42, %44, %cst_34 {dimension_numbers = #tpu.dot_dimension_numbers<[1], [0], [0], [1], [0, 0, 1, 1], [], []>} : vector<1x256xf32>, vector<256x256xf32>, vector<1x256xf32> -> vector<1x256xf32>
    %46 = vector.extract_strided_slice %29 {offsets = [4, 0], sizes = [1, 256], strides = [1, 1]} : vector<8x256xf32> to vector<1x256xf32>
    %c4 = arith.constant 4 : index
    %c0_35 = arith.constant 0 : index
    %c0_36 = arith.constant 0 : index
    %47 = vector.load %arg3[%c4, %c0_35, %c0_36] : memref<8x256x256xf32, #tpu.memory_space<vmem>>, vector<1x256x256xf32>
    %48 = vector.shape_cast %47 : vector<1x256x256xf32> to vector<256x256xf32>
    %cst_37 = arith.constant dense<0.000000e+00> : vector<1x256xf32>
    %49 = tpu.matmul %46, %48, %cst_37 {dimension_numbers = #tpu.dot_dimension_numbers<[1], [0], [0], [1], [0, 0, 1, 1], [], []>} : vector<1x256xf32>, vector<256x256xf32>, vector<1x256xf32> -> vector<1x256xf32>
    %50 = vector.extract_strided_slice %29 {offsets = [5, 0], sizes = [1, 256], strides = [1, 1]} : vector<8x256xf32> to vector<1x256xf32>
    %c5 = arith.constant 5 : index
    %c0_38 = arith.constant 0 : index
    %c0_39 = arith.constant 0 : index
    %51 = vector.load %arg3[%c5, %c0_38, %c0_39] : memref<8x256x256xf32, #tpu.memory_space<vmem>>, vector<1x256x256xf32>
    %52 = vector.shape_cast %51 : vector<1x256x256xf32> to vector<256x256xf32>
    %cst_40 = arith.constant dense<0.000000e+00> : vector<1x256xf32>
    %53 = tpu.matmul %50, %52, %cst_40 {dimension_numbers = #tpu.dot_dimension_numbers<[1], [0], [0], [1], [0, 0, 1, 1], [], []>} : vector<1x256xf32>, vector<256x256xf32>, vector<1x256xf32> -> vector<1x256xf32>
    %54 = vector.extract_strided_slice %29 {offsets = [6, 0], sizes = [1, 256], strides = [1, 1]} : vector<8x256xf32> to vector<1x256xf32>
    %c6 = arith.constant 6 : index
    %c0_41 = arith.constant 0 : index
    %c0_42 = arith.constant 0 : index
    %55 = vector.load %arg3[%c6, %c0_41, %c0_42] : memref<8x256x256xf32, #tpu.memory_space<vmem>>, vector<1x256x256xf32>
    %56 = vector.shape_cast %55 : vector<1x256x256xf32> to vector<256x256xf32>
    %cst_43 = arith.constant dense<0.000000e+00> : vector<1x256xf32>
    %57 = tpu.matmul %54, %56, %cst_43 {dimension_numbers = #tpu.dot_dimension_numbers<[1], [0], [0], [1], [0, 0, 1, 1], [], []>} : vector<1x256xf32>, vector<256x256xf32>, vector<1x256xf32> -> vector<1x256xf32>
    %58 = vector.extract_strided_slice %29 {offsets = [7, 0], sizes = [1, 256], strides = [1, 1]} : vector<8x256xf32> to vector<1x256xf32>
    %c7 = arith.constant 7 : index
    %c0_44 = arith.constant 0 : index
    %c0_45 = arith.constant 0 : index
    %59 = vector.load %arg3[%c7, %c0_44, %c0_45] : memref<8x256x256xf32, #tpu.memory_space<vmem>>, vector<1x256x256xf32>
    %60 = vector.shape_cast %59 : vector<1x256x256xf32> to vector<256x256xf32>
    %cst_46 = arith.constant dense<0.000000e+00> : vector<1x256xf32>
    %61 = tpu.matmul %58, %60, %cst_46 {dimension_numbers = #tpu.dot_dimension_numbers<[1], [0], [0], [1], [0, 0, 1, 1], [], []>} : vector<1x256xf32>, vector<256x256xf32>, vector<1x256xf32> -> vector<1x256xf32>
    %62 = tpu.concatenate %33, %37, %41, %45, %49, %53, %57, %61 in 0 : vector<1x256xf32>, vector<1x256xf32>, vector<1x256xf32>, vector<1x256xf32>, vector<1x256xf32>, vector<1x256xf32>, vector<1x256xf32>, vector<1x256xf32> -> vector<8x256xf32>
    %cst_47 = arith.constant dense<0.000000e+00> : vector<256xf32>
    %63 = vector.multi_reduction <add>, %62, %cst_47 [0] : vector<8x256xf32> to vector<256xf32>
    %64 = vector.shape_cast %63 : vector<256xf32> to vector<1x256xf32>
    %cst_48 = arith.constant 8.000000e+00 : f32
    %65 = vector.broadcast %cst_48 : f32 to vector<1x256xf32>
    %66 = arith.divf %64, %65 : vector<1x256xf32>
    %67 = vector.broadcast %66 : vector<1x256xf32> to vector<8x256xf32>
    %68 = arith.subf %62, %67 : vector<8x256xf32>
    %69 = arith.mulf %68, %68 : vector<8x256xf32>
    %cst_49 = arith.constant dense<0.000000e+00> : vector<256xf32>
    %70 = vector.multi_reduction <add>, %69, %cst_49 [0] : vector<8x256xf32> to vector<256xf32>
    %71 = vector.shape_cast %70 : vector<256xf32> to vector<1x256xf32>
    %cst_50 = arith.constant 8.000000e+00 : f32
    %72 = vector.broadcast %cst_50 : f32 to vector<1x256xf32>
    %73 = arith.divf %71, %72 : vector<1x256xf32>
    %cst_51 = arith.constant 9.99999974E-6 : f32
    %74 = vector.broadcast %cst_51 : f32 to vector<1x256xf32>
    %75 = arith.addf %73, %74 : vector<1x256xf32>
    %76 = math.rsqrt %75 : vector<1x256xf32>
    %77 = vector.broadcast %76 : vector<1x256xf32> to vector<8x256xf32>
    %78 = arith.mulf %68, %77 : vector<8x256xf32>
    %79 = vector.broadcast %4 : vector<8x1xf32> to vector<8x256xf32>
    %80 = arith.mulf %78, %79 : vector<8x256xf32>
    %81 = vector.broadcast %5 : vector<8x1xf32> to vector<8x256xf32>
    %82 = arith.addf %80, %81 : vector<8x256xf32>
    %cst_52 = arith.constant dense<0.000000e+00> : vector<16x256xf32>
    %83 = tpu.matmul %6, %82, %cst_52 {dimension_numbers = #tpu.dot_dimension_numbers<[1], [0], [0], [1], [0, 0, 1, 1], [], []>} : vector<16x8xf32>, vector<8x256xf32>, vector<16x256xf32> -> vector<16x256xf32>
    %84 = vector.broadcast %7 : vector<16x1xf32> to vector<16x256xf32>
    %85 = arith.addf %83, %84 : vector<16x256xf32>
    %cst_53 = arith.constant 5.000000e-01 : f32
    %86 = vector.broadcast %cst_53 : f32 to vector<16x256xf32>
    %87 = arith.mulf %86, %85 : vector<16x256xf32>
    %cst_54 = arith.constant 0.707106769 : f32
    %88 = vector.broadcast %cst_54 : f32 to vector<16x256xf32>
    %89 = arith.mulf %85, %88 : vector<16x256xf32>
    %cst_55 = arith.constant 0.000000e+00 : f32
    %90 = vector.broadcast %cst_55 : f32 to vector<16x256xf32>
    %91 = arith.cmpf oge, %89, %90 : vector<16x256xf32>
    %cst_56 = arith.constant 1.000000e+00 : f32
    %cst_57 = arith.constant -1.000000e+00 : f32
    %92 = vector.broadcast %cst_56 : f32 to vector<16x256xf32>
    %93 = vector.broadcast %cst_57 : f32 to vector<16x256xf32>
    %94 = arith.select %91, %92, %93 : vector<16x256xi1>, vector<16x256xf32>
    %95 = math.absf %89 : vector<16x256xf32>
    %cst_58 = arith.constant 0.327591091 : f32
    %96 = vector.broadcast %cst_58 : f32 to vector<16x256xf32>
    %97 = arith.mulf %96, %95 : vector<16x256xf32>
    %cst_59 = arith.constant 1.000000e+00 : f32
    %98 = vector.broadcast %cst_59 : f32 to vector<16x256xf32>
    %99 = arith.addf %98, %97 : vector<16x256xf32>
    %cst_60 = arith.constant 1.000000e+00 : f32
    %100 = vector.broadcast %cst_60 : f32 to vector<16x256xf32>
    %101 = arith.divf %100, %99 : vector<16x256xf32>
    %cst_61 = arith.constant 1.06140542 : f32
    %102 = vector.broadcast %cst_61 : f32 to vector<16x256xf32>
    %103 = arith.mulf %102, %101 : vector<16x256xf32>
    %cst_62 = arith.constant -1.45315206 : f32
    %104 = vector.broadcast %cst_62 : f32 to vector<16x256xf32>
    %105 = arith.addf %103, %104 : vector<16x256xf32>
    %106 = arith.mulf %105, %101 : vector<16x256xf32>
    %cst_63 = arith.constant 1.42141378 : f32
    %107 = vector.broadcast %cst_63 : f32 to vector<16x256xf32>
    %108 = arith.addf %106, %107 : vector<16x256xf32>
    %109 = arith.mulf %108, %101 : vector<16x256xf32>
    %cst_64 = arith.constant -0.284496725 : f32
    %110 = vector.broadcast %cst_64 : f32 to vector<16x256xf32>
    %111 = arith.addf %109, %110 : vector<16x256xf32>
    %112 = arith.mulf %111, %101 : vector<16x256xf32>
    %cst_65 = arith.constant 0.254829586 : f32
    %113 = vector.broadcast %cst_65 : f32 to vector<16x256xf32>
    %114 = arith.addf %112, %113 : vector<16x256xf32>
    %115 = arith.mulf %114, %101 : vector<16x256xf32>
    %cst_66 = arith.constant 0.000000e+00 : f32
    %116 = vector.broadcast %cst_66 : f32 to vector<16x256xf32>
    %117 = arith.subf %116, %95 : vector<16x256xf32>
    %118 = arith.mulf %117, %95 : vector<16x256xf32>
    %119 = math.exp %118 : vector<16x256xf32>
    %120 = arith.mulf %115, %119 : vector<16x256xf32>
    %cst_67 = arith.constant 1.000000e+00 : f32
    %121 = vector.broadcast %cst_67 : f32 to vector<16x256xf32>
    %122 = arith.subf %121, %120 : vector<16x256xf32>
    %123 = arith.mulf %94, %122 : vector<16x256xf32>
    %cst_68 = arith.constant 1.000000e+00 : f32
    %124 = vector.broadcast %cst_68 : f32 to vector<16x256xf32>
    %125 = arith.addf %124, %123 : vector<16x256xf32>
    %126 = arith.mulf %87, %125 : vector<16x256xf32>
    %cst_69 = arith.constant dense<0.000000e+00> : vector<8x256xf32>
    %127 = tpu.matmul %8, %126, %cst_69 {dimension_numbers = #tpu.dot_dimension_numbers<[1], [0], [0], [1], [0, 0, 1, 1], [], []>} : vector<8x16xf32>, vector<16x256xf32>, vector<8x256xf32> -> vector<8x256xf32>
    %128 = vector.broadcast %9 : vector<8x1xf32> to vector<8x256xf32>
    %129 = arith.addf %127, %128 : vector<8x256xf32>
    %130 = arith.addf %129, %1 : vector<8x256xf32>
    %c0_70 = arith.constant 0 : index
    %c0_71 = arith.constant 0 : index
    %c0_72 = arith.constant 0 : index
    %131 = vector.load %arg21[%c0_70, %c0_71, %c0_72] : memref<1x8x256xf32, #tpu.memory_space<vmem>>, vector<1x8x256xf32>
    %132 = vector.shape_cast %131 : vector<1x8x256xf32> to vector<8x256xf32>
    %133 = vector.shape_cast %130 : vector<8x256xf32> to vector<1x8x256xf32>
    tpu.vector_store %arg21[%c0_70, %c0_71, %c0_72], %133 {strides = array<i32>} : memref<1x8x256xf32, #tpu.memory_space<vmem>>, vector<1x8x256xf32>,
    %c0_73 = arith.constant 0 : index
    %c0_74 = arith.constant 0 : index
    %c0_75 = arith.constant 0 : index
    %134 = vector.load %arg2[%c0_73, %c0_74, %c0_75] : memref<1x8x64xf32, #tpu.memory_space<vmem>>, vector<1x8x64xf32>
    %135 = vector.shape_cast %134 : vector<1x8x64xf32> to vector<8x64xf32>
    %c0_76 = arith.constant 0 : index
    %c0_77 = arith.constant 0 : index
    %136 = vector.load %arg13[%c0_76, %c0_77] : memref<8x1xf32, #tpu.memory_space<vmem>>, vector<8x1xf32>
    %c0_78 = arith.constant 0 : index
    %c0_79 = arith.constant 0 : index
    %137 = vector.load %arg14[%c0_78, %c0_79] : memref<8x1xf32, #tpu.memory_space<vmem>>, vector<8x1xf32>
    %c0_80 = arith.constant 0 : index
    %c0_81 = arith.constant 0 : index
    %138 = vector.load %arg15[%c0_80, %c0_81] : memref<8x1xf32, #tpu.memory_space<vmem>>, vector<8x1xf32>
    %c0_82 = arith.constant 0 : index
    %c0_83 = arith.constant 0 : index
    %139 = vector.load %arg16[%c0_82, %c0_83] : memref<8x1xf32, #tpu.memory_space<vmem>>, vector<8x1xf32>
    %c0_84 = arith.constant 0 : index
    %c0_85 = arith.constant 0 : index
    %140 = vector.load %arg17[%c0_84, %c0_85] : memref<16x8xf32, #tpu.memory_space<vmem>>, vector<16x8xf32>
    %c0_86 = arith.constant 0 : index
    %c0_87 = arith.constant 0 : index
    %141 = vector.load %arg18[%c0_86, %c0_87] : memref<16x1xf32, #tpu.memory_space<vmem>>, vector<16x1xf32>
    %c0_88 = arith.constant 0 : index
    %c0_89 = arith.constant 0 : index
    %142 = vector.load %arg19[%c0_88, %c0_89] : memref<8x16xf32, #tpu.memory_space<vmem>>, vector<8x16xf32>
    %c0_90 = arith.constant 0 : index
    %c0_91 = arith.constant 0 : index
    %143 = vector.load %arg20[%c0_90, %c0_91] : memref<8x1xf32, #tpu.memory_space<vmem>>, vector<8x1xf32>
    %cst_92 = arith.constant dense<0.000000e+00> : vector<64xf32>
    %144 = vector.multi_reduction <add>, %135, %cst_92 [0] : vector<8x64xf32> to vector<64xf32>
    %145 = vector.shape_cast %144 : vector<64xf32> to vector<1x64xf32>
    %cst_93 = arith.constant 8.000000e+00 : f32
    %146 = vector.broadcast %cst_93 : f32 to vector<1x64xf32>
    %147 = arith.divf %145, %146 : vector<1x64xf32>
    %148 = vector.broadcast %147 : vector<1x64xf32> to vector<8x64xf32>
    %149 = arith.subf %135, %148 : vector<8x64xf32>
    %150 = arith.mulf %149, %149 : vector<8x64xf32>
    %cst_94 = arith.constant dense<0.000000e+00> : vector<64xf32>
    %151 = vector.multi_reduction <add>, %150, %cst_94 [0] : vector<8x64xf32> to vector<64xf32>
    %152 = vector.shape_cast %151 : vector<64xf32> to vector<1x64xf32>
    %cst_95 = arith.constant 8.000000e+00 : f32
    %153 = vector.broadcast %cst_95 : f32 to vector<1x64xf32>
    %154 = arith.divf %152, %153 : vector<1x64xf32>
    %cst_96 = arith.constant 9.99999974E-6 : f32
    %155 = vector.broadcast %cst_96 : f32 to vector<1x64xf32>
    %156 = arith.addf %154, %155 : vector<1x64xf32>
    %157 = math.rsqrt %156 : vector<1x64xf32>
    %158 = vector.broadcast %157 : vector<1x64xf32> to vector<8x64xf32>
    %159 = arith.mulf %149, %158 : vector<8x64xf32>
    %160 = vector.broadcast %136 : vector<8x1xf32> to vector<8x64xf32>
    %161 = arith.mulf %159, %160 : vector<8x64xf32>
    %162 = vector.broadcast %137 : vector<8x1xf32> to vector<8x64xf32>
    %163 = arith.addf %161, %162 : vector<8x64xf32>
    %164 = vector.extract_strided_slice %163 {offsets = [0, 0], sizes = [1, 64], strides = [1, 1]} : vector<8x64xf32> to vector<1x64xf32>
    %c0_97 = arith.constant 0 : index
    %c0_98 = arith.constant 0 : index
    %c0_99 = arith.constant 0 : index
    %165 = vector.load %arg4[%c0_97, %c0_98, %c0_99] : memref<8x64x64xf32, #tpu.memory_space<vmem>>, vector<1x64x64xf32>
    %166 = vector.shape_cast %165 : vector<1x64x64xf32> to vector<64x64xf32>
    %cst_100 = arith.constant dense<0.000000e+00> : vector<1x64xf32>
    %167 = tpu.matmul %164, %166, %cst_100 {dimension_numbers = #tpu.dot_dimension_numbers<[1], [0], [0], [1], [0, 0, 1, 1], [], []>} : vector<1x64xf32>, vector<64x64xf32>, vector<1x64xf32> -> vector<1x64xf32>
    %168 = vector.extract_strided_slice %163 {offsets = [1, 0], sizes = [1, 64], strides = [1, 1]} : vector<8x64xf32> to vector<1x64xf32>
    %c1_101 = arith.constant 1 : index
    %c0_102 = arith.constant 0 : index
    %c0_103 = arith.constant 0 : index
    %169 = vector.load %arg4[%c1_101, %c0_102, %c0_103] : memref<8x64x64xf32, #tpu.memory_space<vmem>>, vector<1x64x64xf32>
    %170 = vector.shape_cast %169 : vector<1x64x64xf32> to vector<64x64xf32>
    %cst_104 = arith.constant dense<0.000000e+00> : vector<1x64xf32>
    %171 = tpu.matmul %168, %170, %cst_104 {dimension_numbers = #tpu.dot_dimension_numbers<[1], [0], [0], [1], [0, 0, 1, 1], [], []>} : vector<1x64xf32>, vector<64x64xf32>, vector<1x64xf32> -> vector<1x64xf32>
    %172 = vector.extract_strided_slice %163 {offsets = [2, 0], sizes = [1, 64], strides = [1, 1]} : vector<8x64xf32> to vector<1x64xf32>
    %c2_105 = arith.constant 2 : index
    %c0_106 = arith.constant 0 : index
    %c0_107 = arith.constant 0 : index
    %173 = vector.load %arg4[%c2_105, %c0_106, %c0_107] : memref<8x64x64xf32, #tpu.memory_space<vmem>>, vector<1x64x64xf32>
    %174 = vector.shape_cast %173 : vector<1x64x64xf32> to vector<64x64xf32>
    %cst_108 = arith.constant dense<0.000000e+00> : vector<1x64xf32>
    %175 = tpu.matmul %172, %174, %cst_108 {dimension_numbers = #tpu.dot_dimension_numbers<[1], [0], [0], [1], [0, 0, 1, 1], [], []>} : vector<1x64xf32>, vector<64x64xf32>, vector<1x64xf32> -> vector<1x64xf32>
    %176 = vector.extract_strided_slice %163 {offsets = [3, 0], sizes = [1, 64], strides = [1, 1]} : vector<8x64xf32> to vector<1x64xf32>
    %c3_109 = arith.constant 3 : index
    %c0_110 = arith.constant 0 : index
    %c0_111 = arith.constant 0 : index
    %177 = vector.load %arg4[%c3_109, %c0_110, %c0_111] : memref<8x64x64xf32, #tpu.memory_space<vmem>>, vector<1x64x64xf32>
    %178 = vector.shape_cast %177 : vector<1x64x64xf32> to vector<64x64xf32>
    %cst_112 = arith.constant dense<0.000000e+00> : vector<1x64xf32>
    %179 = tpu.matmul %176, %178, %cst_112 {dimension_numbers = #tpu.dot_dimension_numbers<[1], [0], [0], [1], [0, 0, 1, 1], [], []>} : vector<1x64xf32>, vector<64x64xf32>, vector<1x64xf32> -> vector<1x64xf32>
    %180 = vector.extract_strided_slice %163 {offsets = [4, 0], sizes = [1, 64], strides = [1, 1]} : vector<8x64xf32> to vector<1x64xf32>
    %c4_113 = arith.constant 4 : index
    %c0_114 = arith.constant 0 : index
    %c0_115 = arith.constant 0 : index
    %181 = vector.load %arg4[%c4_113, %c0_114, %c0_115] : memref<8x64x64xf32, #tpu.memory_space<vmem>>, vector<1x64x64xf32>
    %182 = vector.shape_cast %181 : vector<1x64x64xf32> to vector<64x64xf32>
    %cst_116 = arith.constant dense<0.000000e+00> : vector<1x64xf32>
    %183 = tpu.matmul %180, %182, %cst_116 {dimension_numbers = #tpu.dot_dimension_numbers<[1], [0], [0], [1], [0, 0, 1, 1], [], []>} : vector<1x64xf32>, vector<64x64xf32>, vector<1x64xf32> -> vector<1x64xf32>
    %184 = vector.extract_strided_slice %163 {offsets = [5, 0], sizes = [1, 64], strides = [1, 1]} : vector<8x64xf32> to vector<1x64xf32>
    %c5_117 = arith.constant 5 : index
    %c0_118 = arith.constant 0 : index
    %c0_119 = arith.constant 0 : index
    %185 = vector.load %arg4[%c5_117, %c0_118, %c0_119] : memref<8x64x64xf32, #tpu.memory_space<vmem>>, vector<1x64x64xf32>
    %186 = vector.shape_cast %185 : vector<1x64x64xf32> to vector<64x64xf32>
    %cst_120 = arith.constant dense<0.000000e+00> : vector<1x64xf32>
    %187 = tpu.matmul %184, %186, %cst_120 {dimension_numbers = #tpu.dot_dimension_numbers<[1], [0], [0], [1], [0, 0, 1, 1], [], []>} : vector<1x64xf32>, vector<64x64xf32>, vector<1x64xf32> -> vector<1x64xf32>
    %188 = vector.extract_strided_slice %163 {offsets = [6, 0], sizes = [1, 64], strides = [1, 1]} : vector<8x64xf32> to vector<1x64xf32>
    %c6_121 = arith.constant 6 : index
    %c0_122 = arith.constant 0 : index
    %c0_123 = arith.constant 0 : index
    %189 = vector.load %arg4[%c6_121, %c0_122, %c0_123] : memref<8x64x64xf32, #tpu.memory_space<vmem>>, vector<1x64x64xf32>
    %190 = vector.shape_cast %189 : vector<1x64x64xf32> to vector<64x64xf32>
    %cst_124 = arith.constant dense<0.000000e+00> : vector<1x64xf32>
    %191 = tpu.matmul %188, %190, %cst_124 {dimension_numbers = #tpu.dot_dimension_numbers<[1], [0], [0], [1], [0, 0, 1, 1], [], []>} : vector<1x64xf32>, vector<64x64xf32>, vector<1x64xf32> -> vector<1x64xf32>
    %192 = vector.extract_strided_slice %163 {offsets = [7, 0], sizes = [1, 64], strides = [1, 1]} : vector<8x64xf32> to vector<1x64xf32>
    %c7_125 = arith.constant 7 : index
    %c0_126 = arith.constant 0 : index
    %c0_127 = arith.constant 0 : index
    %193 = vector.load %arg4[%c7_125, %c0_126, %c0_127] : memref<8x64x64xf32, #tpu.memory_space<vmem>>, vector<1x64x64xf32>
    %194 = vector.shape_cast %193 : vector<1x64x64xf32> to vector<64x64xf32>
    %cst_128 = arith.constant dense<0.000000e+00> : vector<1x64xf32>
    %195 = tpu.matmul %192, %194, %cst_128 {dimension_numbers = #tpu.dot_dimension_numbers<[1], [0], [0], [1], [0, 0, 1, 1], [], []>} : vector<1x64xf32>, vector<64x64xf32>, vector<1x64xf32> -> vector<1x64xf32>
    %196 = tpu.concatenate %167, %171, %175, %179, %183, %187, %191, %195 in 0 : vector<1x64xf32>, vector<1x64xf32>, vector<1x64xf32>, vector<1x64xf32>, vector<1x64xf32>, vector<1x64xf32>, vector<1x64xf32>, vector<1x64xf32> -> vector<8x64xf32>
    %cst_129 = arith.constant dense<0.000000e+00> : vector<64xf32>
    %197 = vector.multi_reduction <add>, %196, %cst_129 [0] : vector<8x64xf32> to vector<64xf32>
    %198 = vector.shape_cast %197 : vector<64xf32> to vector<1x64xf32>
    %cst_130 = arith.constant 8.000000e+00 : f32
    %199 = vector.broadcast %cst_130 : f32 to vector<1x64xf32>
    %200 = arith.divf %198, %199 : vector<1x64xf32>
    %201 = vector.broadcast %200 : vector<1x64xf32> to vector<8x64xf32>
    %202 = arith.subf %196, %201 : vector<8x64xf32>
    %203 = arith.mulf %202, %202 : vector<8x64xf32>
    %cst_131 = arith.constant dense<0.000000e+00> : vector<64xf32>
    %204 = vector.multi_reduction <add>, %203, %cst_131 [0] : vector<8x64xf32> to vector<64xf32>
    %205 = vector.shape_cast %204 : vector<64xf32> to vector<1x64xf32>
    %cst_132 = arith.constant 8.000000e+00 : f32
    %206 = vector.broadcast %cst_132 : f32 to vector<1x64xf32>
    %207 = arith.divf %205, %206 : vector<1x64xf32>
    %cst_133 = arith.constant 9.99999974E-6 : f32
    %208 = vector.broadcast %cst_133 : f32 to vector<1x64xf32>
    %209 = arith.addf %207, %208 : vector<1x64xf32>
    %210 = math.rsqrt %209 : vector<1x64xf32>
    %211 = vector.broadcast %210 : vector<1x64xf32> to vector<8x64xf32>
    %212 = arith.mulf %202, %211 : vector<8x64xf32>
    %213 = vector.broadcast %138 : vector<8x1xf32> to vector<8x64xf32>
    %214 = arith.mulf %212, %213 : vector<8x64xf32>
    %215 = vector.broadcast %139 : vector<8x1xf32> to vector<8x64xf32>
    %216 = arith.addf %214, %215 : vector<8x64xf32>
    %cst_134 = arith.constant dense<0.000000e+00> : vector<16x64xf32>
    %217 = tpu.matmul %140, %216, %cst_134 {dimension_numbers = #tpu.dot_dimension_numbers<[1], [0], [0], [1], [0, 0, 1, 1], [], []>} : vector<16x8xf32>, vector<8x64xf32>, vector<16x64xf32> -> vector<16x64xf32>
    %218 = vector.broadcast %141 : vector<16x1xf32> to vector<16x64xf32>
    %219 = arith.addf %217, %218 : vector<16x64xf32>
    %cst_135 = arith.constant 5.000000e-01 : f32
    %220 = vector.broadcast %cst_135 : f32 to vector<16x64xf32>
    %221 = arith.mulf %220, %219 : vector<16x64xf32>
    %cst_136 = arith.constant 0.707106769 : f32
    %222 = vector.broadcast %cst_136 : f32 to vector<16x64xf32>
    %223 = arith.mulf %219, %222 : vector<16x64xf32>
    %cst_137 = arith.constant 0.000000e+00 : f32
    %224 = vector.broadcast %cst_137 : f32 to vector<16x64xf32>
    %225 = arith.cmpf oge, %223, %224 : vector<16x64xf32>
    %cst_138 = arith.constant 1.000000e+00 : f32
    %cst_139 = arith.constant -1.000000e+00 : f32
    %226 = vector.broadcast %cst_138 : f32 to vector<16x64xf32>
    %227 = vector.broadcast %cst_139 : f32 to vector<16x64xf32>
    %228 = arith.select %225, %226, %227 : vector<16x64xi1>, vector<16x64xf32>
    %229 = math.absf %223 : vector<16x64xf32>
    %cst_140 = arith.constant 0.327591091 : f32
    %230 = vector.broadcast %cst_140 : f32 to vector<16x64xf32>
    %231 = arith.mulf %230, %229 : vector<16x64xf32>
    %cst_141 = arith.constant 1.000000e+00 : f32
    %232 = vector.broadcast %cst_141 : f32 to vector<16x64xf32>
    %233 = arith.addf %232, %231 : vector<16x64xf32>
    %cst_142 = arith.constant 1.000000e+00 : f32
    %234 = vector.broadcast %cst_142 : f32 to vector<16x64xf32>
    %235 = arith.divf %234, %233 : vector<16x64xf32>
    %cst_143 = arith.constant 1.06140542 : f32
    %236 = vector.broadcast %cst_143 : f32 to vector<16x64xf32>
    %237 = arith.mulf %236, %235 : vector<16x64xf32>
    %cst_144 = arith.constant -1.45315206 : f32
    %238 = vector.broadcast %cst_144 : f32 to vector<16x64xf32>
    %239 = arith.addf %237, %238 : vector<16x64xf32>
    %240 = arith.mulf %239, %235 : vector<16x64xf32>
    %cst_145 = arith.constant 1.42141378 : f32
    %241 = vector.broadcast %cst_145 : f32 to vector<16x64xf32>
    %242 = arith.addf %240, %241 : vector<16x64xf32>
    %243 = arith.mulf %242, %235 : vector<16x64xf32>
    %cst_146 = arith.constant -0.284496725 : f32
    %244 = vector.broadcast %cst_146 : f32 to vector<16x64xf32>
    %245 = arith.addf %243, %244 : vector<16x64xf32>
    %246 = arith.mulf %245, %235 : vector<16x64xf32>
    %cst_147 = arith.constant 0.254829586 : f32
    %247 = vector.broadcast %cst_147 : f32 to vector<16x64xf32>
    %248 = arith.addf %246, %247 : vector<16x64xf32>
    %249 = arith.mulf %248, %235 : vector<16x64xf32>
    %cst_148 = arith.constant 0.000000e+00 : f32
    %250 = vector.broadcast %cst_148 : f32 to vector<16x64xf32>
    %251 = arith.subf %250, %229 : vector<16x64xf32>
    %252 = arith.mulf %251, %229 : vector<16x64xf32>
    %253 = math.exp %252 : vector<16x64xf32>
    %254 = arith.mulf %249, %253 : vector<16x64xf32>
    %cst_149 = arith.constant 1.000000e+00 : f32
    %255 = vector.broadcast %cst_149 : f32 to vector<16x64xf32>
    %256 = arith.subf %255, %254 : vector<16x64xf32>
    %257 = arith.mulf %228, %256 : vector<16x64xf32>
    %cst_150 = arith.constant 1.000000e+00 : f32
    %258 = vector.broadcast %cst_150 : f32 to vector<16x64xf32>
    %259 = arith.addf %258, %257 : vector<16x64xf32>
    %260 = arith.mulf %221, %259 : vector<16x64xf32>
    %cst_151 = arith.constant dense<0.000000e+00> : vector<8x64xf32>
    %261 = tpu.matmul %142, %260, %cst_151 {dimension_numbers = #tpu.dot_dimension_numbers<[1], [0], [0], [1], [0, 0, 1, 1], [], []>} : vector<8x16xf32>, vector<16x64xf32>, vector<8x64xf32> -> vector<8x64xf32>
    %262 = vector.broadcast %143 : vector<8x1xf32> to vector<8x64xf32>
    %263 = arith.addf %261, %262 : vector<8x64xf32>
    %264 = arith.addf %263, %135 : vector<8x64xf32>
    %c0_152 = arith.constant 0 : index
    %c0_153 = arith.constant 0 : index
    %c0_154 = arith.constant 0 : index
    %265 = vector.load %arg22[%c0_152, %c0_153, %c0_154] : memref<1x8x64xf32, #tpu.memory_space<vmem>>, vector<1x8x64xf32>
    %266 = vector.shape_cast %265 : vector<1x8x64xf32> to vector<8x64xf32>
    %267 = vector.shape_cast %264 : vector<8x64xf32> to vector<1x8x64xf32>
    tpu.vector_store %arg22[%c0_152, %c0_153, %c0_154], %267 {strides = array<i32>} : memref<1x8x64xf32, #tpu.memory_space<vmem>>, vector<1x8x64xf32>,
    return
  }
  func.func @transform_0(%arg0: i32) -> (i32, i32, i32) {
    %c0_i32 = arith.constant 0 : i32
    %c0_i32_0 = arith.constant 0 : i32
    %c0_i32_1 = arith.constant 0 : i32
    return %arg0, %c0_i32, %c0_i32_0 : i32, i32, i32
  }
  func.func @transform_1(%arg0: i32) -> (i32, i32, i32) {
    %c0_i32 = arith.constant 0 : i32
    %c0_i32_0 = arith.constant 0 : i32
    %c0_i32_1 = arith.constant 0 : i32
    return %arg0, %c0_i32, %c0_i32_0 : i32, i32, i32
  }
  func.func @transform_2(%arg0: i32) -> (i32, i32, i32) {
    %c0_i32 = arith.constant 0 : i32
    %c0_i32_0 = arith.constant 0 : i32
    %c0_i32_1 = arith.constant 0 : i32
    %c0_i32_2 = arith.constant 0 : i32
    return %c0_i32, %c0_i32_0, %c0_i32_1 : i32, i32, i32
  }
  func.func @transform_3(%arg0: i32) -> (i32, i32, i32) {
    %c0_i32 = arith.constant 0 : i32
    %c0_i32_0 = arith.constant 0 : i32
    %c0_i32_1 = arith.constant 0 : i32
    %c0_i32_2 = arith.constant 0 : i32
    return %c0_i32, %c0_i32_0, %c0_i32_1 : i32, i32, i32
  }
  func.func @transform_4(%arg0: i32) -> (i32, i32) {
    %c0_i32 = arith.constant 0 : i32
    %c0_i32_0 = arith.constant 0 : i32
    %c0_i32_1 = arith.constant 0 : i32
    return %c0_i32, %c0_i32_0 : i32, i32
  }
  func.func @transform_5(%arg0: i32) -> (i32, i32) {
    %c0_i32 = arith.constant 0 : i32
    %c0_i32_0 = arith.constant 0 : i32
    %c0_i32_1 = arith.constant 0 : i32
    return %c0_i32, %c0_i32_0 : i32, i32
  }
  func.func @transform_6(%arg0: i32) -> (i32, i32) {
    %c0_i32 = arith.constant 0 : i32
    %c0_i32_0 = arith.constant 0 : i32
    %c0_i32_1 = arith.constant 0 : i32
    return %c0_i32, %c0_i32_0 : i32, i32
  }
  func.func @transform_7(%arg0: i32) -> (i32, i32) {
    %c0_i32 = arith.constant 0 : i32
    %c0_i32_0 = arith.constant 0 : i32
    %c0_i32_1 = arith.constant 0 : i32
    return %c0_i32, %c0_i32_0 : i32, i32
  }
  func.func @transform_8(%arg0: i32) -> (i32, i32) {
    %c0_i32 = arith.constant 0 : i32
    %c0_i32_0 = arith.constant 0 : i32
    %c0_i32_1 = arith.constant 0 : i32
    return %c0_i32, %c0_i32_0 : i32, i32
  }
  func.func @transform_9(%arg0: i32) -> (i32, i32) {
    %c0_i32 = arith.constant 0 : i32
    %c0_i32_0 = arith.constant 0 : i32
    %c0_i32_1 = arith.constant 0 : i32
    return %c0_i32, %c0_i32_0 : i32, i32
  }
  func.func @transform_10(%arg0: i32) -> (i32, i32) {
    %c0_i32 = arith.constant 0 : i32
    %c0_i32_0 = arith.constant 0 : i32
    %c0_i32_1 = arith.constant 0 : i32
    return %c0_i32, %c0_i32_0 : i32, i32
  }
  func.func @transform_11(%arg0: i32) -> (i32, i32) {
    %c0_i32 = arith.constant 0 : i32
    %c0_i32_0 = arith.constant 0 : i32
    %c0_i32_1 = arith.constant 0 : i32
    return %c0_i32, %c0_i32_0 : i32, i32
  }
  func.func @transform_12(%arg0: i32) -> (i32, i32) {
    %c0_i32 = arith.constant 0 : i32
    %c0_i32_0 = arith.constant 0 : i32
    %c0_i32_1 = arith.constant 0 : i32
    return %c0_i32, %c0_i32_0 : i32, i32
  }
  func.func @transform_13(%arg0: i32) -> (i32, i32) {
    %c0_i32 = arith.constant 0 : i32
    %c0_i32_0 = arith.constant 0 : i32
    %c0_i32_1 = arith.constant 0 : i32
    return %c0_i32, %c0_i32_0 : i32, i32
  }
  func.func @transform_14(%arg0: i32) -> (i32, i32) {
    %c0_i32 = arith.constant 0 : i32
    %c0_i32_0 = arith.constant 0 : i32
    %c0_i32_1 = arith.constant 0 : i32
    return %c0_i32, %c0_i32_0 : i32, i32
  }
  func.func @transform_15(%arg0: i32) -> (i32, i32) {
    %c0_i32 = arith.constant 0 : i32
    %c0_i32_0 = arith.constant 0 : i32
    %c0_i32_1 = arith.constant 0 : i32
    return %c0_i32, %c0_i32_0 : i32, i32
  }
  func.func @transform_16(%arg0: i32) -> (i32, i32) {
    %c0_i32 = arith.constant 0 : i32
    %c0_i32_0 = arith.constant 0 : i32
    %c0_i32_1 = arith.constant 0 : i32
    return %c0_i32, %c0_i32_0 : i32, i32
  }
  func.func @transform_17(%arg0: i32) -> (i32, i32) {
    %c0_i32 = arith.constant 0 : i32
    %c0_i32_0 = arith.constant 0 : i32
    %c0_i32_1 = arith.constant 0 : i32
    return %c0_i32, %c0_i32_0 : i32, i32
  }
  func.func @transform_18(%arg0: i32) -> (i32, i32) {
    %c0_i32 = arith.constant 0 : i32
    %c0_i32_0 = arith.constant 0 : i32
    %c0_i32_1 = arith.constant 0 : i32
    return %c0_i32, %c0_i32_0 : i32, i32
  }
  func.func @transform_19(%arg0: i32) -> (i32, i32) {
    %c0_i32 = arith.constant 0 : i32
    %c0_i32_0 = arith.constant 0 : i32
    %c0_i32_1 = arith.constant 0 : i32
    return %c0_i32, %c0_i32_0 : i32, i32
  }
  func.func @transform_20(%arg0: i32) -> (i32, i32, i32) {
    %c0_i32 = arith.constant 0 : i32
    %c0_i32_0 = arith.constant 0 : i32
    %c0_i32_1 = arith.constant 0 : i32
    return %arg0, %c0_i32, %c0_i32_0 : i32, i32, i32
  }
  func.func @transform_21(%arg0: i32) -> (i32, i32, i32) {
    %c0_i32 = arith.constant 0 : i32
    %c0_i32_0 = arith.constant 0 : i32
    %c0_i32_1 = arith.constant 0 : i32
    return %arg0, %c0_i32, %c0_i32_0 : i32, i32, i32
  }
}

</mosaic_0001>

<bundles_post_ra>
// kernel: tpu_custom_call.1
= control target key start
LH: loop header
LB: loop body
LE: loop exit
PB: predicated region body
PF: predicated region fallthrough
CT: control target
= control target key end

     0   :  { %s4335_s0 = inlined_call_operand.hbm [shape: f32[2,8,256], index: 0, kind: input, shape index: {}]   ;;  %s4336_s1 = inlined_call_operand.hbm [shape: f32[2,8,64], index: 1, kind: input, shape index: {}]   ;;  %s4337_s2 = inlined_call_operand.hbm [shape: f32[8,256,256], index: 2, kind: input, shape index: {}]   ;;  %s4338_s3 = inlined_call_operand.hbm [shape: f32[8,64,64], index: 3, kind: input, shape index: {}]   ;;  %s4339_s4 = inlined_call_operand.vmem [shape: f32[8,1], index: 4, kind: input, shape index: {}]   ;;  %s4340_s5 = inlined_call_operand.vmem [shape: f32[8,1], index: 5, kind: input, shape index: {}]   ;;  %s4341_s6 = inlined_call_operand.vmem [shape: f32[8,1], index: 6, kind: input, shape index: {}]   ;;  %s4342_s7 = inlined_call_operand.vmem [shape: f32[8,1], index: 7, kind: input, shape index: {}]   ;;  %s4343_s8 = inlined_call_operand.vmem [shape: f32[16,8], index: 8, kind: input, shape index: {}]   ;;  %s4344_s9 = inlined_call_operand.vmem [shape: f32[16,1], index: 9, kind: input, shape index: {}]   ;;  %s4345_s10 = inlined_call_operand.hbm [shape: f32[8,16], index: 10, kind: input, shape index: {}]   ;;  %s4346_s11 = inlined_call_operand.vmem [shape: f32[8,1], index: 11, kind: input, shape index: {}]   ;;  %s4347_s12 = inlined_call_operand.vmem [shape: f32[8,1], index: 12, kind: input, shape index: {}]   ;;  %s4348_s13 = inlined_call_operand.vmem [shape: f32[8,1], index: 13, kind: input, shape index: {}]   ;;  %s4349_s14 = inlined_call_operand.vmem [shape: f32[8,1], index: 14, kind: input, shape index: {}]   ;;  %s4350_s15 = inlined_call_operand.vmem [shape: f32[8,1], index: 15, kind: input, shape index: {}]   ;;  %s4351_s16 = inlined_call_operand.vmem [shape: f32[16,8], index: 16, kind: input, shape index: {}]   ;;  %s4352_s17 = inlined_call_operand.vmem [shape: f32[16,1], index: 17, kind: input, shape index: {}]   ;;  %s4353_s18 = inlined_call_operand.hbm [shape: f32[8,16], index: 18, kind: input, shape index: {}]   ;;  %s4354_s19 = inlined_call_operand.vmem [shape: f32[8,1], index: 19, kind: input, shape index: {}]   ;;  %s4355_s20 = inlined_call_operand.hbm [shape: f32[2,8,256], index: 20, kind: output, shape index: {0}]   ;;  %s4356_s21 = inlined_call_operand.hbm [shape: f32[2,8,64], index: 21, kind: output, shape index: {1}]  }
   0x1   :  { %4374 = sst [smem:[#allocation29_spill]] %s4335_s0 }
   0x2   :  { %4375 = sst [smem:[#allocation30_spill]] %s4336_s1 }
   0x3   :  { %4376 = sst [smem:[#allocation31_spill]] %s4337_s2 }
   0x4   :  { %4377 = sst [smem:[#allocation32_spill]] %s4338_s3 }
   0x5   :  { %4378 = sst [smem:[#allocation33_spill]] %s4339_s4 }
   0x6   :  { %4379 = sst [smem:[#allocation34_spill]] %s4340_s5 }
   0x7   :  { %4380 = sst [smem:[#allocation35_spill]] %s4341_s6 }
   0x8   :  { %4381 = sst [smem:[#allocation36_spill]] %s4342_s7 }
   0x9   :  { %4382 = sst [smem:[#allocation37_spill]] %s4343_s8 }
   0xa   :  { %4383 = sst [smem:[#allocation38_spill]] %s4344_s9 }
   0xb   :  { %4384 = sst [smem:[#allocation39_spill]] %s4345_s10 }
   0xc   :  { %4385 = sst [smem:[#allocation40_spill]] %s4349_s14 }
   0xd   :  { %4386 = sst [smem:[#allocation41_spill]] %s4351_s16 }
   0xe   :  { %4387 = sst [smem:[#allocation42_spill]] %s4352_s17 }
   0xf   :  { %4388 = sst [smem:[#allocation43_spill]] %s4353_s18 }
  0x10   :  { %4389 = sst [smem:[#allocation44_spill]] %s4354_s19 }
  0x11   :  { %4390 = sst [smem:[#allocation45_spill]] %s4355_s20 }
  0x12   :  { %4391 = sst [smem:[#allocation46_spill]] %s4356_s21 }
  0x13   :  { %27 = vsyncpa [#allocation3], 0 }
  0x14   :  { %29 = vsyncpa [#allocation3 + $0x1], 0 }
  0x15   :  { %30 = vsyncpa [#allocation6], 0 }
  0x16   :  { %32 = vsyncpa [#allocation6 + $0x1], 0 }
  0x17   :  { %33 = vsyncpa [#allocation9], 0 }
  0x18   :  { %34 = vsyncpa [#allocation12], 0 }
  0x19   :  { %35 = vsyncpa [#allocation4], 0 }
  0x1a   :  { %37 = vsyncpa [#allocation4 + $0x1], 0 }
  0x1b   :  { %38 = vsyncpa [#allocation15], 0 }
  0x1c   :  { %40 = vsyncpa [#allocation15 + $0x1], 0  ;;  %s3815_s2 = smov 0   ;;  %s3817_s25 = smov 0  }
  0x1d   :  { %s3819_s26 = smov 0   ;;  %s3821_s27 = smov 0  }
  0x1e LB: > { %4392 = sst [smem:[#allocation23_spill]] %s3680_s2  ;;  %s3839_s4 = sadd.s32 4294967295, %s3692_s27   ;;  %s3692_s27 = sphi %s3821_s27, %s4429_s27   ;;  %s3688_s26 = sphi %s3819_s26, %s4431_s26   ;;  %s3684_s25 = sphi %s3817_s25, %s4433_s25   ;;  %s3680_s2 = sphi %s3815_s2, %s4432_s2  }
  0x1f   : > { %4393 = sst [smem:[#allocation24_spill]] %s3688_s26  ;;  %p3203_p0 = scmp.ge.s32.totalorder %s3692_s27, 1 }
  0x20   : > { %s4394_s29 = sld [smem:[#allocation31_spill]]  ;;  %p67_p1 = scmp.eq.s32.totalorder %s3839_s4, 0 }
  0x21   : > { %p533_p2 = scmp.lt.s32.totalorder %s3692_s27, 3  ;;  %s3694_s5 = smov [#allocation7]  }
  0x22   : > { %s546_s22 = sshll.u32 %s3694_s5, 4  ;;  %s4396_s24 = sld [smem:[#allocation32_spill]]  ;;  %s547_s22 = int_to_ptr.vmem [resolvable:$true] %s546_s22 }
  0x23   : > { %p3844_p3 = pnand %p3203_p0, %p533_p2  ;;  %s3696_s5 = smov 256  }
  0x24   : > { %s3697_s20 = smov 16   ;;  %s3698_s23 = smov 128  }
  0x25   : > { %p3274_p4 = pneg %p3844_p3  ;;  %s3699_s1 = smov 8  }
  0x26   : > { %s544_s0 = sshll.u32 %s4394_s29, 4  ;;  %s3695_s29 = smov [#allocation8]   ;;  %s545_s0 = int_to_ptr.hbm [resolvable:$true] %s544_s0 }
  0x27   : > { %p3856_p6 = pnand %p3274_p4, %p67_p1  ;;  %s560_s21 = sshll.u32 %s3695_s29, 4  ;;  %s561_s21 = int_to_ptr.vmem [resolvable:$true] %s560_s21 }
  0x28   : > { %s558_s3 = sshll.u32 %s4396_s24, 4  ;;  %s4398_s10 = sld [smem:[#allocation39_spill]]  ;;  %s559_s3 = int_to_ptr.hbm [resolvable:$true] %s558_s3 }
  0x29   : > { %3277 = dma.hbm_to_vmem [thread:$0]  (!%p3856_p6), %s545_s0, 65536, %s547_s22, [#allocation6], %s3696_s5, %s3696_s5, %s3697_s20  }
  0x2a   : > { %3280 = dma.hbm_to_vmem [thread:$0]  (!%p3856_p6), %s559_s3, 8192, %s561_s21, [#allocation9], %s3698_s23, %s3698_s23, %s3699_s1  }
  0x2b   : > { %s3700_s29 = smov [#allocation10]   ;;  %s4399_s18 = sld [smem:[#allocation43_spill]] }
  0x2c   : > { %s593_s20 = sshll.u32 %s3700_s29, 4  ;;  %s3701_s16 = smov [#allocation11]   ;;  %s594_s20 = int_to_ptr.vmem [resolvable:$true] %s593_s20 }
  0x2d   : > { %s626_s21 = sshll.u32 %s3701_s16, 4  ;;  %s3202_s3 = sadd.s32 4294967294, %s3692_s27   ;;  %s627_s21 = int_to_ptr.vmem [resolvable:$true] %s626_s21 }
  0x2e   : > { %s591_s14 = sshll.u32 %s4398_s10, 4  ;;  %s3876_s23 = sadd.s32 1, %s3692_s27   ;;  %s592_s14 = int_to_ptr.hbm [resolvable:$true] %s591_s14 }
  0x2f   : > { %3283 = dma.hbm_to_vmem [thread:$0]  (!%p3856_p6), %s592_s14, 128, %s594_s20, [#allocation9]  }
  0x30   : > { %4400 = sst [smem:[#allocation25_spill]] %s3876_s23  ;;  %s50_s1 = ssub.s32 %s3692_s27, %s3876_s23 }
  0x31   : > { %s624_s5 = sshll.u32 %s4399_s18, 4  ;;  %s53_s24 = sadd.s32 1, %s3688_s26  ;;  %s625_s5 = int_to_ptr.hbm [resolvable:$true] %s624_s5 }
  0x32   : > { %3286 = dma.hbm_to_vmem [thread:$0]  (!%p3856_p6), %s625_s5, 128, %s627_s21, [#allocation12]  }
  0x33   : > { %p51_p7 = scmp.eq.s32.totalorder %s50_s1, 0  ;;  %p60_p8 = scmp.ne.s32.totalorder %s3688_s26, %s3684_s25 }
  0x34   : > { %p61_p9 = scmp.eq.s32.totalorder %s3692_s27, 0  ;;  %p66_p10 = scmp.ne.s32.totalorder %s3684_s25, %s3680_s2 }
  0x35   : > { %s3887_s14 = scalar_select %p51_p7, %s3688_s26, %s53_s24  }
  0x36   : > { %p3889_p11 = por %p61_p9, %p60_p8  ;;  %p3895_p12 = por %p67_p1, %p66_p10 }
  0x37   : > { %4401 = sst [smem:[#allocation26_spill]] %s3887_s14  ;;  %p494_p13 = scmp.eq.s32.totalorder %s3839_s4, 1 }
  0x38   : > { %p500_p0 = scmp.eq.s32.totalorder %s3202_s3, 1  ;;  %p3305_p2 = scmp.lt.s32.totalorder %s3692_s27, 2 }
  0x39   : > { %s3902_s20 = sand.u32 1, %s3688_s26   ;;  %p3904_p4 = por %p494_p13, %p60_p8 }
  0x3a   : > { %p3908_p6 = por %p500_p0, %p66_p10  ;;  %s3209_s5 = sshll.u32 %s3902_s20, 4 }
  0x3b   : > { %s4404_s0 = scalar_select %p3904_p4, 1, 0 }
  0x3c   : > { %s4406_s22 = scalar_select %p3908_p6, 1, 0 }
  0x3d   : > { %4405 = sst [smem:[#allocation27_spill]] %s4404_s0  ;;  %s3247_s16 = sshll.u32 %s3692_s27, 4 }
  0x3e   : > { %4407 = sst [smem:[#allocation28_spill]] %s4406_s22  ;;  %s644_s10 = scalar_lea.vmem [#allocation2], %s3209_s5 }
  0x3f   : > { %s4408_s24 = sld [smem:[#allocation29_spill]]  ;;  %s653_s18 = sshll.u32 %s644_s10, 4  ;;  %s654_s18 = int_to_ptr.vmem [resolvable:$true] %s653_s18 }
  0x40   : > { %p3919_p7 = pnand %p3305_p2, %p3889_p11  ;;  %s660_s23 = sand.u32 1, %s3692_s27  }
  0x41   : > { %s3212_s22 = sshll.u32 %s3902_s20, 3  ;;  %s641_s2 = scalar_lea.sflag [#allocation3], %s3902_s20 }
  0x42   : > { %p3522_p9 = pneg %p3919_p7 }
  0x45   : > { %s649_s3 = scalar_lea.hbm %s4408_s24, %s3247_s16  ;;  %s3525_s5 = scalar_lea.hbm %s4408_s24, 32 }
  0x46   : > { %s651_s14 = sshll.u32 %s649_s3, 4  ;;  %s652_s14 = int_to_ptr.hbm [resolvable:$true] %s651_s14 }
  0x47   : > { %s3518_s0 = sshra.s32 %s652_s14, 4  ;;  %s3519_s0 = int_to_ptr.hbm [resolvable:$true] %s3518_s0 }
  0x48   : > { %s3520_s8 = scalar_lea.hbm %s3519_s0, 16  ;;  %p3526_p11 = scmp.lt.s32.totalorder %s3519_s0, %s4408_s24 }
  0x49   : > { %p3521_p8 = scmp.ne.s32.totalorder %s3519_s0, %s3520_s8  ;;  %p3527_p0 = scmp.lt.s32.totalorder %s3525_s5, %s3520_s8 }
  0x4b   : > { %p3523_p10 = pnand %p3522_p9, %p3521_p8  ;;  %p3528_p2 = por %p3527_p0, %p3526_p11 }
  0x4d   : > { %p3524_p13 = pneg %p3523_p10 }
  0x4f   : > { %p3529_p5 = pnand %p3528_p2, %p3524_p13 }
  0x51   : > { %3532 = shalt.err (!%p3529_p5)
}
  0x52   : > { %3290 = dma.hbm_to_vmem [thread:$0]  (!%p3919_p7), %s652_s14, 256, %s654_s18, %s641_s2  }
  0x53   : > { %s3213_s20 = sshll.u32 %s3692_s27, 3  ;;  %s4410_s9 = sld [smem:[#allocation30_spill]] }
  0x54   : > { %s664_s10 = scalar_lea.vmem [#allocation5], %s3212_s22  ;;  %s661_s0 = scalar_lea.sflag [#allocation6], %s660_s23 }
  0x55   : > { %s672_s29 = sshll.u32 %s664_s10, 4  ;;  %s673_s29 = int_to_ptr.vmem [resolvable:$true] %s672_s29 }
  0x59   : > { %s668_s19 = scalar_lea.hbm %s4410_s9, %s3213_s20  ;;  %s3555_s14 = scalar_lea.hbm %s4410_s9, 16 }
  0x5a   : > { %s670_s17 = sshll.u32 %s668_s19, 4  ;;  %s671_s17 = int_to_ptr.hbm [resolvable:$true] %s670_s17 }
  0x5b   : > { %s3548_s8 = sshra.s32 %s671_s17, 4  ;;  %s3549_s8 = int_to_ptr.hbm [resolvable:$true] %s3548_s8 }
  0x5c   : > { %s3550_s5 = scalar_lea.hbm %s3549_s8, 8  ;;  %p3556_p13 = scmp.lt.s32.totalorder %s3549_s8, %s4410_s9 }
  0x5d   : > { %p3551_p5 = scmp.ne.s32.totalorder %s3549_s8, %s3550_s5  ;;  %p3557_p11 = scmp.lt.s32.totalorder %s3555_s14, %s3550_s5 }
  0x5f   : > { %p3553_p8 = pnand %p3551_p5, %p3522_p9  ;;  %p3558_p0 = por %p3557_p11, %p3556_p13 }
  0x61   : > { %p3554_p10 = pneg %p3553_p8 }
  0x63   : > { %p3559_p2 = pnand %p3558_p0, %p3554_p10 }
  0x65   : > { %3562 = shalt.err (!%p3559_p2)
}
  0x66   : > { %3293 = dma.hbm_to_vmem [thread:$0]  (!%p3919_p7), %s671_s17, 128, %s673_s29, %s661_s0  }
  0x67   : > { %681 = sbr.rel (%p3844_p3) target bundleno = 1396 (0x574), region = 100  ;;  %s3957_s19 = sand.u32 (!%p3844_p3), 1, %s3684_s25  }
  0x68   : > { %s3215_s23 = sshll.u32 (!%p3844_p3), %s3957_s19, 4  ;;  %s684_s22 = scalar_lea.sflag (!%p3844_p3), [#allocation3], %s3957_s19 }
  0x69   : > { %s3963_s20 = scalar_lea.vmem (!%p3844_p3), [#allocation2], %s3215_s23 }
  0x6c   : > { %3651 = dma.done.wait (%p3895_p12), %s684_s22, 256  }
  0x6d   : > { %3653 = vsyncadd (%p3895_p12), %s684_s22, 4294967040  ;;  %s693_s17 = sand.u32 1, %s3839_s4   ;;  %s4372_s26 = sshll.u32 %s3957_s19, 3 }
  0x6e   : > { %s694_s30 = scalar_lea.sflag [#allocation6], %s693_s17  ;;  %s3973_s1 = scalar_lea.vmem [#allocation5], %s4372_s26 }
  0x6f   : > { %3655 = dma.done.wait (%p3895_p12), %s694_s30, 128  }
  0x70   : > { %3657 = vsyncadd (%p3895_p12), %s694_s30, 4294967168 }
  0x71   : > { %3659 = dma.done.wait (%p67_p1), [#allocation6], 65536  }
  0x72   : > { %3661 = vsyncadd (%p67_p1), [#allocation6], 4294901760 }
  0x73   : > { %3663 = dma.done.wait (%p67_p1), [#allocation9], 8320  }
  0x74   : > { %3665 = vsyncadd (%p67_p1), [#allocation9], 4294958976 }
  0x75   : > { %3667 = dma.done.wait (%p67_p1), [#allocation12], 128  }
  0x76   : > { %3669 = vsyncadd (%p67_p1), [#allocation12], 4294967168  ;;  %v3702_v0 = vmov 0   ;;  %s4411_s10 = sld [smem:[#allocation33_spill]]  ;;  %v906_v3 = vld [vmem:[#allocation7 + $0xf0] sm:$0xff]  ;;  %v907_v5 = vld [vmem:[#allocation7 + $0xf8] sm:$0xff] }
  0x77   : > { %3354 = vset.pattern.permute.xlu0 %v3702_v0  ;;  %3355 = vset.pattern.permute.xlu1 %v3702_v0  ;;  %s4412_s6 = sld [smem:[#allocation35_spill]]  ;;  %v938_v4 = vld [vmem:[#allocation7 + $0x1f0] sm:$0xff]  ;;  %v939_v6 = vld [vmem:[#allocation7 + $0x1f8] sm:$0xff]  ;;  %v904_v7 = vld [vmem:[#allocation7 + $0xe0] sm:$0xff]  ;;  %v3703_v56 = vmov 8.0   ;;  %vm2485_vm7 = vcmask 523264  }
  0x78   : > { %3356 = vset.pattern.permute.xlu2 %v3702_v0  ;;  %940 = vmatpush.msra.mxu0 %v906_v3  ;;  %v936_v8 = vld [vmem:[#allocation7 + $0x1e0] sm:$0xff]  ;;  %v905_v9 = vld [vmem:[#allocation7 + $0xe8] sm:$0xff]  ;;  %v902_v11 = vld [vmem:[#allocation7 + $0xd0] sm:$0xff]  ;;  %s4413_s18 = sld [smem:[#allocation34_spill]]  ;;  %3357 = vrcp.f32 %v3703_v56  ;;  %vm2107_vm8 = vcmask 1040384   ;;  %vm2110_vm9 = vcmask 1041408  }
  0x79   : > { %960 = vmatpush.msra.mxu1 %v938_v4  ;;  %980 = vmatpush.msra.mxu2 %v907_v5  ;;  %v937_v10 = vld [vmem:[#allocation7 + $0x1e8] sm:$0xff]  ;;  %v934_v12 = vld [vmem:[#allocation7 + $0x1d0] sm:$0xff]  ;;  %s4414_s7 = sld [smem:[#allocation36_spill]]  ;;  %v903_v15 = vld [vmem:[#allocation7 + $0xd8] sm:$0xff]  ;;  %vm2113_vm10 = vcmask 1042432   ;;  %vm2116_vm11 = vcmask 1043456  }
  0x7a   : > { %1000 = vmatpush.msra.mxu3 %v939_v6  ;;  %941 = vmatpush.msra.mxu0 %v904_v7  ;;  %v935_v16 = vld [vmem:[#allocation7 + $0x1d8] sm:$0xff]  ;;  %v900_v17 = vld [vmem:[#allocation7 + $0xc0] sm:$0xff]  ;;  %v901_v19 = vld [vmem:[#allocation7 + $0xc8] sm:$0xff]  ;;  %s4415_s8 = sld [smem:[#allocation42_spill]]  ;;  %vm2119_vm12 = vcmask 1044480   ;;  %vm2122_vm13 = vcmask 1045504  }
  0x7b   : > { %961 = vmatpush.msra.mxu1 %v936_v8  ;;  %981 = vmatpush.msra.mxu2 %v905_v9  ;;  %v932_v18 = vld [vmem:[#allocation7 + $0x1c0] sm:$0xff]  ;;  %v933_v20 = vld [vmem:[#allocation7 + $0x1c8] sm:$0xff]  ;;  %v898_v21 = vld [vmem:[#allocation7 + $0xb0] sm:$0xff]  ;;  %s4416_s2 = sld [smem:[#allocation44_spill]]  ;;  %vm2125_vm14 = vcmask 1046528   ;;  %s4238_s16 = scalar_lea.vmem [#allocation13], %s3215_s23 }
  0x7c   : > { %v789_v1 = vld [vmem:[%s4411_s10] sm:$0xff]  ;;  %1001 = vmatpush.msra.mxu3 %v937_v10  ;;  %942 = vmatpush.msra.mxu0 %v902_v11  ;;  %v899_v23 = vld [vmem:[#allocation7 + $0xb8] sm:$0xff]  ;;  %v896_v25 = vld [vmem:[#allocation7 + $0xa0] sm:$0xff]  ;;  %s4417_s21 = sld [smem:[#allocation38_spill]]  ;;  %s3248_s10 = sshll.u32 %s3839_s4, 4 }
  0x7d   : > { %v791_v2 = vld [vmem:[%s4412_s6] sm:$0xff]  ;;  %864 = vperm.xlu0 %3354, %v789_v1   ;;  %962 = vmatpush.msra.mxu1 %v934_v12  ;;  %v931_v24 = vld [vmem:[#allocation7 + $0x1b8] sm:$0xff]  ;;  %v928_v26 = vld [vmem:[#allocation7 + $0x1a0] sm:$0xff]  ;;  %s4418_s3 = sld [smem:[#allocation37_spill]]  ;;  %s3003_s23 = scalar_lea.sflag [#allocation4], %s3957_s19 }
  0x7e   : > { %2186 = vperm.xlu1 %3355, %v791_v2   ;;  %v790_v13 = vld [vmem:[%s4413_s18] sm:$0xff]  ;;  %982 = vmatpush.msra.mxu2 %v903_v15  ;;  %v897_v27 = vld [vmem:[#allocation7 + $0xa8] sm:$0xff]  ;;  %v895_v33 = vld [vmem:[#allocation7 + $0x98] sm:$0xff]  ;;  %v4015_v3 = vpop.eup %3357  ;;  %s4419_s0 = sld [smem:[#allocation40_spill]] }
  0x7f   : > { %v792_v14 = vld [vmem:[%s4414_s7] sm:$0xff]  ;;  %1002 = vmatpush.msra.mxu3 %v935_v16  ;;  %943 = vmatpush.msra.mxu0 %v900_v17  ;;  %v929_v28 = vld [vmem:[#allocation7 + $0x1a8] sm:$0xff]  ;;  %v927_v34 = vld [vmem:[#allocation7 + $0x198] sm:$0xff]  ;;  %v812_v8 = vmul.f32 8.0, %v4015_v3  ;;  %vm816_vm0 = vweird.f32 %v4015_v3  ;;  %s4420_s22 = sld [smem:[#allocation41_spill]] }
  0x80   : > { %v930_v22 = vld [vmem:[#allocation7 + $0x1b0] sm:$0xff]  ;;  %963 = vmatpush.msra.mxu1 %v932_v18  ;;  %983 = vmatpush.msra.mxu2 %v901_v19  ;;  %v892_v35 = vld [vmem:[#allocation7 + $0x80] sm:$0xff]  ;;  %v893_v37 = vld [vmem:[#allocation7 + $0x88] sm:$0xff]  ;;  %s4422_s5 = sld [smem:[#allocation45_spill]] }
  0x81   : > { %1003 = vmatpush.msra.mxu3 %v933_v20  ;;  %944 = vmatpush.msra.mxu0 %v898_v21  ;;  %v894_v29 = vld [vmem:[#allocation7 + $0x90] sm:$0xff]  ;;  %v924_v36 = vld [vmem:[#allocation7 + $0x180] sm:$0xff]  ;;  %v925_v38 = vld [vmem:[#allocation7 + $0x188] sm:$0xff]  ;;  %v813_v15 = vsub.f32 1.0, %v812_v8 }
  0x82   : > { %964 = vmatpush.msra.mxu1 %v930_v22  ;;  %984 = vmatpush.msra.mxu2 %v899_v23  ;;  %v2475_v30 = vld [vmem:[%s4347_s12] sm:$0xff]  ;;  %v891_v41 = vld [vmem:[#allocation7 + $0x78] sm:$0xff]  ;;  %v888_v43 = vld [vmem:[#allocation7 + $0x60] sm:$0xff] }
  0x83   : > { %v2476_v31 = vld [vmem:[%s4348_s13] sm:$0xff]  ;;  %1004 = vmatpush.msra.mxu3 %v931_v24  ;;  %945 = vmatpush.msra.mxu0 %v896_v25  ;;  %v923_v42 = vld [vmem:[#allocation7 + $0x178] sm:$0xff]  ;;  %v920_v44 = vld [vmem:[#allocation7 + $0x160] sm:$0xff] }
  0x84   : > { %965 = vmatpush.msra.mxu1 %v928_v26  ;;  %985 = vmatpush.msra.mxu2 %v897_v27  ;;  %v926_v32 = vld [vmem:[#allocation7 + $0x190] sm:$0xff]  ;;  %v889_v45 = vld [vmem:[#allocation7 + $0x68] sm:$0xff]  ;;  %v887_v50 = vld [vmem:[#allocation7 + $0x58] sm:$0xff]  ;;  %v814_v27 = vmul.f32 %v4015_v3, %v813_v15 }
  0x85   : > { %871 = vperm.xlu0 %3354, %v790_v13   ;;  %1005 = vmatpush.msra.mxu3 %v929_v28  ;;  %v890_v39 = vld [vmem:[#allocation7 + $0x70] sm:$0xff]  ;;  %v921_v47 = vld [vmem:[#allocation7 + $0x168] sm:$0xff]  ;;  %v919_v51 = vld [vmem:[#allocation7 + $0x158] sm:$0xff] }
  0x86   : > { %2193 = vperm.xlu1 %3355, %v792_v14   ;;  %946 = vmatpush.msra.mxu0 %v894_v29  ;;  %v922_v40 = vld [vmem:[#allocation7 + $0x170] sm:$0xff]  ;;  %v884_v52 = vld [vmem:[#allocation7 + $0x40] sm:$0xff]  ;;  %v885_v54 = vld [vmem:[#allocation7 + $0x48] sm:$0xff]  ;;  %s3019_s18 = scalar_lea.hbm %s4422_s5, %s3248_s10 }
  0x87   : > { %966 = vmatpush.msra.mxu1 %v926_v32  ;;  %986 = vmatpush.msra.mxu2 %v895_v33  ;;  %v2478_v46 = vld [vmem:[%s4350_s15] sm:$0xff]  ;;  %v916_v53 = vld [vmem:[#allocation7 + $0x140] sm:$0xff]  ;;  %v917_v55 = vld [vmem:[#allocation7 + $0x148] sm:$0xff]  ;;  %s3023_s14 = sshll.u32 %s3019_s18, 4  ;;  %s3024_s14 = int_to_ptr.hbm [resolvable:$true] %s3023_s14 }
  0x88   : > { %1006 = vmatpush.msra.mxu3 %v927_v34  ;;  %947 = vmatpush.msra.mxu0 %v892_v35  ;;  %v886_v48 = vld [vmem:[#allocation7 + $0x50] sm:$0xff]  ;;  %v883_v59 = vld [vmem:[#allocation7 + $0x38] sm:$0xff]  ;;  %v880_v61 = vld [vmem:[#allocation7 + $0x20] sm:$0xff] }
  0x89   : > { %967 = vmatpush.msra.mxu1 %v924_v36  ;;  %987 = vmatpush.msra.mxu2 %v893_v37  ;;  %v918_v49 = vld [vmem:[#allocation7 + $0x150] sm:$0xff]  ;;  %v915_v60 = vld [vmem:[#allocation7 + $0x138] sm:$0xff]  ;;  %v912_v62 = vld [vmem:[#allocation7 + $0x120] sm:$0xff] }
  0x8a   : > { %1007 = vmatpush.msra.mxu3 %v925_v38  ;;  %948 = vmatpush.msra.mxu0 %v890_v39  ;;  %v882_v57 = vld [vmem:[#allocation7 + $0x30] sm:$0xff]  ;;  %v881_v0 = vld [vmem:[#allocation7 + $0x28] sm:$0xff]  ;;  %v879_v5 = vld [vmem:[#allocation7 + $0x18] sm:$0xff] }
  0x8b   : > { %968 = vmatpush.msra.mxu1 %v922_v40  ;;  %988 = vmatpush.msra.mxu2 %v891_v41  ;;  %v914_v58 = vld [vmem:[#allocation7 + $0x130] sm:$0xff]  ;;  %v913_v1 = vld [vmem:[#allocation7 + $0x128] sm:$0xff]  ;;  %v911_v6 = vld [vmem:[#allocation7 + $0x118] sm:$0xff]  ;;  %v815_v40 = vadd.f32 %v4015_v3, %v814_v27 }
  0x8c   : > { %1008 = vmatpush.msra.mxu3 %v923_v42  ;;  %949 = vmatpush.msra.mxu0 %v888_v43  ;;  %v798_v63 = vld [vmem:[%s4346_s11] sm:$0xff]  ;;  %v876_v7 = vld [vmem:[#allocation7] sm:$0xff]  ;;  %v877_v10 = vld [vmem:[#allocation7 + $0x8] sm:$0xff] }
  0x8d   : > { %2518 = vperm.xlu0 %3354, %v2475_v30   ;;  %969 = vmatpush.msra.mxu1 %v920_v44  ;;  %v878_v2 = vld [vmem:[#allocation7 + $0x10] sm:$0xff]  ;;  %v908_v9 = vld [vmem:[#allocation7 + $0x100] sm:$0xff]  ;;  %v909_v11 = vld [vmem:[#allocation7 + $0x108] sm:$0xff] }
  0x8e   : > { %2524 = vperm.xlu1 %3355, %v2476_v31   ;;  %989 = vmatpush.msra.mxu2 %v889_v45  ;;  %v910_v4 = vld [vmem:[#allocation7 + $0x110] sm:$0xff]  ;;  %v1052_v14 = vld [vmem:[#allocation7 + $0x2f8] sm:$0xff]  ;;  %v1049_v17 = vld [vmem:[#allocation7 + $0x2e0] sm:$0xff] }
  0x8f   : > { %1009 = vmatpush.msra.mxu3 %v921_v47  ;;  %950 = vmatpush.msra.mxu0 %v886_v48  ;;  %v1051_v12 = vld [vmem:[#allocation7 + $0x2f0] sm:$0xff]  ;;  %v1084_v16 = vld [vmem:[#allocation7 + $0x3f8] sm:$0xff]  ;;  %v1081_v18 = vld [vmem:[#allocation7 + $0x3e0] sm:$0xff] }
  0x90   : > { %970 = vmatpush.msra.mxu1 %v918_v49  ;;  %990 = vmatpush.msra.mxu2 %v887_v50  ;;  %v1083_v13 = vld [vmem:[#allocation7 + $0x3f0] sm:$0xff]  ;;  %v1050_v19 = vld [vmem:[#allocation7 + $0x2e8] sm:$0xff]  ;;  %v1048_v26 = vld [vmem:[#allocation7 + $0x2d8] sm:$0xff] }
  0x91   : > { %1010 = vmatpush.msra.mxu3 %v919_v51  ;;  %951 = vmatpush.msra.mxu0 %v884_v52  ;;  %v4019_v20 = vld [vmem:[%s3963_s20] sm:$0xff]  ;;  %v1082_v21 = vld [vmem:[#allocation7 + $0x3e8] sm:$0xff]  ;;  %v1080_v29 = vld [vmem:[#allocation7 + $0x3d8] sm:$0xff] }
  0x92   : > { %971 = vmatpush.msra.mxu1 %v916_v53  ;;  %991 = vmatpush.msra.mxu2 %v885_v54  ;;  %v1047_v22 = vld [vmem:[#allocation7 + $0x2d0] sm:$0xff]  ;;  %v4022_v23 = vld [vmem:[%s3963_s20 + $0x8] sm:$0xff]  ;;  %v799_v24 = vrot.slane %v4019_v20, 4  ;;  %v1045_v30 = vld [vmem:[#allocation7 + $0x2c0] sm:$0xff]  ;;  %v4034_v53 = vsel %vm816_vm0, %v4015_v3, %v815_v40 }
  0x93   : > { %1011 = vmatpush.msra.mxu3 %v917_v55  ;;  %952 = vmatpush.msra.mxu0 %v882_v57  ;;  %v1079_v25 = vld [vmem:[#allocation7 + $0x3d0] sm:$0xff]  ;;  %v805_v28 = vrot.slane %v4022_v23, 4  ;;  %v1077_v32 = vld [vmem:[#allocation7 + $0x3c0] sm:$0xff]  ;;  %v1046_v33 = vld [vmem:[#allocation7 + $0x2c8] sm:$0xff] }
  0x94   : > { %972 = vmatpush.msra.mxu1 %v914_v58  ;;  %992 = vmatpush.msra.mxu2 %v883_v59  ;;  %v800_v31 = vadd.f32 %v799_v24, %v4019_v20  ;;  %v1078_v35 = vld [vmem:[#allocation7 + $0x3c8] sm:$0xff]  ;;  %v1043_v36 = vld [vmem:[#allocation7 + $0x2b0] sm:$0xff]  ;;  %v1044_v39 = vld [vmem:[#allocation7 + $0x2b8] sm:$0xff] }
  0x95   : > { %2849 = vperm.xlu0 %3354, %v2478_v46   ;;  %1012 = vmatpush.msra.mxu3 %v915_v60  ;;  %v806_v34 = vadd.f32 %v805_v28, %v4022_v23  ;;  %v1075_v38 = vld [vmem:[#allocation7 + $0x3b0] sm:$0xff]  ;;  %v1076_v42 = vld [vmem:[#allocation7 + $0x3b8] sm:$0xff]  ;;  %v1041_v43 = vld [vmem:[#allocation7 + $0x2a0] sm:$0xff] }
  0x96   : > { %953 = vmatpush.msra.mxu0 %v880_v61  ;;  %973 = vmatpush.msra.mxu1 %v912_v62  ;;  %v801_v37 = vrot.slane %v800_v31, 2  ;;  %v1073_v45 = vld [vmem:[#allocation7 + $0x3a0] sm:$0xff]  ;;  %v1042_v46 = vld [vmem:[#allocation7 + $0x2a8] sm:$0xff]  ;;  %v1039_v49 = vld [vmem:[#allocation7 + $0x290] sm:$0xff] }
  0x97   : > { %993 = vmatpush.msra.mxu2 %v881_v0  ;;  %1013 = vmatpush.msra.mxu3 %v913_v1  ;;  %v807_v41 = vrot.slane %v806_v34, 2  ;;  %v1074_v48 = vld [vmem:[#allocation7 + $0x3a8] sm:$0xff]  ;;  %v1071_v51 = vld [vmem:[#allocation7 + $0x390] sm:$0xff]  ;;  %v1040_v52 = vld [vmem:[#allocation7 + $0x298] sm:$0xff] }
  0x98   : > { %954 = vmatpush.msra.mxu0 %v878_v2  ;;  %974 = vmatpush.msra.mxu1 %v910_v4  ;;  %v802_v44 = vadd.f32 %v801_v37, %v800_v31  ;;  %v1072_v55 = vld [vmem:[#allocation7 + $0x398] sm:$0xff]  ;;  %v1037_v56 = vld [vmem:[#allocation7 + $0x280] sm:$0xff]  ;;  %v1038_v59 = vld [vmem:[#allocation7 + $0x288] sm:$0xff] }
  0x99   : > { %994 = vmatpush.msra.mxu2 %v879_v5  ;;  %1014 = vmatpush.msra.mxu3 %v911_v6  ;;  %v808_v47 = vadd.f32 %v807_v41, %v806_v34  ;;  %v1069_v58 = vld [vmem:[#allocation7 + $0x380] sm:$0xff]  ;;  %v1070_v61 = vld [vmem:[#allocation7 + $0x388] sm:$0xff]  ;;  %v1035_v62 = vld [vmem:[#allocation7 + $0x270] sm:$0xff] }
  0x9a   : > { %955 = vmatpush.msra.mxu0 %v876_v7  ;;  %975 = vmatpush.msra.mxu1 %v908_v9  ;;  %v803_v50 = vrot.slane %v802_v44, 1  ;;  %v1067_v0 = vld [vmem:[#allocation7 + $0x370] sm:$0xff]  ;;  %v1036_v1 = vld [vmem:[#allocation7 + $0x278] sm:$0xff]  ;;  %v1033_v4 = vld [vmem:[#allocation7 + $0x260] sm:$0xff] }
  0x9b   : > { %995 = vmatpush.msra.mxu2 %v877_v10  ;;  %1015 = vmatpush.msra.mxu3 %v909_v11  ;;  %v809_v54 = vrot.slane %v808_v47, 1  ;;  %v1068_v3 = vld [vmem:[#allocation7 + $0x378] sm:$0xff]  ;;  %v1065_v6 = vld [vmem:[#allocation7 + $0x360] sm:$0xff]  ;;  %v1034_v7 = vld [vmem:[#allocation7 + $0x268] sm:$0xff] }
  0x9c   : > { %1091 = vmatpush.msrb.mxu0 %v1051_v12  ;;  %1111 = vmatpush.msrb.mxu1 %v1083_v13  ;;  %v804_v57 = vadd.f32 %v803_v50, %v802_v44  ;;  %v1066_v9 = vld [vmem:[#allocation7 + $0x368] sm:$0xff]  ;;  %v1031_v10 = vld [vmem:[#allocation7 + $0x250] sm:$0xff]  ;;  %v1032_v13 = vld [vmem:[#allocation7 + $0x258] sm:$0xff] }
  0x9d   : > { %2423 = vperm.xlu0 %3354, %v798_v63   ;;  %1131 = vmatpush.msrb.mxu2 %v1052_v14  ;;  %v810_v60 = vadd.f32 %v809_v54, %v808_v47  ;;  %v1063_v12 = vld [vmem:[#allocation7 + $0x350] sm:$0xff]  ;;  %v1064_v15 = vld [vmem:[#allocation7 + $0x358] sm:$0xff]  ;;  %v1030_v34 = vld [vmem:[#allocation7 + $0x248] sm:$0xff] }
  0x9e   : > { %1151 = vmatpush.msrb.mxu3 %v1084_v16  ;;  %1092 = vmatpush.msrb.mxu0 %v1049_v17  ;;  %v818_v63 = vmul.f32 %v4034_v53, %v804_v57  ;;  %v1059_v37 = vld [vmem:[#allocation7 + $0x330] sm:$0xff]  ;;  %v1025_v40 = vld [vmem:[#allocation7 + $0x220] sm:$0xff]  ;;  %v1056_v47 = vld [vmem:[#allocation7 + $0x318] sm:$0xff] }
  0x9f   : > { %1112 = vmatpush.msrb.mxu1 %v1081_v18  ;;  %1132 = vmatpush.msrb.mxu2 %v1050_v19  ;;  %v819_v2 = vmul.f32 %v4034_v53, %v810_v60  ;;  %v1057_v41 = vld [vmem:[#allocation7 + $0x320] sm:$0xff]  ;;  %v1023_v44 = vld [vmem:[#allocation7 + $0x210] sm:$0xff]  ;;  %v1054_v54 = vld [vmem:[#allocation7 + $0x308] sm:$0xff] }
  0xa0   : > { %1152 = vmatpush.msrb.mxu3 %v1082_v21  ;;  %1093 = vmatpush.msrb.mxu0 %v1047_v22  ;;  %v4039_v5 = vsub.f32 %v4019_v20, %v818_v63  ;;  %v1021_v50 = vld [vmem:[#allocation7 + $0x200] sm:$0xff] }
  0xa1   : > { %1113 = vmatpush.msrb.mxu1 %v1079_v25  ;;  %1133 = vmatpush.msrb.mxu2 %v1048_v26  ;;  %v4042_v8 = vsub.f32 %v4022_v23, %v819_v2 }
  0xa2   : > { %1153 = vmatpush.msrb.mxu3 %v1080_v29  ;;  %1094 = vmatpush.msrb.mxu0 %v1045_v30  ;;  %v822_v11 = vmul.f32 %v4039_v5, %v4039_v5 }
  0xa3   : > { %1114 = vmatpush.msrb.mxu1 %v1077_v32  ;;  %1134 = vmatpush.msrb.mxu2 %v1046_v33  ;;  %v823_v14 = vmul.f32 %v4042_v8, %v4042_v8  ;;  %v1029_v32 = vld [vmem:[#allocation7 + $0x240] sm:$0xff] }
  0xa4   : > { %1154 = vmatpush.msrb.mxu3 %v1078_v35  ;;  %1095 = vmatpush.msrb.mxu0 %v1043_v36  ;;  %v824_v16 = vrot.slane %v822_v11, 4  ;;  %v1061_v33 = vld [vmem:[#allocation7 + $0x340] sm:$0xff]  ;;  %v1062_v35 = vld [vmem:[#allocation7 + $0x348] sm:$0xff]  ;;  %v1027_v36 = vld [vmem:[#allocation7 + $0x230] sm:$0xff] }
  0xa5   : > { %1115 = vmatpush.msrb.mxu1 %v1075_v38  ;;  %1135 = vmatpush.msrb.mxu2 %v1044_v39  ;;  %v830_v17 = vrot.slane %v823_v14, 4  ;;  %v1028_v38 = vld [vmem:[#allocation7 + $0x238] sm:$0xff] }
  0xa6   : > { %1155 = vmatpush.msrb.mxu3 %v1076_v42  ;;  %1096 = vmatpush.msrb.mxu0 %v1041_v43  ;;  %v825_v18 = vadd.f32 %v824_v16, %v822_v11  ;;  %v1060_v39 = vld [vmem:[#allocation7 + $0x338] sm:$0xff]  ;;  %v1026_v42 = vld [vmem:[#allocation7 + $0x228] sm:$0xff] }
  0xa7   : > { %1116 = vmatpush.msrb.mxu1 %v1073_v45  ;;  %1136 = vmatpush.msrb.mxu2 %v1042_v46  ;;  %v831_v19 = vadd.f32 %v830_v17, %v823_v14  ;;  %v1058_v43 = vld [vmem:[#allocation7 + $0x328] sm:$0xff]  ;;  %v1055_v45 = vld [vmem:[#allocation7 + $0x310] sm:$0xff]  ;;  %v1024_v46 = vld [vmem:[#allocation7 + $0x218] sm:$0xff] }
  0xa8   : > { %1156 = vmatpush.msrb.mxu3 %v1074_v48  ;;  %1097 = vmatpush.msrb.mxu0 %v1039_v49  ;;  %v826_v20 = vrot.slane %v825_v18, 2  ;;  %v1234_v14 = vld [vmem:[#allocation7 + $0x5f0] sm:$0xff]  ;;  %v1235_v16 = vld [vmem:[#allocation7 + $0x5f8] sm:$0xff]  ;;  %v1201_v17 = vld [vmem:[#allocation7 + $0x4e8] sm:$0xff] }
  0xa9   : > { %1117 = vmatpush.msrb.mxu1 %v1071_v51  ;;  %1137 = vmatpush.msrb.mxu2 %v1040_v52  ;;  %v832_v21 = vrot.slane %v831_v19, 2  ;;  %v1053_v51 = vld [vmem:[#allocation7 + $0x300] sm:$0xff]  ;;  %v1022_v52 = vld [vmem:[#allocation7 + $0x208] sm:$0xff] }
  0xaa   : > { %1157 = vmatpush.msrb.mxu3 %v1072_v55  ;;  %1098 = vmatpush.msrb.mxu0 %v1037_v56  ;;  %v827_v22 = vadd.f32 %v826_v20, %v825_v18  ;;  %v1233_v18 = vld [vmem:[#allocation7 + $0x5e8] sm:$0xff]  ;;  %v1230_v20 = vld [vmem:[#allocation7 + $0x5d0] sm:$0xff] }
  0xab   : > { %1118 = vmatpush.msrb.mxu1 %v1069_v58  ;;  %1138 = vmatpush.msrb.mxu2 %v1038_v59  ;;  %v833_v23 = vadd.f32 %v832_v21, %v831_v19  ;;  %v1198_v19 = vld [vmem:[#allocation7 + $0x4d0] sm:$0xff]  ;;  %v1199_v21 = vld [vmem:[#allocation7 + $0x4d8] sm:$0xff] }
  0xac   : > { %1158 = vmatpush.msrb.mxu3 %v1070_v61  ;;  %1099 = vmatpush.msrb.mxu0 %v1035_v62  ;;  %v828_v24 = vrot.slane %v827_v22, 1 }
  0xad   : > { %1119 = vmatpush.msrb.mxu1 %v1067_v0  ;;  %1139 = vmatpush.msrb.mxu2 %v1036_v1  ;;  %v834_v25 = vrot.slane %v833_v23, 1 }
  0xae   : > { %1159 = vmatpush.msrb.mxu3 %v1068_v3  ;;  %1100 = vmatpush.msrb.mxu0 %v1033_v4  ;;  %v829_v26 = vadd.f32 %v828_v24, %v827_v22  ;;  %v1231_v22 = vld [vmem:[#allocation7 + $0x5d8] sm:$0xff]  ;;  %v1228_v24 = vld [vmem:[#allocation7 + $0x5c0] sm:$0xff] }
  0xaf   : > { %1120 = vmatpush.msrb.mxu1 %v1065_v6  ;;  %1140 = vmatpush.msrb.mxu2 %v1034_v7  ;;  %v835_v27 = vadd.f32 %v834_v25, %v833_v23  ;;  %v1196_v23 = vld [vmem:[#allocation7 + $0x4c0] sm:$0xff]  ;;  %v1197_v25 = vld [vmem:[#allocation7 + $0x4c8] sm:$0xff] }
  0xb0   : > { %1160 = vmatpush.msrb.mxu3 %v1066_v9  ;;  %1101 = vmatpush.msrb.mxu0 %v1031_v10  ;;  %v836_v28 = vmul.f32 %v829_v26, %v4034_v53  ;;  %v1229_v26 = vld [vmem:[#allocation7 + $0x5c8] sm:$0xff] }
  0xb1   : > { %1121 = vmatpush.msrb.mxu1 %v1063_v12  ;;  %1141 = vmatpush.msrb.mxu2 %v1032_v13  ;;  %v837_v29 = vmul.f32 %v835_v27, %v4034_v53  ;;  %v1202_v13 = vld [vmem:[#allocation7 + $0x4f0] sm:$0xff] }
  0xb2   : > { %1161 = vmatpush.msrb.mxu3 %v1064_v15  ;;  %v838_v30 = vadd.f32 1e-05, %v836_v28  ;;  %1102 = vmatpush.msrb.mxu0 %v1029_v32  ;;  %v1203_v15 = vld [vmem:[#allocation7 + $0x4f8] sm:$0xff] }
  0xb3   : > { %v839_v31 = vadd.f32 1e-05, %v837_v29  ;;  %1122 = vmatpush.msrb.mxu1 %v1061_v33  ;;  %1142 = vmatpush.msrb.mxu2 %v1030_v34  ;;  %v1194_v29 = vld [vmem:[#allocation7 + $0x4b0] sm:$0xff]  ;;  %v1227_v32 = vld [vmem:[#allocation7 + $0x5b8] sm:$0xff]  ;;  %v1192_v33 = vld [vmem:[#allocation7 + $0x4a0] sm:$0xff] }
  0xb4   : > { %3359 = vrsqrt.f32 %v838_v30  ;;  %1162 = vmatpush.msrb.mxu3 %v1062_v35  ;;  %1103 = vmatpush.msrb.mxu0 %v1027_v36  ;;  %vm846_vm1 = vweird.f32 %v838_v30  ;;  %v1224_v34 = vld [vmem:[#allocation7 + $0x5a0] sm:$0xff]  ;;  %v1193_v35 = vld [vmem:[#allocation7 + $0x4a8] sm:$0xff] }
  0xb5   : > { %3361 = vrsqrt.f32 %v839_v31  ;;  %1123 = vmatpush.msrb.mxu1 %v1059_v37  ;;  %1143 = vmatpush.msrb.mxu2 %v1028_v38  ;;  %vm856_vm3 = vweird.f32 %v839_v31  ;;  %v1225_v36 = vld [vmem:[#allocation7 + $0x5a8] sm:$0xff]  ;;  %v1190_v37 = vld [vmem:[#allocation7 + $0x490] sm:$0xff] }
  0xb6   : > { %1163 = vmatpush.msrb.mxu3 %v1060_v39  ;;  %1104 = vmatpush.msrb.mxu0 %v1025_v40  ;;  %v1222_v38 = vld [vmem:[#allocation7 + $0x590] sm:$0xff]  ;;  %v1191_v39 = vld [vmem:[#allocation7 + $0x498] sm:$0xff] }
  0xb7   : > { %1124 = vmatpush.msrb.mxu1 %v1057_v41  ;;  %1144 = vmatpush.msrb.mxu2 %v1026_v42  ;;  %v1223_v40 = vld [vmem:[#allocation7 + $0x598] sm:$0xff]  ;;  %v1188_v41 = vld [vmem:[#allocation7 + $0x480] sm:$0xff] }
  0xb8   : > { %1164 = vmatpush.msrb.mxu3 %v1058_v43  ;;  %1105 = vmatpush.msrb.mxu0 %v1023_v44  ;;  %v1220_v42 = vld [vmem:[#allocation7 + $0x580] sm:$0xff]  ;;  %v1189_v43 = vld [vmem:[#allocation7 + $0x488] sm:$0xff] }
  0xb9   : > { %1125 = vmatpush.msrb.mxu1 %v1055_v45  ;;  %1145 = vmatpush.msrb.mxu2 %v1024_v46  ;;  %v1221_v44 = vld [vmem:[#allocation7 + $0x588] sm:$0xff]  ;;  %v1186_v45 = vld [vmem:[#allocation7 + $0x470] sm:$0xff] }
  0xba   : > { %v3360_v48 = vpop.eup %3359  ;;  %1165 = vmatpush.msrb.mxu3 %v1056_v47  ;;  %1106 = vmatpush.msrb.mxu0 %v1021_v50  ;;  %v1218_v46 = vld [vmem:[#allocation7 + $0x570] sm:$0xff]  ;;  %v1187_v47 = vld [vmem:[#allocation7 + $0x478] sm:$0xff]  ;;  %v1216_v50 = vld [vmem:[#allocation7 + $0x560] sm:$0xff] }
  0xbb   : > { %v3362_v49 = vpop.eup %3361  ;;  %1126 = vmatpush.msrb.mxu1 %v1053_v51  ;;  %1146 = vmatpush.msrb.mxu2 %v1022_v52  ;;  %v841_v55 = vmul.f32 %v3360_v48, %v838_v30  ;;  %vm847_vm2 = vweird.f32 %v3360_v48  ;;  %v1226_v30 = vld [vmem:[#allocation7 + $0x5b0] sm:$0xff]  ;;  %v1185_v51 = vld [vmem:[#allocation7 + $0x468] sm:$0xff] }
  0xbc   : > { %1166 = vmatpush.msrb.mxu3 %v1054_v54  ;;  %v851_v56 = vmul.f32 %v3362_v49, %v839_v31  ;;  %vm857_vm4 = vweird.f32 %v3362_v49  ;;  %vm848_vm5 = vmor %vm846_vm1, %vm847_vm2  ;;  %v1195_v31 = vld [vmem:[#allocation7 + $0x4b8] sm:$0xff]  ;;  %v1217_v52 = vld [vmem:[#allocation7 + $0x568] sm:$0xff] }
  0xbd   : > { %v842_v57 = vmul.f32 %v3360_v48, %v841_v55  ;;  %vm858_vm6 = vmor %vm856_vm3, %vm857_vm4  ;;  %v1182_v54 = vld [vmem:[#allocation7 + $0x450] sm:$0xff]  ;;  %vm2208_vm4 = vcmask 64512  }
  0xbe   : > { %v852_v58 = vmul.f32 %v3362_v49, %v851_v56  ;;  %v1214_v55 = vld [vmem:[#allocation7 + $0x550] sm:$0xff]  ;;  %v1183_v56 = vld [vmem:[#allocation7 + $0x458] sm:$0xff] }
  0xbf   : > { %v843_v59 = vmul.f32 0.5, %v842_v57  ;;  %v1215_v57 = vld [vmem:[#allocation7 + $0x558] sm:$0xff] }
  0xc0   : > { %v853_v60 = vmul.f32 0.5, %v852_v58  ;;  %v1180_v58 = vld [vmem:[#allocation7 + $0x440] sm:$0xff] }
  0xc1   : > { %v844_v61 = vsub.f32 1.5, %v843_v59  ;;  %v1212_v59 = vld [vmem:[#allocation7 + $0x540] sm:$0xff] }
  0xc2   : > { %v854_v62 = vsub.f32 1.5, %v853_v60  ;;  %v1181_v60 = vld [vmem:[#allocation7 + $0x448] sm:$0xff] }
  0xc3   : > { %v845_v63 = vmul.f32 %v3360_v48, %v844_v61  ;;  %v1213_v61 = vld [vmem:[#allocation7 + $0x548] sm:$0xff] }
  0xc4   : > { %v855_v0 = vmul.f32 %v3362_v49, %v854_v62  ;;  %v1178_v62 = vld [vmem:[#allocation7 + $0x430] sm:$0xff] }
  0xc5   : > { %v849_v2 = vsel %vm848_vm5, %v3360_v48, %v845_v63  ;;  %v1219_v48 = vld [vmem:[#allocation7 + $0x578] sm:$0xff]  ;;  %v1210_v63 = vld [vmem:[#allocation7 + $0x530] sm:$0xff] }
  0xc6   : > { %v859_v3 = vsel %vm858_vm6, %v3362_v49, %v855_v0  ;;  %v860_v4 = vmul.f32 %v849_v2, %v4039_v5  ;;  %v1200_v5 = vld [vmem:[#allocation7 + $0x4e0] sm:$0xff]  ;;  %v1179_v0 = vld [vmem:[#allocation7 + $0x438] sm:$0xff] }
  0xc7   : > { %v861_v6 = vmul.f32 %v859_v3, %v4042_v8  ;;  %v1232_v8 = vld [vmem:[#allocation7 + $0x5e0] sm:$0xff] }
  0xc8   : > { %v1184_v49 = vld [vmem:[#allocation7 + $0x460] sm:$0xff] }
  0xc9   : > { %v1176_v2 = vld [vmem:[#allocation7 + $0x420] sm:$0xff] }
  0xca   : > { %v1208_v3 = vld [vmem:[#allocation7 + $0x520] sm:$0xff] }
  0xef   : > { %v865_v1 = vpop.permute.xlu0 %864 }
  0xf0   : > { %v867_v7 = vmul.f32 %v865_v1, %v860_v4  ;;  %v868_v9 = vmul.f32 %v865_v1, %v861_v6  ;;  %v1211_v1 = vld [vmem:[#allocation7 + $0x538] sm:$0xff]  ;;  %v1177_v4 = vld [vmem:[#allocation7 + $0x428] sm:$0xff] }
  0xf1   : > { %v1209_v6 = vld [vmem:[#allocation7 + $0x528] sm:$0xff] }
  0xf7   : > { %v872_v10 = vpop.permute.xlu0 %871 }
  0xf8   : > { %v4052_v11 = vadd.f32 %v872_v10, %v867_v7  ;;  %v4054_v12 = vadd.f32 %v872_v10, %v868_v9  ;;  %v1174_v7 = vld [vmem:[#allocation7 + $0x410] sm:$0xff]  ;;  %v1175_v10 = vld [vmem:[#allocation7 + $0x418] sm:$0xff] }
  0xf9   : > { %v1206_v9 = vld [vmem:[#allocation7 + $0x510] sm:$0xff] }
  0xfa   : > { %956 = vmatmul.f32.vlgmr.msra.gmra.mxu0 %v4052_v11  ;;  %976 = vmatmul.f32.vlgmr.msra.gmra.mxu1 %v4054_v12  ;;  %v1087_v27 = vrot.slane %v4052_v11, 1  ;;  %v1088_v28 = vrot.slane %v4054_v12, 1 }
  0xfb   : > { %996 = vmatmul.f32.vlgmr.msra.gmra.mxu2 %v4052_v11  ;;  %1016 = vmatmul.f32.vlgmr.msra.gmra.mxu3 %v4054_v12 }
  0xfc   : > { %1240 = vmatpush.msra.mxu0 %v1202_v13  ;;  %1260 = vmatpush.msra.mxu1 %v1234_v14  ;;  %v1207_v13 = vld [vmem:[#allocation7 + $0x518] sm:$0xff]  ;;  %v1172_v14 = vld [vmem:[#allocation7 + $0x400] sm:$0xff] }
  0xfd   : > { %1280 = vmatpush.msra.mxu2 %v1203_v15  ;;  %1300 = vmatpush.msra.mxu3 %v1235_v16  ;;  %v1204_v15 = vld [vmem:[#allocation7 + $0x500] sm:$0xff]  ;;  %v1173_v16 = vld [vmem:[#allocation7 + $0x408] sm:$0xff] }
  0xfe   : > { %1241 = vmatpush.msra.mxu0 %v1200_v5  ;;  %1261 = vmatpush.msra.mxu1 %v1232_v8  ;;  %v1205_v5 = vld [vmem:[#allocation7 + $0x508] sm:$0xff]  ;;  %v1236_v8 = vrot.slane %v4052_v11, 2 }
  0xff   : > { %1281 = vmatpush.msra.mxu2 %v1201_v17  ;;  %1301 = vmatpush.msra.mxu3 %v1233_v18  ;;  %v1237_v17 = vrot.slane %v4054_v12, 2  ;;  %v1351_v18 = vld [vmem:[#allocation7 + $0x6f0] sm:$0xff] }
 0x100   : > { %1242 = vmatpush.msra.mxu0 %v1198_v19  ;;  %1262 = vmatpush.msra.mxu1 %v1230_v20  ;;  %v1383_v19 = vld [vmem:[#allocation7 + $0x7f0] sm:$0xff]  ;;  %v1352_v20 = vld [vmem:[#allocation7 + $0x6f8] sm:$0xff] }
 0x101   : > { %1282 = vmatpush.msra.mxu2 %v1199_v21  ;;  %1302 = vmatpush.msra.mxu3 %v1231_v22  ;;  %v1384_v21 = vld [vmem:[#allocation7 + $0x7f8] sm:$0xff]  ;;  %v1349_v22 = vld [vmem:[#allocation7 + $0x6e0] sm:$0xff] }
 0x102   : > { %1243 = vmatpush.msra.mxu0 %v1196_v23  ;;  %1263 = vmatpush.msra.mxu1 %v1228_v24  ;;  %v1381_v23 = vld [vmem:[#allocation7 + $0x7e0] sm:$0xff]  ;;  %v1350_v24 = vld [vmem:[#allocation7 + $0x6e8] sm:$0xff] }
 0x103   : > { %1283 = vmatpush.msra.mxu2 %v1197_v25  ;;  %1303 = vmatpush.msra.mxu3 %v1229_v26  ;;  %v1382_v25 = vld [vmem:[#allocation7 + $0x7e8] sm:$0xff]  ;;  %v1347_v26 = vld [vmem:[#allocation7 + $0x6d0] sm:$0xff] }
 0x104   : > { %1107 = vmatmul.f32.vlgmr.msrb.gmra.mxu0 %v1087_v27  ;;  %1127 = vmatmul.f32.vlgmr.msrb.gmra.mxu1 %v1088_v28 }
 0x105   : > { %1147 = vmatmul.f32.vlgmr.msrb.gmra.mxu2 %v1087_v27  ;;  %1167 = vmatmul.f32.vlgmr.msrb.gmra.mxu3 %v1088_v28  ;;  %v1379_v27 = vld [vmem:[#allocation7 + $0x7d0] sm:$0xff]  ;;  %v1348_v28 = vld [vmem:[#allocation7 + $0x6d8] sm:$0xff] }
 0x106   : > { %1244 = vmatpush.msra.mxu0 %v1194_v29  ;;  %1264 = vmatpush.msra.mxu1 %v1226_v30  ;;  %v1380_v29 = vld [vmem:[#allocation7 + $0x7d8] sm:$0xff]  ;;  %v1345_v30 = vld [vmem:[#allocation7 + $0x6c0] sm:$0xff] }
 0x107   : > { %1284 = vmatpush.msra.mxu2 %v1195_v31  ;;  %1304 = vmatpush.msra.mxu3 %v1227_v32  ;;  %v1377_v31 = vld [vmem:[#allocation7 + $0x7c0] sm:$0xff]  ;;  %v1346_v32 = vld [vmem:[#allocation7 + $0x6c8] sm:$0xff] }
 0x108   : > { %1245 = vmatpush.msra.mxu0 %v1192_v33  ;;  %1265 = vmatpush.msra.mxu1 %v1224_v34  ;;  %v1378_v33 = vld [vmem:[#allocation7 + $0x7c8] sm:$0xff]  ;;  %v1343_v34 = vld [vmem:[#allocation7 + $0x6b0] sm:$0xff] }
 0x109   : > { %1285 = vmatpush.msra.mxu2 %v1193_v35  ;;  %1305 = vmatpush.msra.mxu3 %v1225_v36  ;;  %v1375_v35 = vld [vmem:[#allocation7 + $0x7b0] sm:$0xff]  ;;  %v1344_v36 = vld [vmem:[#allocation7 + $0x6b8] sm:$0xff] }
 0x10a   : > { %1246 = vmatpush.msra.mxu0 %v1190_v37  ;;  %1266 = vmatpush.msra.mxu1 %v1222_v38  ;;  %v1376_v37 = vld [vmem:[#allocation7 + $0x7b8] sm:$0xff]  ;;  %v1341_v38 = vld [vmem:[#allocation7 + $0x6a0] sm:$0xff] }
 0x10b   : > { %1286 = vmatpush.msra.mxu2 %v1191_v39  ;;  %1306 = vmatpush.msra.mxu3 %v1223_v40  ;;  %v1373_v39 = vld [vmem:[#allocation7 + $0x7a0] sm:$0xff]  ;;  %v1342_v40 = vld [vmem:[#allocation7 + $0x6a8] sm:$0xff] }
 0x10c   : > { %1247 = vmatpush.msra.mxu0 %v1188_v41  ;;  %1267 = vmatpush.msra.mxu1 %v1220_v42  ;;  %v1374_v41 = vld [vmem:[#allocation7 + $0x7a8] sm:$0xff]  ;;  %v1339_v42 = vld [vmem:[#allocation7 + $0x690] sm:$0xff] }
 0x10d   : > { %1287 = vmatpush.msra.mxu2 %v1189_v43  ;;  %1307 = vmatpush.msra.mxu3 %v1221_v44  ;;  %v1371_v43 = vld [vmem:[#allocation7 + $0x790] sm:$0xff]  ;;  %v1340_v44 = vld [vmem:[#allocation7 + $0x698] sm:$0xff] }
 0x10e   : > { %1248 = vmatpush.msra.mxu0 %v1186_v45  ;;  %1268 = vmatpush.msra.mxu1 %v1218_v46  ;;  %v1372_v45 = vld [vmem:[#allocation7 + $0x798] sm:$0xff]  ;;  %v1337_v46 = vld [vmem:[#allocation7 + $0x680] sm:$0xff] }
 0x10f   : > { %1288 = vmatpush.msra.mxu2 %v1187_v47  ;;  %1308 = vmatpush.msra.mxu3 %v1219_v48  ;;  %v1369_v47 = vld [vmem:[#allocation7 + $0x780] sm:$0xff]  ;;  %v1338_v48 = vld [vmem:[#allocation7 + $0x688] sm:$0xff] }
 0x110   : > { %1249 = vmatpush.msra.mxu0 %v1184_v49  ;;  %1269 = vmatpush.msra.mxu1 %v1216_v50  ;;  %v1370_v49 = vld [vmem:[#allocation7 + $0x788] sm:$0xff]  ;;  %v1335_v50 = vld [vmem:[#allocation7 + $0x670] sm:$0xff] }
 0x111   : > { %1289 = vmatpush.msra.mxu2 %v1185_v51  ;;  %1309 = vmatpush.msra.mxu3 %v1217_v52  ;;  %v1367_v51 = vld [vmem:[#allocation7 + $0x770] sm:$0xff]  ;;  %v1336_v52 = vld [vmem:[#allocation7 + $0x678] sm:$0xff] }
 0x112   : > { %1250 = vmatpush.msra.mxu0 %v1182_v54  ;;  %1270 = vmatpush.msra.mxu1 %v1214_v55  ;;  %v1368_v54 = vld [vmem:[#allocation7 + $0x778] sm:$0xff]  ;;  %v1333_v55 = vld [vmem:[#allocation7 + $0x660] sm:$0xff] }
 0x113   : > { %1290 = vmatpush.msra.mxu2 %v1183_v56  ;;  %1310 = vmatpush.msra.mxu3 %v1215_v57  ;;  %v1365_v56 = vld [vmem:[#allocation7 + $0x760] sm:$0xff]  ;;  %v1334_v57 = vld [vmem:[#allocation7 + $0x668] sm:$0xff] }
 0x114   : > { %1251 = vmatpush.msra.mxu0 %v1180_v58  ;;  %1271 = vmatpush.msra.mxu1 %v1212_v59  ;;  %v1366_v58 = vld [vmem:[#allocation7 + $0x768] sm:$0xff]  ;;  %v1331_v59 = vld [vmem:[#allocation7 + $0x650] sm:$0xff] }
 0x115   : > { %1291 = vmatpush.msra.mxu2 %v1181_v60  ;;  %1311 = vmatpush.msra.mxu3 %v1213_v61  ;;  %v1363_v60 = vld [vmem:[#allocation7 + $0x750] sm:$0xff]  ;;  %v1332_v61 = vld [vmem:[#allocation7 + $0x658] sm:$0xff] }
 0x116   : > { %1252 = vmatpush.msra.mxu0 %v1178_v62  ;;  %1272 = vmatpush.msra.mxu1 %v1210_v63  ;;  %v1364_v62 = vld [vmem:[#allocation7 + $0x758] sm:$0xff]  ;;  %v1329_v63 = vld [vmem:[#allocation7 + $0x640] sm:$0xff] }
 0x117   : > { %1292 = vmatpush.msra.mxu2 %v1179_v0  ;;  %1312 = vmatpush.msra.mxu3 %v1211_v1  ;;  %v1361_v0 = vld [vmem:[#allocation7 + $0x740] sm:$0xff]  ;;  %v1330_v1 = vld [vmem:[#allocation7 + $0x648] sm:$0xff] }
 0x118   : > { %1253 = vmatpush.msra.mxu0 %v1176_v2  ;;  %1273 = vmatpush.msra.mxu1 %v1208_v3  ;;  %v1362_v2 = vld [vmem:[#allocation7 + $0x748] sm:$0xff]  ;;  %v1327_v3 = vld [vmem:[#allocation7 + $0x630] sm:$0xff] }
 0x119   : > { %1293 = vmatpush.msra.mxu2 %v1177_v4  ;;  %1313 = vmatpush.msra.mxu3 %v1209_v6  ;;  %v1359_v4 = vld [vmem:[#allocation7 + $0x730] sm:$0xff]  ;;  %v1328_v6 = vld [vmem:[#allocation7 + $0x638] sm:$0xff] }
 0x11a   : > { %1254 = vmatpush.msra.mxu0 %v1174_v7  ;;  %1274 = vmatpush.msra.mxu1 %v1206_v9  ;;  %v1360_v7 = vld [vmem:[#allocation7 + $0x738] sm:$0xff]  ;;  %v1325_v9 = vld [vmem:[#allocation7 + $0x620] sm:$0xff] }
 0x11b   : > { %1294 = vmatpush.msra.mxu2 %v1175_v10  ;;  %1314 = vmatpush.msra.mxu3 %v1207_v13  ;;  %v1357_v10 = vld [vmem:[#allocation7 + $0x720] sm:$0xff]  ;;  %v1326_v13 = vld [vmem:[#allocation7 + $0x628] sm:$0xff] }
 0x11c   : > { %1255 = vmatpush.msra.mxu0 %v1172_v14  ;;  %1275 = vmatpush.msra.mxu1 %v1204_v15  ;;  %v1358_v14 = vld [vmem:[#allocation7 + $0x728] sm:$0xff]  ;;  %v1323_v15 = vld [vmem:[#allocation7 + $0x610] sm:$0xff] }
 0x11d   : > { %1295 = vmatpush.msra.mxu2 %v1173_v16  ;;  %1315 = vmatpush.msra.mxu3 %v1205_v5  ;;  %v1355_v16 = vld [vmem:[#allocation7 + $0x710] sm:$0xff]  ;;  %v1324_v5 = vld [vmem:[#allocation7 + $0x618] sm:$0xff] }
 0x11e   : > { %1256 = vmatmul.f32.vlgmr.msra.gmra.mxu0 %v1236_v8  ;;  %1276 = vmatmul.f32.vlgmr.msra.gmra.mxu1 %v1237_v17 }
 0x11f   : > { %1296 = vmatmul.f32.vlgmr.msra.gmra.mxu2 %v1236_v8  ;;  %1316 = vmatmul.f32.vlgmr.msra.gmra.mxu3 %v1237_v17  ;;  %v1356_v8 = vld [vmem:[#allocation7 + $0x718] sm:$0xff]  ;;  %v1321_v17 = vld [vmem:[#allocation7 + $0x600] sm:$0xff] }
 0x120   : > { %1389 = vmatpush.msrb.mxu0 %v1351_v18  ;;  %1409 = vmatpush.msrb.mxu1 %v1383_v19  ;;  %v1353_v18 = vld [vmem:[#allocation7 + $0x700] sm:$0xff]  ;;  %v1322_v19 = vld [vmem:[#allocation7 + $0x608] sm:$0xff] }
 0x121   : > { %1429 = vmatpush.msrb.mxu2 %v1352_v20  ;;  %1449 = vmatpush.msrb.mxu3 %v1384_v21  ;;  %v1354_v20 = vld [vmem:[#allocation7 + $0x708] sm:$0xff]  ;;  %v1385_v21 = vrot.slane %v4052_v11, 3 }
 0x122   : > { %1390 = vmatpush.msrb.mxu0 %v1349_v22  ;;  %1410 = vmatpush.msrb.mxu1 %v1381_v23  ;;  %v1386_v22 = vrot.slane %v4054_v12, 3  ;;  %v1500_v23 = vld [vmem:[#allocation7 + $0x8f0] sm:$0xff] }
 0x123   : > { %1430 = vmatpush.msrb.mxu2 %v1350_v24  ;;  %1450 = vmatpush.msrb.mxu3 %v1382_v25  ;;  %v1532_v24 = vld [vmem:[#allocation7 + $0x9f0] sm:$0xff]  ;;  %v1501_v25 = vld [vmem:[#allocation7 + $0x8f8] sm:$0xff] }
 0x124   : > { %1391 = vmatpush.msrb.mxu0 %v1347_v26  ;;  %1411 = vmatpush.msrb.mxu1 %v1379_v27  ;;  %v1533_v26 = vld [vmem:[#allocation7 + $0x9f8] sm:$0xff]  ;;  %v1498_v27 = vld [vmem:[#allocation7 + $0x8e0] sm:$0xff] }
 0x125   : > { %1431 = vmatpush.msrb.mxu2 %v1348_v28  ;;  %1451 = vmatpush.msrb.mxu3 %v1380_v29  ;;  %v1530_v28 = vld [vmem:[#allocation7 + $0x9e0] sm:$0xff]  ;;  %v1499_v29 = vld [vmem:[#allocation7 + $0x8e8] sm:$0xff] }
 0x126   : > { %1392 = vmatpush.msrb.mxu0 %v1345_v30  ;;  %1412 = vmatpush.msrb.mxu1 %v1377_v31  ;;  %v1531_v30 = vld [vmem:[#allocation7 + $0x9e8] sm:$0xff]  ;;  %v1496_v31 = vld [vmem:[#allocation7 + $0x8d0] sm:$0xff] }
 0x127   : > { %1432 = vmatpush.msrb.mxu2 %v1346_v32  ;;  %1452 = vmatpush.msrb.mxu3 %v1378_v33  ;;  %v1528_v32 = vld [vmem:[#allocation7 + $0x9d0] sm:$0xff]  ;;  %v1497_v33 = vld [vmem:[#allocation7 + $0x8d8] sm:$0xff] }
 0x128   : > { %1393 = vmatpush.msrb.mxu0 %v1343_v34  ;;  %1413 = vmatpush.msrb.mxu1 %v1375_v35  ;;  %v1529_v34 = vld [vmem:[#allocation7 + $0x9d8] sm:$0xff]  ;;  %v1494_v35 = vld [vmem:[#allocation7 + $0x8c0] sm:$0xff] }
 0x129   : > { %1433 = vmatpush.msrb.mxu2 %v1344_v36  ;;  %1453 = vmatpush.msrb.mxu3 %v1376_v37  ;;  %v1526_v36 = vld [vmem:[#allocation7 + $0x9c0] sm:$0xff]  ;;  %v1495_v37 = vld [vmem:[#allocation7 + $0x8c8] sm:$0xff] }
 0x12a   : > { %1394 = vmatpush.msrb.mxu0 %v1341_v38  ;;  %1414 = vmatpush.msrb.mxu1 %v1373_v39  ;;  %v1527_v38 = vld [vmem:[#allocation7 + $0x9c8] sm:$0xff]  ;;  %v1492_v39 = vld [vmem:[#allocation7 + $0x8b0] sm:$0xff] }
 0x12b   : > { %1434 = vmatpush.msrb.mxu2 %v1342_v40  ;;  %1454 = vmatpush.msrb.mxu3 %v1374_v41  ;;  %v1524_v40 = vld [vmem:[#allocation7 + $0x9b0] sm:$0xff]  ;;  %v1493_v41 = vld [vmem:[#allocation7 + $0x8b8] sm:$0xff] }
 0x12c   : > { %1395 = vmatpush.msrb.mxu0 %v1339_v42  ;;  %1415 = vmatpush.msrb.mxu1 %v1371_v43  ;;  %v1525_v42 = vld [vmem:[#allocation7 + $0x9b8] sm:$0xff]  ;;  %v1490_v43 = vld [vmem:[#allocation7 + $0x8a0] sm:$0xff] }
 0x12d   : > { %1435 = vmatpush.msrb.mxu2 %v1340_v44  ;;  %1455 = vmatpush.msrb.mxu3 %v1372_v45  ;;  %v1522_v44 = vld [vmem:[#allocation7 + $0x9a0] sm:$0xff]  ;;  %v1491_v45 = vld [vmem:[#allocation7 + $0x8a8] sm:$0xff] }
 0x12e   : > { %1396 = vmatpush.msrb.mxu0 %v1337_v46  ;;  %1416 = vmatpush.msrb.mxu1 %v1369_v47  ;;  %v1523_v46 = vld [vmem:[#allocation7 + $0x9a8] sm:$0xff]  ;;  %v1488_v47 = vld [vmem:[#allocation7 + $0x890] sm:$0xff] }
 0x12f   : > { %1436 = vmatpush.msrb.mxu2 %v1338_v48  ;;  %1456 = vmatpush.msrb.mxu3 %v1370_v49  ;;  %v1520_v48 = vld [vmem:[#allocation7 + $0x990] sm:$0xff]  ;;  %v1489_v49 = vld [vmem:[#allocation7 + $0x898] sm:$0xff] }
 0x130   : > { %1397 = vmatpush.msrb.mxu0 %v1335_v50  ;;  %1417 = vmatpush.msrb.mxu1 %v1367_v51  ;;  %v1521_v50 = vld [vmem:[#allocation7 + $0x998] sm:$0xff]  ;;  %v1486_v51 = vld [vmem:[#allocation7 + $0x880] sm:$0xff] }
 0x131   : > { %1437 = vmatpush.msrb.mxu2 %v1336_v52  ;;  %1457 = vmatpush.msrb.mxu3 %v1368_v54  ;;  %v1518_v52 = vld [vmem:[#allocation7 + $0x980] sm:$0xff]  ;;  %v1487_v54 = vld [vmem:[#allocation7 + $0x888] sm:$0xff] }
 0x132   : > { %1398 = vmatpush.msrb.mxu0 %v1333_v55  ;;  %1418 = vmatpush.msrb.mxu1 %v1365_v56  ;;  %v1519_v55 = vld [vmem:[#allocation7 + $0x988] sm:$0xff]  ;;  %v1484_v56 = vld [vmem:[#allocation7 + $0x870] sm:$0xff] }
 0x133   : > { %1438 = vmatpush.msrb.mxu2 %v1334_v57  ;;  %1458 = vmatpush.msrb.mxu3 %v1366_v58  ;;  %v1516_v57 = vld [vmem:[#allocation7 + $0x970] sm:$0xff]  ;;  %v1485_v58 = vld [vmem:[#allocation7 + $0x878] sm:$0xff] }
 0x134   : > { %1399 = vmatpush.msrb.mxu0 %v1331_v59  ;;  %1419 = vmatpush.msrb.mxu1 %v1363_v60  ;;  %v1517_v59 = vld [vmem:[#allocation7 + $0x978] sm:$0xff]  ;;  %v1482_v60 = vld [vmem:[#allocation7 + $0x860] sm:$0xff] }
 0x135   : > { %1439 = vmatpush.msrb.mxu2 %v1332_v61  ;;  %1459 = vmatpush.msrb.mxu3 %v1364_v62  ;;  %v1514_v61 = vld [vmem:[#allocation7 + $0x960] sm:$0xff]  ;;  %v1483_v62 = vld [vmem:[#allocation7 + $0x868] sm:$0xff] }
 0x136   : > { %1400 = vmatpush.msrb.mxu0 %v1329_v63  ;;  %1420 = vmatpush.msrb.mxu1 %v1361_v0  ;;  %v1515_v63 = vld [vmem:[#allocation7 + $0x968] sm:$0xff]  ;;  %v1480_v0 = vld [vmem:[#allocation7 + $0x850] sm:$0xff] }
 0x137   : > { %1440 = vmatpush.msrb.mxu2 %v1330_v1  ;;  %1460 = vmatpush.msrb.mxu3 %v1362_v2  ;;  %v1512_v1 = vld [vmem:[#allocation7 + $0x950] sm:$0xff]  ;;  %v1481_v2 = vld [vmem:[#allocation7 + $0x858] sm:$0xff] }
 0x138   : > { %1401 = vmatpush.msrb.mxu0 %v1327_v3  ;;  %1421 = vmatpush.msrb.mxu1 %v1359_v4  ;;  %v1513_v3 = vld [vmem:[#allocation7 + $0x958] sm:$0xff]  ;;  %v1478_v4 = vld [vmem:[#allocation7 + $0x840] sm:$0xff] }
 0x139   : > { %1441 = vmatpush.msrb.mxu2 %v1328_v6  ;;  %1461 = vmatpush.msrb.mxu3 %v1360_v7  ;;  %v1510_v6 = vld [vmem:[#allocation7 + $0x940] sm:$0xff]  ;;  %v1479_v7 = vld [vmem:[#allocation7 + $0x848] sm:$0xff] }
 0x13a   : > { %1402 = vmatpush.msrb.mxu0 %v1325_v9  ;;  %1422 = vmatpush.msrb.mxu1 %v1357_v10  ;;  %v1511_v9 = vld [vmem:[#allocation7 + $0x948] sm:$0xff]  ;;  %v1476_v10 = vld [vmem:[#allocation7 + $0x830] sm:$0xff] }
 0x13b   : > { %1442 = vmatpush.msrb.mxu2 %v1326_v13  ;;  %1462 = vmatpush.msrb.mxu3 %v1358_v14  ;;  %v1508_v13 = vld [vmem:[#allocation7 + $0x930] sm:$0xff]  ;;  %v1477_v14 = vld [vmem:[#allocation7 + $0x838] sm:$0xff] }
 0x13c   : > { %1403 = vmatpush.msrb.mxu0 %v1323_v15  ;;  %1423 = vmatpush.msrb.mxu1 %v1355_v16  ;;  %v1509_v15 = vld [vmem:[#allocation7 + $0x938] sm:$0xff]  ;;  %v1474_v16 = vld [vmem:[#allocation7 + $0x820] sm:$0xff] }
 0x13d   : > { %1443 = vmatpush.msrb.mxu2 %v1324_v5  ;;  %1463 = vmatpush.msrb.mxu3 %v1356_v8  ;;  %v1506_v5 = vld [vmem:[#allocation7 + $0x920] sm:$0xff]  ;;  %v1475_v8 = vld [vmem:[#allocation7 + $0x828] sm:$0xff] }
 0x13e   : > { %1404 = vmatpush.msrb.mxu0 %v1321_v17  ;;  %1424 = vmatpush.msrb.mxu1 %v1353_v18  ;;  %v1507_v17 = vld [vmem:[#allocation7 + $0x928] sm:$0xff]  ;;  %v1472_v18 = vld [vmem:[#allocation7 + $0x810] sm:$0xff] }
 0x13f   : > { %1444 = vmatpush.msrb.mxu2 %v1322_v19  ;;  %1464 = vmatpush.msrb.mxu3 %v1354_v20  ;;  %v1504_v19 = vld [vmem:[#allocation7 + $0x910] sm:$0xff]  ;;  %v1473_v20 = vld [vmem:[#allocation7 + $0x818] sm:$0xff] }
 0x140   : > { %1405 = vmatmul.f32.vlgmr.msrb.gmra.mxu0 %v1385_v21  ;;  %1425 = vmatmul.f32.vlgmr.msrb.gmra.mxu1 %v1386_v22 }
 0x141   : > { %1445 = vmatmul.f32.vlgmr.msrb.gmra.mxu2 %v1385_v21  ;;  %1465 = vmatmul.f32.vlgmr.msrb.gmra.mxu3 %v1386_v22  ;;  %v1505_v21 = vld [vmem:[#allocation7 + $0x918] sm:$0xff]  ;;  %v1470_v22 = vld [vmem:[#allocation7 + $0x800] sm:$0xff] }
 0x142   : > { %1538 = vmatpush.msra.mxu0 %v1500_v23  ;;  %1558 = vmatpush.msra.mxu1 %v1532_v24  ;;  %v1502_v23 = vld [vmem:[#allocation7 + $0x900] sm:$0xff]  ;;  %v1471_v24 = vld [vmem:[#allocation7 + $0x808] sm:$0xff] }
 0x143   : > { %1578 = vmatpush.msra.mxu2 %v1501_v25  ;;  %1598 = vmatpush.msra.mxu3 %v1533_v26  ;;  %v1503_v25 = vld [vmem:[#allocation7 + $0x908] sm:$0xff]  ;;  %v1534_v26 = vrot.slane %v4052_v11, 4 }
 0x144   : > { %1539 = vmatpush.msra.mxu0 %v1498_v27  ;;  %1559 = vmatpush.msra.mxu1 %v1530_v28  ;;  %v1535_v27 = vrot.slane %v4054_v12, 4  ;;  %v1649_v28 = vld [vmem:[#allocation7 + $0xaf0] sm:$0xff] }
 0x145   : > { %1579 = vmatpush.msra.mxu2 %v1499_v29  ;;  %1599 = vmatpush.msra.mxu3 %v1531_v30  ;;  %v1681_v29 = vld [vmem:[#allocation7 + $0xbf0] sm:$0xff]  ;;  %v1650_v30 = vld [vmem:[#allocation7 + $0xaf8] sm:$0xff] }
 0x146   : > { %1540 = vmatpush.msra.mxu0 %v1496_v31  ;;  %1560 = vmatpush.msra.mxu1 %v1528_v32  ;;  %v1682_v31 = vld [vmem:[#allocation7 + $0xbf8] sm:$0xff]  ;;  %v1647_v32 = vld [vmem:[#allocation7 + $0xae0] sm:$0xff] }
 0x147   : > { %1580 = vmatpush.msra.mxu2 %v1497_v33  ;;  %1600 = vmatpush.msra.mxu3 %v1529_v34  ;;  %v1679_v33 = vld [vmem:[#allocation7 + $0xbe0] sm:$0xff]  ;;  %v1648_v34 = vld [vmem:[#allocation7 + $0xae8] sm:$0xff] }
 0x148   : > { %1541 = vmatpush.msra.mxu0 %v1494_v35  ;;  %1561 = vmatpush.msra.mxu1 %v1526_v36  ;;  %v1680_v35 = vld [vmem:[#allocation7 + $0xbe8] sm:$0xff]  ;;  %v1645_v36 = vld [vmem:[#allocation7 + $0xad0] sm:$0xff] }
 0x149   : > { %1581 = vmatpush.msra.mxu2 %v1495_v37  ;;  %1601 = vmatpush.msra.mxu3 %v1527_v38  ;;  %v1677_v37 = vld [vmem:[#allocation7 + $0xbd0] sm:$0xff]  ;;  %v1646_v38 = vld [vmem:[#allocation7 + $0xad8] sm:$0xff] }
 0x14a   : > { %1542 = vmatpush.msra.mxu0 %v1492_v39  ;;  %1562 = vmatpush.msra.mxu1 %v1524_v40  ;;  %v1678_v39 = vld [vmem:[#allocation7 + $0xbd8] sm:$0xff]  ;;  %v1643_v40 = vld [vmem:[#allocation7 + $0xac0] sm:$0xff] }
 0x14b   : > { %1582 = vmatpush.msra.mxu2 %v1493_v41  ;;  %1602 = vmatpush.msra.mxu3 %v1525_v42  ;;  %v1675_v41 = vld [vmem:[#allocation7 + $0xbc0] sm:$0xff]  ;;  %v1644_v42 = vld [vmem:[#allocation7 + $0xac8] sm:$0xff] }
 0x14c   : > { %1543 = vmatpush.msra.mxu0 %v1490_v43  ;;  %1563 = vmatpush.msra.mxu1 %v1522_v44  ;;  %v1676_v43 = vld [vmem:[#allocation7 + $0xbc8] sm:$0xff]  ;;  %v1641_v44 = vld [vmem:[#allocation7 + $0xab0] sm:$0xff] }
 0x14d   : > { %1583 = vmatpush.msra.mxu2 %v1491_v45  ;;  %1603 = vmatpush.msra.mxu3 %v1523_v46  ;;  %v1673_v45 = vld [vmem:[#allocation7 + $0xbb0] sm:$0xff]  ;;  %v1642_v46 = vld [vmem:[#allocation7 + $0xab8] sm:$0xff] }
 0x14e   : > { %1544 = vmatpush.msra.mxu0 %v1488_v47  ;;  %1564 = vmatpush.msra.mxu1 %v1520_v48  ;;  %v1674_v47 = vld [vmem:[#allocation7 + $0xbb8] sm:$0xff]  ;;  %v1639_v48 = vld [vmem:[#allocation7 + $0xaa0] sm:$0xff] }
 0x14f   : > { %1584 = vmatpush.msra.mxu2 %v1489_v49  ;;  %1604 = vmatpush.msra.mxu3 %v1521_v50  ;;  %v1671_v49 = vld [vmem:[#allocation7 + $0xba0] sm:$0xff]  ;;  %v1640_v50 = vld [vmem:[#allocation7 + $0xaa8] sm:$0xff] }
 0x150   : > { %1545 = vmatpush.msra.mxu0 %v1486_v51  ;;  %1565 = vmatpush.msra.mxu1 %v1518_v52  ;;  %v1672_v51 = vld [vmem:[#allocation7 + $0xba8] sm:$0xff]  ;;  %v1637_v52 = vld [vmem:[#allocation7 + $0xa90] sm:$0xff] }
 0x151   : > { %1585 = vmatpush.msra.mxu2 %v1487_v54  ;;  %1605 = vmatpush.msra.mxu3 %v1519_v55  ;;  %v1669_v54 = vld [vmem:[#allocation7 + $0xb90] sm:$0xff]  ;;  %v1638_v55 = vld [vmem:[#allocation7 + $0xa98] sm:$0xff] }
 0x152   : > { %1546 = vmatpush.msra.mxu0 %v1484_v56  ;;  %1566 = vmatpush.msra.mxu1 %v1516_v57  ;;  %v1670_v56 = vld [vmem:[#allocation7 + $0xb98] sm:$0xff]  ;;  %v1635_v57 = vld [vmem:[#allocation7 + $0xa80] sm:$0xff] }
 0x153   : > { %1586 = vmatpush.msra.mxu2 %v1485_v58  ;;  %1606 = vmatpush.msra.mxu3 %v1517_v59  ;;  %v1667_v58 = vld [vmem:[#allocation7 + $0xb80] sm:$0xff]  ;;  %v1636_v59 = vld [vmem:[#allocation7 + $0xa88] sm:$0xff] }
 0x154   : > { %1547 = vmatpush.msra.mxu0 %v1482_v60  ;;  %1567 = vmatpush.msra.mxu1 %v1514_v61  ;;  %v1668_v60 = vld [vmem:[#allocation7 + $0xb88] sm:$0xff]  ;;  %v1633_v61 = vld [vmem:[#allocation7 + $0xa70] sm:$0xff] }
 0x155   : > { %1587 = vmatpush.msra.mxu2 %v1483_v62  ;;  %1607 = vmatpush.msra.mxu3 %v1515_v63  ;;  %v1665_v62 = vld [vmem:[#allocation7 + $0xb70] sm:$0xff]  ;;  %v1634_v63 = vld [vmem:[#allocation7 + $0xa78] sm:$0xff] }
 0x156   : > { %1548 = vmatpush.msra.mxu0 %v1480_v0  ;;  %1568 = vmatpush.msra.mxu1 %v1512_v1  ;;  %v1666_v0 = vld [vmem:[#allocation7 + $0xb78] sm:$0xff]  ;;  %v1631_v1 = vld [vmem:[#allocation7 + $0xa60] sm:$0xff] }
 0x157   : > { %1588 = vmatpush.msra.mxu2 %v1481_v2  ;;  %1608 = vmatpush.msra.mxu3 %v1513_v3  ;;  %v1663_v2 = vld [vmem:[#allocation7 + $0xb60] sm:$0xff]  ;;  %v1632_v3 = vld [vmem:[#allocation7 + $0xa68] sm:$0xff] }
 0x158   : > { %1549 = vmatpush.msra.mxu0 %v1478_v4  ;;  %1569 = vmatpush.msra.mxu1 %v1510_v6  ;;  %v1664_v4 = vld [vmem:[#allocation7 + $0xb68] sm:$0xff]  ;;  %v1629_v6 = vld [vmem:[#allocation7 + $0xa50] sm:$0xff] }
 0x159   : > { %1589 = vmatpush.msra.mxu2 %v1479_v7  ;;  %1609 = vmatpush.msra.mxu3 %v1511_v9  ;;  %v1661_v7 = vld [vmem:[#allocation7 + $0xb50] sm:$0xff]  ;;  %v1630_v9 = vld [vmem:[#allocation7 + $0xa58] sm:$0xff] }
 0x15a   : > { %1550 = vmatpush.msra.mxu0 %v1476_v10  ;;  %1570 = vmatpush.msra.mxu1 %v1508_v13  ;;  %v1662_v10 = vld [vmem:[#allocation7 + $0xb58] sm:$0xff]  ;;  %v1627_v13 = vld [vmem:[#allocation7 + $0xa40] sm:$0xff] }
 0x15b   : > { %1590 = vmatpush.msra.mxu2 %v1477_v14  ;;  %1610 = vmatpush.msra.mxu3 %v1509_v15  ;;  %v1659_v14 = vld [vmem:[#allocation7 + $0xb40] sm:$0xff]  ;;  %v1628_v15 = vld [vmem:[#allocation7 + $0xa48] sm:$0xff] }
 0x15c   : > { %1551 = vmatpush.msra.mxu0 %v1474_v16  ;;  %1571 = vmatpush.msra.mxu1 %v1506_v5  ;;  %v1660_v16 = vld [vmem:[#allocation7 + $0xb48] sm:$0xff]  ;;  %v1625_v5 = vld [vmem:[#allocation7 + $0xa30] sm:$0xff] }
 0x15d   : > { %1591 = vmatpush.msra.mxu2 %v1475_v8  ;;  %1611 = vmatpush.msra.mxu3 %v1507_v17  ;;  %v1657_v8 = vld [vmem:[#allocation7 + $0xb30] sm:$0xff]  ;;  %v1626_v17 = vld [vmem:[#allocation7 + $0xa38] sm:$0xff] }
 0x15e   : > { %1552 = vmatpush.msra.mxu0 %v1472_v18  ;;  %1572 = vmatpush.msra.mxu1 %v1504_v19  ;;  %v1658_v18 = vld [vmem:[#allocation7 + $0xb38] sm:$0xff]  ;;  %v1623_v19 = vld [vmem:[#allocation7 + $0xa20] sm:$0xff] }
 0x15f   : > { %1592 = vmatpush.msra.mxu2 %v1473_v20  ;;  %1612 = vmatpush.msra.mxu3 %v1505_v21  ;;  %v1655_v20 = vld [vmem:[#allocation7 + $0xb20] sm:$0xff]  ;;  %v1624_v21 = vld [vmem:[#allocation7 + $0xa28] sm:$0xff] }
 0x160   : > { %1553 = vmatpush.msra.mxu0 %v1470_v22  ;;  %1573 = vmatpush.msra.mxu1 %v1502_v23  ;;  %v1656_v22 = vld [vmem:[#allocation7 + $0xb28] sm:$0xff]  ;;  %v1621_v23 = vld [vmem:[#allocation7 + $0xa10] sm:$0xff] }
 0x161   : > { %1593 = vmatpush.msra.mxu2 %v1471_v24  ;;  %1613 = vmatpush.msra.mxu3 %v1503_v25  ;;  %v1653_v24 = vld [vmem:[#allocation7 + $0xb10] sm:$0xff]  ;;  %v1622_v25 = vld [vmem:[#allocation7 + $0xa18] sm:$0xff] }
 0x162   : > { %1554 = vmatmul.f32.vlgmr.msra.gmra.mxu0 %v1534_v26  ;;  %1574 = vmatmul.f32.vlgmr.msra.gmra.mxu1 %v1535_v27 }
 0x163   : > { %1594 = vmatmul.f32.vlgmr.msra.gmra.mxu2 %v1534_v26  ;;  %1614 = vmatmul.f32.vlgmr.msra.gmra.mxu3 %v1535_v27  ;;  %v1654_v26 = vld [vmem:[#allocation7 + $0xb18] sm:$0xff]  ;;  %v1619_v27 = vld [vmem:[#allocation7 + $0xa00] sm:$0xff] }
 0x164   : > { %1687 = vmatpush.msrb.mxu0 %v1649_v28  ;;  %1707 = vmatpush.msrb.mxu1 %v1681_v29  ;;  %v1651_v28 = vld [vmem:[#allocation7 + $0xb00] sm:$0xff]  ;;  %v1620_v29 = vld [vmem:[#allocation7 + $0xa08] sm:$0xff] }
 0x165   : > { %1727 = vmatpush.msrb.mxu2 %v1650_v30  ;;  %1747 = vmatpush.msrb.mxu3 %v1682_v31  ;;  %v1652_v30 = vld [vmem:[#allocation7 + $0xb08] sm:$0xff]  ;;  %v1683_v31 = vrot.slane %v4052_v11, 5 }
 0x166   : > { %1688 = vmatpush.msrb.mxu0 %v1647_v32  ;;  %1708 = vmatpush.msrb.mxu1 %v1679_v33  ;;  %v1684_v32 = vrot.slane %v4054_v12, 5  ;;  %v1798_v33 = vld [vmem:[#allocation7 + $0xcf0] sm:$0xff] }
 0x167   : > { %1728 = vmatpush.msrb.mxu2 %v1648_v34  ;;  %1748 = vmatpush.msrb.mxu3 %v1680_v35  ;;  %v1830_v34 = vld [vmem:[#allocation7 + $0xdf0] sm:$0xff]  ;;  %v1799_v35 = vld [vmem:[#allocation7 + $0xcf8] sm:$0xff] }
 0x168   : > { %1689 = vmatpush.msrb.mxu0 %v1645_v36  ;;  %1709 = vmatpush.msrb.mxu1 %v1677_v37  ;;  %v1831_v36 = vld [vmem:[#allocation7 + $0xdf8] sm:$0xff]  ;;  %v1796_v37 = vld [vmem:[#allocation7 + $0xce0] sm:$0xff] }
 0x169   : > { %1729 = vmatpush.msrb.mxu2 %v1646_v38  ;;  %1749 = vmatpush.msrb.mxu3 %v1678_v39  ;;  %v1828_v38 = vld [vmem:[#allocation7 + $0xde0] sm:$0xff]  ;;  %v1797_v39 = vld [vmem:[#allocation7 + $0xce8] sm:$0xff] }
 0x16a   : > { %1690 = vmatpush.msrb.mxu0 %v1643_v40  ;;  %1710 = vmatpush.msrb.mxu1 %v1675_v41  ;;  %v1829_v40 = vld [vmem:[#allocation7 + $0xde8] sm:$0xff]  ;;  %v1794_v41 = vld [vmem:[#allocation7 + $0xcd0] sm:$0xff] }
 0x16b   : > { %1730 = vmatpush.msrb.mxu2 %v1644_v42  ;;  %1750 = vmatpush.msrb.mxu3 %v1676_v43  ;;  %v1826_v42 = vld [vmem:[#allocation7 + $0xdd0] sm:$0xff]  ;;  %v1795_v43 = vld [vmem:[#allocation7 + $0xcd8] sm:$0xff] }
 0x16c   : > { %1691 = vmatpush.msrb.mxu0 %v1641_v44  ;;  %1711 = vmatpush.msrb.mxu1 %v1673_v45  ;;  %v1827_v44 = vld [vmem:[#allocation7 + $0xdd8] sm:$0xff]  ;;  %v1792_v45 = vld [vmem:[#allocation7 + $0xcc0] sm:$0xff] }
 0x16d   : > { %1731 = vmatpush.msrb.mxu2 %v1642_v46  ;;  %1751 = vmatpush.msrb.mxu3 %v1674_v47  ;;  %v1824_v46 = vld [vmem:[#allocation7 + $0xdc0] sm:$0xff]  ;;  %v1793_v47 = vld [vmem:[#allocation7 + $0xcc8] sm:$0xff] }
 0x16e   : > { %1692 = vmatpush.msrb.mxu0 %v1639_v48  ;;  %1712 = vmatpush.msrb.mxu1 %v1671_v49  ;;  %v1825_v48 = vld [vmem:[#allocation7 + $0xdc8] sm:$0xff]  ;;  %v1790_v49 = vld [vmem:[#allocation7 + $0xcb0] sm:$0xff] }
 0x16f   : > { %1732 = vmatpush.msrb.mxu2 %v1640_v50  ;;  %1752 = vmatpush.msrb.mxu3 %v1672_v51  ;;  %v1822_v50 = vld [vmem:[#allocation7 + $0xdb0] sm:$0xff]  ;;  %v1791_v51 = vld [vmem:[#allocation7 + $0xcb8] sm:$0xff] }
 0x170   : > { %1693 = vmatpush.msrb.mxu0 %v1637_v52  ;;  %1713 = vmatpush.msrb.mxu1 %v1669_v54  ;;  %v1823_v52 = vld [vmem:[#allocation7 + $0xdb8] sm:$0xff]  ;;  %v1788_v54 = vld [vmem:[#allocation7 + $0xca0] sm:$0xff] }
 0x171   : > { %1733 = vmatpush.msrb.mxu2 %v1638_v55  ;;  %1753 = vmatpush.msrb.mxu3 %v1670_v56  ;;  %v1820_v55 = vld [vmem:[#allocation7 + $0xda0] sm:$0xff]  ;;  %v1789_v56 = vld [vmem:[#allocation7 + $0xca8] sm:$0xff] }
 0x172   : > { %1694 = vmatpush.msrb.mxu0 %v1635_v57  ;;  %1714 = vmatpush.msrb.mxu1 %v1667_v58  ;;  %v1821_v57 = vld [vmem:[#allocation7 + $0xda8] sm:$0xff]  ;;  %v1786_v58 = vld [vmem:[#allocation7 + $0xc90] sm:$0xff] }
 0x173   : > { %1734 = vmatpush.msrb.mxu2 %v1636_v59  ;;  %1754 = vmatpush.msrb.mxu3 %v1668_v60  ;;  %v1818_v59 = vld [vmem:[#allocation7 + $0xd90] sm:$0xff]  ;;  %v1787_v60 = vld [vmem:[#allocation7 + $0xc98] sm:$0xff] }
 0x174   : > { %1695 = vmatpush.msrb.mxu0 %v1633_v61  ;;  %1715 = vmatpush.msrb.mxu1 %v1665_v62  ;;  %v1819_v61 = vld [vmem:[#allocation7 + $0xd98] sm:$0xff]  ;;  %v1784_v62 = vld [vmem:[#allocation7 + $0xc80] sm:$0xff] }
 0x175   : > { %1735 = vmatpush.msrb.mxu2 %v1634_v63  ;;  %1755 = vmatpush.msrb.mxu3 %v1666_v0  ;;  %v1816_v63 = vld [vmem:[#allocation7 + $0xd80] sm:$0xff]  ;;  %v1785_v0 = vld [vmem:[#allocation7 + $0xc88] sm:$0xff] }
 0x176   : > { %1696 = vmatpush.msrb.mxu0 %v1631_v1  ;;  %1716 = vmatpush.msrb.mxu1 %v1663_v2  ;;  %v1817_v1 = vld [vmem:[#allocation7 + $0xd88] sm:$0xff]  ;;  %v1782_v2 = vld [vmem:[#allocation7 + $0xc70] sm:$0xff] }
 0x177   : > { %1736 = vmatpush.msrb.mxu2 %v1632_v3  ;;  %1756 = vmatpush.msrb.mxu3 %v1664_v4  ;;  %v1814_v3 = vld [vmem:[#allocation7 + $0xd70] sm:$0xff]  ;;  %v1783_v4 = vld [vmem:[#allocation7 + $0xc78] sm:$0xff] }
 0x178   : > { %1697 = vmatpush.msrb.mxu0 %v1629_v6  ;;  %1717 = vmatpush.msrb.mxu1 %v1661_v7  ;;  %v1815_v6 = vld [vmem:[#allocation7 + $0xd78] sm:$0xff]  ;;  %v1780_v7 = vld [vmem:[#allocation7 + $0xc60] sm:$0xff] }
 0x179   : > { %1737 = vmatpush.msrb.mxu2 %v1630_v9  ;;  %1757 = vmatpush.msrb.mxu3 %v1662_v10  ;;  %v1812_v9 = vld [vmem:[#allocation7 + $0xd60] sm:$0xff]  ;;  %v1781_v10 = vld [vmem:[#allocation7 + $0xc68] sm:$0xff] }
 0x17a   : > { %1698 = vmatpush.msrb.mxu0 %v1627_v13  ;;  %1718 = vmatpush.msrb.mxu1 %v1659_v14  ;;  %v1813_v13 = vld [vmem:[#allocation7 + $0xd68] sm:$0xff]  ;;  %v1778_v14 = vld [vmem:[#allocation7 + $0xc50] sm:$0xff] }
 0x17b   : > { %1738 = vmatpush.msrb.mxu2 %v1628_v15  ;;  %1758 = vmatpush.msrb.mxu3 %v1660_v16  ;;  %v1810_v15 = vld [vmem:[#allocation7 + $0xd50] sm:$0xff]  ;;  %v1779_v16 = vld [vmem:[#allocation7 + $0xc58] sm:$0xff] }
 0x17c   : > { %1699 = vmatpush.msrb.mxu0 %v1625_v5  ;;  %1719 = vmatpush.msrb.mxu1 %v1657_v8  ;;  %v1811_v5 = vld [vmem:[#allocation7 + $0xd58] sm:$0xff]  ;;  %v1776_v8 = vld [vmem:[#allocation7 + $0xc40] sm:$0xff] }
 0x17d   : > { %1739 = vmatpush.msrb.mxu2 %v1626_v17  ;;  %1759 = vmatpush.msrb.mxu3 %v1658_v18  ;;  %v1808_v17 = vld [vmem:[#allocation7 + $0xd40] sm:$0xff]  ;;  %v1777_v18 = vld [vmem:[#allocation7 + $0xc48] sm:$0xff] }
 0x17e   : > { %1700 = vmatpush.msrb.mxu0 %v1623_v19  ;;  %1720 = vmatpush.msrb.mxu1 %v1655_v20  ;;  %v1809_v19 = vld [vmem:[#allocation7 + $0xd48] sm:$0xff]  ;;  %v1774_v20 = vld [vmem:[#allocation7 + $0xc30] sm:$0xff] }
 0x17f   : > { %1740 = vmatpush.msrb.mxu2 %v1624_v21  ;;  %1760 = vmatpush.msrb.mxu3 %v1656_v22  ;;  %v1806_v21 = vld [vmem:[#allocation7 + $0xd30] sm:$0xff]  ;;  %v1775_v22 = vld [vmem:[#allocation7 + $0xc38] sm:$0xff] }
 0x180   : > { %1701 = vmatpush.msrb.mxu0 %v1621_v23  ;;  %1721 = vmatpush.msrb.mxu1 %v1653_v24  ;;  %v1807_v23 = vld [vmem:[#allocation7 + $0xd38] sm:$0xff]  ;;  %v1772_v24 = vld [vmem:[#allocation7 + $0xc20] sm:$0xff] }
 0x181   : > { %1741 = vmatpush.msrb.mxu2 %v1622_v25  ;;  %1761 = vmatpush.msrb.mxu3 %v1654_v26  ;;  %v1804_v25 = vld [vmem:[#allocation7 + $0xd20] sm:$0xff]  ;;  %v1773_v26 = vld [vmem:[#allocation7 + $0xc28] sm:$0xff] }
 0x182   : > { %1702 = vmatpush.msrb.mxu0 %v1619_v27  ;;  %1722 = vmatpush.msrb.mxu1 %v1651_v28  ;;  %v1805_v27 = vld [vmem:[#allocation7 + $0xd28] sm:$0xff]  ;;  %v1770_v28 = vld [vmem:[#allocation7 + $0xc10] sm:$0xff] }
 0x183   : > { %1742 = vmatpush.msrb.mxu2 %v1620_v29  ;;  %1762 = vmatpush.msrb.mxu3 %v1652_v30  ;;  %v1802_v29 = vld [vmem:[#allocation7 + $0xd10] sm:$0xff]  ;;  %v1771_v30 = vld [vmem:[#allocation7 + $0xc18] sm:$0xff] }
 0x184   : > { %1703 = vmatmul.f32.vlgmr.msrb.gmra.mxu0 %v1683_v31  ;;  %1723 = vmatmul.f32.vlgmr.msrb.gmra.mxu1 %v1684_v32 }
 0x185   : > { %1743 = vmatmul.f32.vlgmr.msrb.gmra.mxu2 %v1683_v31  ;;  %1763 = vmatmul.f32.vlgmr.msrb.gmra.mxu3 %v1684_v32  ;;  %v1803_v31 = vld [vmem:[#allocation7 + $0xd18] sm:$0xff]  ;;  %v1768_v32 = vld [vmem:[#allocation7 + $0xc00] sm:$0xff] }
 0x186   : > { %1836 = vmatpush.msra.mxu0 %v1798_v33  ;;  %1856 = vmatpush.msra.mxu1 %v1830_v34  ;;  %v1800_v33 = vld [vmem:[#allocation7 + $0xd00] sm:$0xff]  ;;  %v1769_v34 = vld [vmem:[#allocation7 + $0xc08] sm:$0xff] }
 0x187   : > { %1876 = vmatpush.msra.mxu2 %v1799_v35  ;;  %1896 = vmatpush.msra.mxu3 %v1831_v36  ;;  %v1801_v35 = vld [vmem:[#allocation7 + $0xd08] sm:$0xff]  ;;  %v1832_v36 = vrot.slane %v4052_v11, 6 }
 0x188   : > { %1837 = vmatpush.msra.mxu0 %v1796_v37  ;;  %1857 = vmatpush.msra.mxu1 %v1828_v38  ;;  %v1833_v37 = vrot.slane %v4054_v12, 6  ;;  %v1947_v38 = vld [vmem:[#allocation7 + $0xef0] sm:$0xff] }
 0x189   : > { %1877 = vmatpush.msra.mxu2 %v1797_v39  ;;  %1897 = vmatpush.msra.mxu3 %v1829_v40  ;;  %v1979_v39 = vld [vmem:[#allocation7 + $0xff0] sm:$0xff]  ;;  %v1948_v40 = vld [vmem:[#allocation7 + $0xef8] sm:$0xff] }
 0x18a   : > { %1838 = vmatpush.msra.mxu0 %v1794_v41  ;;  %1858 = vmatpush.msra.mxu1 %v1826_v42  ;;  %v1980_v41 = vld [vmem:[#allocation7 + $0xff8] sm:$0xff]  ;;  %v1945_v42 = vld [vmem:[#allocation7 + $0xee0] sm:$0xff] }
 0x18b   : > { %1878 = vmatpush.msra.mxu2 %v1795_v43  ;;  %1898 = vmatpush.msra.mxu3 %v1827_v44  ;;  %v1977_v43 = vld [vmem:[#allocation7 + $0xfe0] sm:$0xff]  ;;  %v1946_v44 = vld [vmem:[#allocation7 + $0xee8] sm:$0xff] }
 0x18c   : > { %1839 = vmatpush.msra.mxu0 %v1792_v45  ;;  %1859 = vmatpush.msra.mxu1 %v1824_v46  ;;  %v1978_v45 = vld [vmem:[#allocation7 + $0xfe8] sm:$0xff]  ;;  %v1943_v46 = vld [vmem:[#allocation7 + $0xed0] sm:$0xff] }
 0x18d   : > { %1879 = vmatpush.msra.mxu2 %v1793_v47  ;;  %1899 = vmatpush.msra.mxu3 %v1825_v48  ;;  %v1975_v47 = vld [vmem:[#allocation7 + $0xfd0] sm:$0xff]  ;;  %v1944_v48 = vld [vmem:[#allocation7 + $0xed8] sm:$0xff] }
 0x18e   : > { %1840 = vmatpush.msra.mxu0 %v1790_v49  ;;  %1860 = vmatpush.msra.mxu1 %v1822_v50  ;;  %v1976_v49 = vld [vmem:[#allocation7 + $0xfd8] sm:$0xff]  ;;  %v1941_v50 = vld [vmem:[#allocation7 + $0xec0] sm:$0xff] }
 0x18f   : > { %1880 = vmatpush.msra.mxu2 %v1791_v51  ;;  %1900 = vmatpush.msra.mxu3 %v1823_v52  ;;  %v1973_v51 = vld [vmem:[#allocation7 + $0xfc0] sm:$0xff]  ;;  %v1942_v52 = vld [vmem:[#allocation7 + $0xec8] sm:$0xff] }
 0x190   : > { %1841 = vmatpush.msra.mxu0 %v1788_v54  ;;  %1861 = vmatpush.msra.mxu1 %v1820_v55  ;;  %v1974_v54 = vld [vmem:[#allocation7 + $0xfc8] sm:$0xff]  ;;  %v1939_v55 = vld [vmem:[#allocation7 + $0xeb0] sm:$0xff] }
 0x191   : > { %1881 = vmatpush.msra.mxu2 %v1789_v56  ;;  %1901 = vmatpush.msra.mxu3 %v1821_v57  ;;  %v1971_v56 = vld [vmem:[#allocation7 + $0xfb0] sm:$0xff]  ;;  %v1940_v57 = vld [vmem:[#allocation7 + $0xeb8] sm:$0xff] }
 0x192   : > { %1842 = vmatpush.msra.mxu0 %v1786_v58  ;;  %1862 = vmatpush.msra.mxu1 %v1818_v59  ;;  %v1972_v58 = vld [vmem:[#allocation7 + $0xfb8] sm:$0xff]  ;;  %v1937_v59 = vld [vmem:[#allocation7 + $0xea0] sm:$0xff] }
 0x193   : > { %1882 = vmatpush.msra.mxu2 %v1787_v60  ;;  %1902 = vmatpush.msra.mxu3 %v1819_v61  ;;  %v1969_v60 = vld [vmem:[#allocation7 + $0xfa0] sm:$0xff]  ;;  %v1938_v61 = vld [vmem:[#allocation7 + $0xea8] sm:$0xff] }
 0x194   : > { %1843 = vmatpush.msra.mxu0 %v1784_v62  ;;  %1863 = vmatpush.msra.mxu1 %v1816_v63  ;;  %v1970_v62 = vld [vmem:[#allocation7 + $0xfa8] sm:$0xff]  ;;  %v1935_v63 = vld [vmem:[#allocation7 + $0xe90] sm:$0xff] }
 0x195   : > { %1883 = vmatpush.msra.mxu2 %v1785_v0  ;;  %1903 = vmatpush.msra.mxu3 %v1817_v1  ;;  %v1967_v0 = vld [vmem:[#allocation7 + $0xf90] sm:$0xff]  ;;  %v1936_v1 = vld [vmem:[#allocation7 + $0xe98] sm:$0xff] }
 0x196   : > { %1844 = vmatpush.msra.mxu0 %v1782_v2  ;;  %1864 = vmatpush.msra.mxu1 %v1814_v3  ;;  %v1968_v2 = vld [vmem:[#allocation7 + $0xf98] sm:$0xff]  ;;  %v1933_v3 = vld [vmem:[#allocation7 + $0xe80] sm:$0xff] }
 0x197   : > { %1884 = vmatpush.msra.mxu2 %v1783_v4  ;;  %1904 = vmatpush.msra.mxu3 %v1815_v6  ;;  %v1965_v4 = vld [vmem:[#allocation7 + $0xf80] sm:$0xff]  ;;  %v1934_v6 = vld [vmem:[#allocation7 + $0xe88] sm:$0xff] }
 0x198   : > { %1845 = vmatpush.msra.mxu0 %v1780_v7  ;;  %1865 = vmatpush.msra.mxu1 %v1812_v9  ;;  %v1966_v7 = vld [vmem:[#allocation7 + $0xf88] sm:$0xff]  ;;  %v1931_v9 = vld [vmem:[#allocation7 + $0xe70] sm:$0xff] }
 0x199   : > { %1885 = vmatpush.msra.mxu2 %v1781_v10  ;;  %1905 = vmatpush.msra.mxu3 %v1813_v13  ;;  %v1963_v10 = vld [vmem:[#allocation7 + $0xf70] sm:$0xff]  ;;  %v1932_v13 = vld [vmem:[#allocation7 + $0xe78] sm:$0xff] }
 0x19a   : > { %1846 = vmatpush.msra.mxu0 %v1778_v14  ;;  %1866 = vmatpush.msra.mxu1 %v1810_v15  ;;  %v1964_v14 = vld [vmem:[#allocation7 + $0xf78] sm:$0xff]  ;;  %v1929_v15 = vld [vmem:[#allocation7 + $0xe60] sm:$0xff] }
 0x19b   : > { %1886 = vmatpush.msra.mxu2 %v1779_v16  ;;  %1906 = vmatpush.msra.mxu3 %v1811_v5  ;;  %v1961_v16 = vld [vmem:[#allocation7 + $0xf60] sm:$0xff]  ;;  %v1930_v5 = vld [vmem:[#allocation7 + $0xe68] sm:$0xff] }
 0x19c   : > { %1847 = vmatpush.msra.mxu0 %v1776_v8  ;;  %1867 = vmatpush.msra.mxu1 %v1808_v17  ;;  %v1962_v8 = vld [vmem:[#allocation7 + $0xf68] sm:$0xff]  ;;  %v1927_v17 = vld [vmem:[#allocation7 + $0xe50] sm:$0xff] }
 0x19d   : > { %1887 = vmatpush.msra.mxu2 %v1777_v18  ;;  %1907 = vmatpush.msra.mxu3 %v1809_v19  ;;  %v1959_v18 = vld [vmem:[#allocation7 + $0xf50] sm:$0xff]  ;;  %v1928_v19 = vld [vmem:[#allocation7 + $0xe58] sm:$0xff] }
 0x19e   : > { %1848 = vmatpush.msra.mxu0 %v1774_v20  ;;  %1868 = vmatpush.msra.mxu1 %v1806_v21  ;;  %v1960_v20 = vld [vmem:[#allocation7 + $0xf58] sm:$0xff]  ;;  %v1925_v21 = vld [vmem:[#allocation7 + $0xe40] sm:$0xff] }
 0x19f   : > { %1888 = vmatpush.msra.mxu2 %v1775_v22  ;;  %1908 = vmatpush.msra.mxu3 %v1807_v23  ;;  %v1957_v22 = vld [vmem:[#allocation7 + $0xf40] sm:$0xff]  ;;  %v1926_v23 = vld [vmem:[#allocation7 + $0xe48] sm:$0xff] }
 0x1a0   : > { %1849 = vmatpush.msra.mxu0 %v1772_v24  ;;  %1869 = vmatpush.msra.mxu1 %v1804_v25  ;;  %v1958_v24 = vld [vmem:[#allocation7 + $0xf48] sm:$0xff]  ;;  %v1923_v25 = vld [vmem:[#allocation7 + $0xe30] sm:$0xff] }
 0x1a1   : > { %1889 = vmatpush.msra.mxu2 %v1773_v26  ;;  %1909 = vmatpush.msra.mxu3 %v1805_v27  ;;  %v1955_v26 = vld [vmem:[#allocation7 + $0xf30] sm:$0xff]  ;;  %v1924_v27 = vld [vmem:[#allocation7 + $0xe38] sm:$0xff] }
 0x1a2   : > { %1850 = vmatpush.msra.mxu0 %v1770_v28  ;;  %1870 = vmatpush.msra.mxu1 %v1802_v29  ;;  %v1956_v28 = vld [vmem:[#allocation7 + $0xf38] sm:$0xff]  ;;  %v1921_v29 = vld [vmem:[#allocation7 + $0xe20] sm:$0xff] }
 0x1a3   : > { %1890 = vmatpush.msra.mxu2 %v1771_v30  ;;  %1910 = vmatpush.msra.mxu3 %v1803_v31  ;;  %v1953_v30 = vld [vmem:[#allocation7 + $0xf20] sm:$0xff]  ;;  %v1922_v31 = vld [vmem:[#allocation7 + $0xe28] sm:$0xff] }
 0x1a4   : > { %1851 = vmatpush.msra.mxu0 %v1768_v32  ;;  %1871 = vmatpush.msra.mxu1 %v1800_v33  ;;  %v1954_v32 = vld [vmem:[#allocation7 + $0xf28] sm:$0xff]  ;;  %v1919_v33 = vld [vmem:[#allocation7 + $0xe10] sm:$0xff] }
 0x1a5   : > { %1891 = vmatpush.msra.mxu2 %v1769_v34  ;;  %1911 = vmatpush.msra.mxu3 %v1801_v35  ;;  %v1951_v34 = vld [vmem:[#allocation7 + $0xf10] sm:$0xff]  ;;  %v1920_v35 = vld [vmem:[#allocation7 + $0xe18] sm:$0xff] }
 0x1a6   : > { %1852 = vmatmul.f32.vlgmr.msra.gmra.mxu0 %v1832_v36  ;;  %1872 = vmatmul.f32.vlgmr.msra.gmra.mxu1 %v1833_v37 }
 0x1a7   : > { %1892 = vmatmul.f32.vlgmr.msra.gmra.mxu2 %v1832_v36  ;;  %1912 = vmatmul.f32.vlgmr.msra.gmra.mxu3 %v1833_v37  ;;  %v1952_v36 = vld [vmem:[#allocation7 + $0xf18] sm:$0xff]  ;;  %v1917_v37 = vld [vmem:[#allocation7 + $0xe00] sm:$0xff] }
 0x1a8   : > { %1985 = vmatpush.msrb.mxu0 %v1947_v38  ;;  %2005 = vmatpush.msrb.mxu1 %v1979_v39  ;;  %v1949_v38 = vld [vmem:[#allocation7 + $0xf00] sm:$0xff]  ;;  %v1918_v39 = vld [vmem:[#allocation7 + $0xe08] sm:$0xff] }
 0x1a9   : > { %2025 = vmatpush.msrb.mxu2 %v1948_v40  ;;  %2045 = vmatpush.msrb.mxu3 %v1980_v41  ;;  %v1950_v40 = vld [vmem:[#allocation7 + $0xf08] sm:$0xff]  ;;  %v1981_v41 = vrot.slane %v4052_v11, 7  ;;  %v957_v11 = vpop.f32.mrf.mxu0 }
 0x1aa   : > { %1986 = vmatpush.msrb.mxu0 %v1945_v42  ;;  %2006 = vmatpush.msrb.mxu1 %v1977_v43  ;;  %v1982_v42 = vrot.slane %v4054_v12, 7  ;;  %v2482_v43 = vld [vmem:[%s4415_s8 + $0x8] sm:$0xff]  ;;  %v4080_v12 = vpop.f32.mrf.mxu2 }
 0x1ab   : > { %2026 = vmatpush.msrb.mxu2 %v1946_v44  ;;  %2046 = vmatpush.msrb.mxu3 %v1978_v45  ;;  %v2484_v44 = vld [vmem:[%s4416_s2] sm:$0xff]  ;;  %v977_v45 = vpop.f32.mrf.mxu1  ;;  %s3021_s2 = sshll.u32 %s4238_s16, 4  ;;  %s3022_s2 = int_to_ptr.vmem [resolvable:$true] %s3021_s2 }
 0x1ac   : > { %1987 = vmatpush.msrb.mxu0 %v1943_v46  ;;  %2007 = vmatpush.msrb.mxu1 %v1975_v47  ;;  %v4082_v46 = vpop.f32.mrf.mxu3 }
 0x1ad   : > { %2027 = vmatpush.msrb.mxu2 %v1944_v48  ;;  %2047 = vmatpush.msrb.mxu3 %v1976_v49 }
 0x1ae   : > { %1988 = vmatpush.msrb.mxu0 %v1941_v50  ;;  %2008 = vmatpush.msrb.mxu1 %v1973_v51  ;;  %v2474_v51 = vld [vmem:[%s3973_s1] sm:$0xff] }
 0x1af   : > { %2028 = vmatpush.msrb.mxu2 %v1942_v52  ;;  %2048 = vmatpush.msrb.mxu3 %v1974_v54 }
 0x1b0   : > { %1989 = vmatpush.msrb.mxu0 %v1939_v55  ;;  %2009 = vmatpush.msrb.mxu1 %v1971_v56  ;;  %v2486_v55 = vsel %vm2485_vm7, %v2474_v51, 0.0 }
 0x1b1   : > { %2029 = vmatpush.msrb.mxu2 %v1940_v57  ;;  %2049 = vmatpush.msrb.mxu3 %v1972_v58  ;;  %v1108_v47 = vpop.f32.mrf.mxu0  ;;  %v2487_v56 = vrot.slane %v2486_v55, 4 }
 0x1b2   : > { %1990 = vmatpush.msrb.mxu0 %v1937_v59  ;;  %2010 = vmatpush.msrb.mxu1 %v1969_v60  ;;  %v1148_v49 = vpop.f32.mrf.mxu2 }
 0x1b3   : > { %2030 = vmatpush.msrb.mxu2 %v1938_v61  ;;  %2050 = vmatpush.msrb.mxu3 %v1970_v62  ;;  %v1128_v48 = vpop.f32.mrf.mxu1  ;;  %v2488_v61 = vadd.f32 %v2487_v56, %v2486_v55 }
 0x1b4   : > { %1991 = vmatpush.msrb.mxu0 %v1935_v63  ;;  %2011 = vmatpush.msrb.mxu1 %v1967_v0  ;;  %v1168_v50 = vpop.f32.mrf.mxu3 }
 0x1b5   : > { %2031 = vmatpush.msrb.mxu2 %v1936_v1  ;;  %2051 = vmatpush.msrb.mxu3 %v1968_v2  ;;  %v2489_v62 = vrot.slane %v2488_v61, 2 }
 0x1b6   : > { %1992 = vmatpush.msrb.mxu0 %v1933_v3  ;;  %2012 = vmatpush.msrb.mxu1 %v1965_v4 }
 0x1b7   : > { %2032 = vmatpush.msrb.mxu2 %v1934_v6  ;;  %2052 = vmatpush.msrb.mxu3 %v1966_v7  ;;  %v2490_v3 = vadd.f32 %v2489_v62, %v2488_v61 }
 0x1b8   : > { %1993 = vmatpush.msrb.mxu0 %v1931_v9  ;;  %2013 = vmatpush.msrb.mxu1 %v1963_v10 }
 0x1b9   : > { %2033 = vmatpush.msrb.mxu2 %v1932_v13  ;;  %2053 = vmatpush.msrb.mxu3 %v1964_v14  ;;  %v1257_v52 = vpop.f32.mrf.mxu0  ;;  %v2491_v4 = vrot.slane %v2490_v3, 1 }
 0x1ba   : > { %1994 = vmatpush.msrb.mxu0 %v1929_v15  ;;  %2014 = vmatpush.msrb.mxu1 %v1961_v16  ;;  %v1297_v57 = vpop.f32.mrf.mxu2  ;;  %v1129_v15 = vadd.f32 %v1128_v48, %v1108_v47 }
 0x1bb   : > { %2034 = vmatpush.msrb.mxu2 %v1930_v5  ;;  %2054 = vmatpush.msrb.mxu3 %v1962_v8  ;;  %v1277_v54 = vpop.f32.mrf.mxu1  ;;  %v2492_v13 = vadd.f32 %v2491_v4, %v2490_v3 }
 0x1bc   : > { %1995 = vmatpush.msrb.mxu0 %v1927_v17  ;;  %2015 = vmatpush.msrb.mxu1 %v1959_v18  ;;  %v1317_v58 = vpop.f32.mrf.mxu3  ;;  %v1278_v8 = vadd.f32 %v1277_v54, %v1257_v52  ;;  %v1018_v52 = vadd.f32 %v4082_v46, %v4080_v12 }
 0x1bd   : > { %2035 = vmatpush.msrb.mxu2 %v1928_v19  ;;  %2055 = vmatpush.msrb.mxu3 %v1960_v20  ;;  %v2493_v14 = vmul.f32 %v2492_v13, %v4034_v53 }
 0x1be   : > { %1996 = vmatpush.msrb.mxu0 %v1925_v21  ;;  %2016 = vmatpush.msrb.mxu1 %v1957_v22  ;;  %v2067_v22 = vrot.slane %v1129_v15, 7 }
 0x1bf   : > { %2036 = vmatpush.msrb.mxu2 %v1926_v23  ;;  %2056 = vmatpush.msrb.mxu3 %v1958_v24  ;;  %v4087_v20 = vsub.f32 %v2474_v51, %v2493_v14  ;;  %v2073_v24 = vrot.slane %v1278_v8, 6 }
 0x1c0   : > { %1997 = vmatpush.msrb.mxu0 %v1923_v25  ;;  %2017 = vmatpush.msrb.mxu1 %v1955_v26  ;;  %v978_v26 = vadd.f32 %v977_v45, %v957_v11 }
 0x1c1   : > { %2037 = vmatpush.msrb.mxu2 %v1924_v27  ;;  %2057 = vmatpush.msrb.mxu3 %v1956_v28  ;;  %v1406_v59 = vpop.f32.mrf.mxu0  ;;  %v2495_v28 = vmul.f32 %v4087_v20, %v4087_v20 }
 0x1c2   : > { %1998 = vmatpush.msrb.mxu0 %v1921_v29  ;;  %2018 = vmatpush.msrb.mxu1 %v1953_v30  ;;  %v1169_v29 = vadd.f32 %v1168_v50, %v1148_v49 }
 0x1c3   : > { %2038 = vmatpush.msrb.mxu2 %v1922_v31  ;;  %2058 = vmatpush.msrb.mxu3 %v1954_v32  ;;  %v1426_v60 = vpop.f32.mrf.mxu1  ;;  %v2108_v31 = vsel %vm2107_vm8, %v978_v26, %v2067_v22  ;;  %v1318_v32 = vadd.f32 %v1317_v58, %v1297_v57  ;;  %v2496_v51 = vsel %vm2485_vm7, %v2495_v28, 0.0 }
 0x1c4   : > { %1999 = vmatpush.msrb.mxu0 %v1919_v33  ;;  %2019 = vmatpush.msrb.mxu1 %v1951_v34  ;;  %v1446_v63 = vpop.f32.mrf.mxu2  ;;  %v1466_v0 = vpop.f32.mrf.mxu3  ;;  %v1427_v19 = vadd.f32 %v1426_v60, %v1406_v59  ;;  %v2497_v61 = vrot.slane %v2496_v51, 4 }
 0x1c5   : > { %2039 = vmatpush.msrb.mxu2 %v1920_v35  ;;  %2059 = vmatpush.msrb.mxu3 %v1952_v36  ;;  %v2111_v36 = vsel %vm2110_vm9, %v2108_v31, %v2073_v24  ;;  %v2074_v47 = vrot.slane %v1318_v32, 6 }
 0x1c6   : > { %2000 = vmatpush.msrb.mxu0 %v1917_v37  ;;  %2020 = vmatpush.msrb.mxu1 %v1949_v38  ;;  %v2079_v27 = vrot.slane %v1427_v19, 5  ;;  %v1467_v37 = vadd.f32 %v1466_v0, %v1446_v63 }
 0x1c7   : > { %2040 = vmatpush.msrb.mxu2 %v1918_v39  ;;  %2060 = vmatpush.msrb.mxu3 %v1950_v40 }
 0x1c8   : > { %2001 = vmatmul.f32.vlgmr.msrb.gmra.mxu0 %v1981_v41  ;;  %2021 = vmatmul.f32.vlgmr.msrb.gmra.mxu1 %v1982_v42  ;;  %v2080_v54 = vrot.slane %v1467_v37, 5 }
 0x1c9   : > { %2041 = vmatmul.f32.vlgmr.msrb.gmra.mxu2 %v1981_v41  ;;  %2061 = vmatmul.f32.vlgmr.msrb.gmra.mxu3 %v1982_v42  ;;  %v2114_v41 = vsel %vm2113_vm10, %v2111_v36, %v2079_v27 }
 0x1ca   : > { %2860 = vperm.xlu1 %3355, %v2482_v43  }
 0x1d2   : > { %2974 = vperm.xlu1 %3355, %v2484_v44   ;;  %v2068_v44 = vrot.slane %v1169_v29, 7 }
 0x1d4   : > { %v2109_v58 = vsel %vm2107_vm8, %v1018_v52, %v2068_v44 }
 0x1d5   : > { %v2112_v62 = vsel %vm2110_vm9, %v2109_v58, %v2074_v47  ;;  %v796_v58 = vld [vmem:[%s4417_s21 + $0x8] sm:$0xff] }
 0x1d6   : > { %2205 = vperm.xlu2 %3356, %v796_v58  }
 0x1df   : > { %v1555_v1 = vpop.f32.mrf.mxu0  ;;  %v1575_v2 = vpop.f32.mrf.mxu1 }
 0x1e0   : > { %v1576_v21 = vadd.f32 %v1575_v2, %v1555_v1  ;;  %v2115_v2 = vsel %vm2113_vm10, %v2112_v62, %v2080_v54 }
 0x1e2   : > { %v2085_v30 = vrot.slane %v1576_v21, 4 }
 0x1e4   : > { %v2117_v11 = vsel %vm2116_vm11, %v2114_v41, %v2085_v30 }
 0x1e6   : > { %v1595_v6 = vpop.f32.mrf.mxu2  ;;  %v1615_v7 = vpop.f32.mrf.mxu3 }
 0x1e7   : > { %v1616_v42 = vadd.f32 %v1615_v7, %v1595_v6 }
 0x1e9   : > { %v2086_v56 = vrot.slane %v1616_v42, 4 }
 0x1eb   : > { %v2118_v46 = vsel %vm2116_vm11, %v2115_v2, %v2086_v56  ;;  %v2187_v56 = vpop.permute.xlu1 %2186 }
 0x201   : > { %v1704_v9 = vpop.f32.mrf.mxu0  ;;  %v1724_v10 = vpop.f32.mrf.mxu1 }
 0x202   : > { %v1725_v23 = vadd.f32 %v1724_v10, %v1704_v9  ;;  %v2498_v9 = vadd.f32 %v2497_v61, %v2496_v51 }
 0x204   : > { %v2091_v33 = vrot.slane %v1725_v23, 3 }
 0x206   : > { %v2120_v48 = vsel %vm2119_vm12, %v2117_v11, %v2091_v33 }
 0x208   : > { %v1744_v16 = vpop.f32.mrf.mxu2  ;;  %v1764_v5 = vpop.f32.mrf.mxu3 }
 0x209   : > { %v1765_v45 = vadd.f32 %v1764_v5, %v1744_v16  ;;  %v2499_v5 = vrot.slane %v2498_v9, 2 }
 0x20b   : > { %v2092_v59 = vrot.slane %v1765_v45, 3  ;;  %v2500_v21 = vadd.f32 %v2499_v5, %v2498_v9 }
 0x20d   : > { %v2121_v4 = vsel %vm2119_vm12, %v2118_v46, %v2092_v59  ;;  %v2501_v26 = vrot.slane %v2500_v21, 1 }
 0x20f   : > { %v2502_v31 = vadd.f32 %v2501_v26, %v2500_v21  ;;  %v2477_v21 = vld [vmem:[%s4419_s0] sm:$0xff]  ;;  %v794_v26 = vld [vmem:[%s4418_s3 + $0x8] sm:$0xff] }
 0x211   : > { %v2503_v36 = vmul.f32 %v2502_v31, %v4034_v53  ;;  %v2530_v31 = vld [vmem:[#allocation8 + $0x10] sm:$0xff] }
 0x213   : > { %v2504_v41 = vadd.f32 1e-05, %v2503_v36 }
 0x215   : > { %3363 = vrsqrt.f32 %v2504_v41  ;;  %vm2511_vm5 = vweird.f32 %v2504_v41 }
 0x223   : > { %v1853_v17 = vpop.f32.mrf.mxu0  ;;  %v1873_v18 = vpop.f32.mrf.mxu1 }
 0x224   : > { %v1874_v25 = vadd.f32 %v1873_v18, %v1853_v17 }
 0x226   : > { %v2097_v38 = vrot.slane %v1874_v25, 2 }
 0x228   : > { %v2123_v55 = vsel %vm2122_vm13, %v2120_v48, %v2097_v38 }
 0x22a   : > { %v1893_v34 = vpop.f32.mrf.mxu2  ;;  %v1913_v35 = vpop.f32.mrf.mxu3 }
 0x22b   : > { %v1914_v49 = vadd.f32 %v1913_v35, %v1893_v34 }
 0x22d   : > { %v2098_v63 = vrot.slane %v1914_v49, 2  ;;  %v3364_v49 = vpop.eup %3363 }
 0x22e   : > { %v2506_v54 = vmul.f32 %v3364_v49, %v2504_v41  ;;  %vm2512_vm6 = vweird.f32 %v3364_v49  ;;  %v2562_v41 = vld [vmem:[#allocation8 + $0x50] sm:$0xff] }
 0x22f   : > { %v2124_v10 = vsel %vm2122_vm13, %v2121_v4, %v2098_v63 }
 0x245   : > { %v2002_v39 = vpop.f32.mrf.mxu0  ;;  %v2022_v40 = vpop.f32.mrf.mxu1 }
 0x246   : > { %v2023_v43 = vadd.f32 %v2022_v40, %v2002_v39 }
 0x248   : > { %v2103_v50 = vrot.slane %v2023_v43, 1 }
 0x24a   : > { %v2126_v57 = vsel %vm2125_vm14, %v2123_v55, %v2103_v50 }
 0x24b   : > { %v2128_v60 = vrot.slane %v2126_v57, 4 }
 0x24c   : > { %v2042_v0 = vpop.f32.mrf.mxu2  ;;  %v2062_v1 = vpop.f32.mrf.mxu3 }
 0x24d   : > { %v2129_v3 = vadd.f32 %v2128_v60, %v2126_v57  ;;  %v2063_v12 = vadd.f32 %v2062_v1, %v2042_v0  ;;  %v2507_v60 = vmul.f32 %v3364_v49, %v2506_v54  ;;  %v2657_v54 = vld [vmem:[#allocation8 + $0x108] sm:$0xff] }
 0x24f   : > { %v2130_v6 = vrot.slane %v2129_v3, 2  ;;  %v2104_v7 = vrot.slane %v2063_v12, 1  ;;  %v2508_v1 = vmul.f32 0.5, %v2507_v60  ;;  %v2689_v60 = vld [vmem:[#allocation8 + $0x148] sm:$0xff] }
 0x251   : > { %v2131_v13 = vadd.f32 %v2130_v6, %v2129_v3  ;;  %v2127_v14 = vsel %vm2125_vm14, %v2124_v10, %v2104_v7  ;;  %v795_v6 = vld [vmem:[%s4417_s21] sm:$0xff]  ;;  %v2194_v7 = vpop.permute.xlu1 %2193  ;;  %v2509_v9 = vsub.f32 1.5, %v2508_v1 }
 0x252   : > { %v2134_v15 = vrot.slane %v2127_v14, 4  ;;  %2200 = vperm.xlu2 %3356, %v795_v6  }
 0x253   : > { %v2132_v16 = vrot.slane %v2131_v13, 1  ;;  %v2510_v5 = vmul.f32 %v3364_v49, %v2509_v9 }
 0x254   : > { %v2135_v8 = vadd.f32 %v2134_v15, %v2127_v14  ;;  %v2535_v15 = vld [vmem:[#allocation8 + $0x38] sm:$0xff] }
 0x255   : > { %v2133_v17 = vadd.f32 %v2132_v16, %v2131_v13 }
 0x256   : > { %v2136_v18 = vrot.slane %v2135_v8, 2 }
 0x257   : > { %v2140_v19 = vmul.f32 %v2133_v17, %v4034_v53  ;;  %v2534_v17 = vld [vmem:[#allocation8 + $0x30] sm:$0xff] }
 0x258   : > { %v2137_v22 = vadd.f32 %v2136_v18, %v2135_v8  ;;  %v2533_v18 = vld [vmem:[#allocation8 + $0x28] sm:$0xff] }
 0x259   : > { %v2142_v23 = vsub.f32 %v2126_v57, %v2140_v19  ;;  %v2525_v36 = vpop.permute.xlu1 %2524 }
 0x25a   : > { %v2138_v24 = vrot.slane %v2137_v22, 1  ;;  %2843 = vperm.xlu2 %3356, %v2477_v21  }
 0x25b   : > { %v2144_v25 = vmul.f32 %v2142_v23, %v2142_v23 }
 0x25c   : > { %v2139_v27 = vadd.f32 %v2138_v24, %v2137_v22  ;;  %v2532_v24 = vld [vmem:[#allocation8 + $0x20] sm:$0xff] }
 0x25d   : > { %v2146_v28 = vrot.slane %v2144_v25, 4 }
 0x25e   : > { %v2141_v29 = vmul.f32 %v2139_v27, %v4034_v53  ;;  %v2531_v27 = vld [vmem:[#allocation8 + $0x18] sm:$0xff] }
 0x25f   : > { %v2147_v30 = vadd.f32 %v2146_v28, %v2144_v25  ;;  %v2567_v25 = vld [vmem:[#allocation8 + $0x78] sm:$0xff] }
 0x260   : > { %v2143_v32 = vsub.f32 %v2127_v14, %v2141_v29  ;;  %v793_v14 = vld [vmem:[%s4418_s3] sm:$0xff]  ;;  %s3598_s3 = scalar_lea.hbm %s4422_s5, 32 }
 0x261   : > { %v2148_v33 = vrot.slane %v2147_v30, 2  ;;  %v2566_v29 = vld [vmem:[#allocation8 + $0x70] sm:$0xff] }
 0x262   : > { %v2145_v34 = vmul.f32 %v2143_v32, %v2143_v32 }
 0x263   : > { %v2149_v35 = vadd.f32 %v2148_v33, %v2147_v30  ;;  %v2519_v30 = vpop.permute.xlu0 %2518  ;;  %v2481_v33 = vld [vmem:[%s4415_s8] sm:$0xff] }
 0x264   : > { %v2152_v37 = vrot.slane %v2145_v34, 4  ;;  %2855 = vperm.xlu2 %3356, %v2481_v33  }
 0x265   : > { %v2150_v38 = vrot.slane %v2149_v35, 1 }
 0x266   : > { %v2153_v39 = vadd.f32 %v2152_v37, %v2145_v34  ;;  %v2529_v34 = vld [vmem:[#allocation8 + $0x8] sm:$0xff]  ;;  %v2528_v37 = vld [vmem:[#allocation8] sm:$0xff] }
 0x267   : > { %v2151_v40 = vadd.f32 %v2150_v38, %v2149_v35  ;;  %v2563_v38 = vld [vmem:[#allocation8 + $0x58] sm:$0xff] }
 0x268   : > { %v2154_v42 = vrot.slane %v2153_v39, 2 }
 0x269   : > { %v2158_v43 = vmul.f32 %v2151_v40, %v4034_v53 }
 0x26a   : > { %v2155_v44 = vadd.f32 %v2154_v42, %v2153_v39  ;;  %v2663_v39 = vld [vmem:[#allocation8 + $0x138] sm:$0xff]  ;;  %v2662_v42 = vld [vmem:[#allocation8 + $0x130] sm:$0xff] }
 0x26b   : > { %v2160_v11 = vadd.f32 1e-05, %v2158_v43  ;;  %v2561_v43 = vld [vmem:[#allocation8 + $0x48] sm:$0xff] }
 0x26c   : > { %v2156_v45 = vrot.slane %v2155_v44, 1 }
 0x26d   : > { %3365 = vrsqrt.f32 %v2160_v11  ;;  %vm2168_vm0 = vweird.f32 %v2160_v11 }
 0x26e   : > { %v2157_v47 = vadd.f32 %v2156_v45, %v2155_v44  ;;  %v2661_v44 = vld [vmem:[#allocation8 + $0x128] sm:$0xff]  ;;  %v2660_v45 = vld [vmem:[#allocation8 + $0x120] sm:$0xff] }
 0x270   : > { %v2159_v48 = vmul.f32 %v2157_v47, %v4034_v53  ;;  %v2695_v47 = vld [vmem:[#allocation8 + $0x178] sm:$0xff] }
 0x272   : > { %v2161_v50 = vadd.f32 1e-05, %v2159_v48  ;;  %v2659_v48 = vld [vmem:[#allocation8 + $0x118] sm:$0xff] }
 0x273   : > { %v3366_v51 = vpop.eup %3365 }
 0x274   : > { %v2163_v52 = vmul.f32 %v3366_v51, %v2160_v11  ;;  %3367 = vrsqrt.f32 %v2161_v50  ;;  %vm2169_vm15 = vweird.f32 %v3366_v51  ;;  %vm2178_vm3 = vweird.f32 %v2161_v50  ;;  %v2560_v11 = vld [vmem:[#allocation8 + $0x40] sm:$0xff] }
 0x275   : > { %vm2170_vm1 = vmor %vm2168_vm0, %vm2169_vm15 }
 0x276   : > { %v2164_v55 = vmul.f32 %v3366_v51, %v2163_v52  ;;  %vm2513_vm0 = vmor %vm2511_vm5, %vm2512_vm6  ;;  %v2693_v52 = vld [vmem:[#allocation8 + $0x168] sm:$0xff] }
 0x277   : > { %v2514_v22 = vsel %vm2513_vm0, %v3364_v49, %v2510_v5 }
 0x278   : > { %v2165_v57 = vmul.f32 0.5, %v2164_v55  ;;  %v2515_v28 = vmul.f32 %v2514_v22, %v4087_v20  ;;  %v2564_v20 = vld [vmem:[#allocation8 + $0x60] sm:$0xff] }
 0x279   : > { %v2692_v55 = vld [vmem:[#allocation8 + $0x160] sm:$0xff] }
 0x27a   : > { %v3368_v59 = vpop.eup %3367  ;;  %v2166_v61 = vsub.f32 1.5, %v2165_v57  ;;  %v2521_v35 = vmul.f32 %v2519_v30, %v2515_v28  ;;  %v2691_v57 = vld [vmem:[#allocation8 + $0x158] sm:$0xff] }
 0x27b   : > { %v2173_v62 = vmul.f32 %v3368_v59, %v2161_v50  ;;  %vm2179_vm2 = vweird.f32 %v3368_v59  ;;  %v2694_v50 = vld [vmem:[#allocation8 + $0x170] sm:$0xff] }
 0x27c   : > { %v2167_v63 = vmul.f32 %v3366_v51, %v2166_v61  ;;  %vm2180_vm15 = vmor %vm2178_vm3, %vm2179_vm2  ;;  %v4135_v40 = vadd.f32 %v2525_v36, %v2521_v35  ;;  %v2688_v61 = vld [vmem:[#allocation8 + $0x140] sm:$0xff] }
 0x27d   : > { %v2174_v0 = vmul.f32 %v3368_v59, %v2173_v62 }
 0x27e   : > { %v2171_v2 = vsel %vm2170_vm1, %v3366_v51, %v2167_v63  ;;  %v2568_v49 = vrot.slane %v4135_v40, 1  ;;  %v2658_v51 = vld [vmem:[#allocation8 + $0x110] sm:$0xff]  ;;  %v2664_v58 = vrot.slane %v4135_v40, 4  ;;  %v2696_v62 = vrot.slane %v4135_v40, 5  ;;  %v2206_v63 = vpop.permute.xlu2 %2205 }
 0x27f   : > { %v2182_v3 = vmul.f32 %v2171_v2, %v2142_v23  ;;  %v2175_v12 = vmul.f32 0.5, %v2174_v0 }
 0x281   : > { %v2176_v46 = vsub.f32 1.5, %v2175_v12  ;;  %v2189_v4 = vmul.f32 %v2187_v56, %v2182_v3 }
 0x283   : > { %v2177_v10 = vmul.f32 %v3368_v59, %v2176_v46  ;;  %v2196_v13 = vadd.f32 %v2194_v7, %v2189_v4 }
 0x285   : > { %v2181_v16 = vsel %vm2180_vm15, %v3368_v59, %v2177_v10  ;;  %2230 = vmatpush.msra.mxu0 %v2196_v13  ;;  %v2690_v59 = vld [vmem:[#allocation8 + $0x150] sm:$0xff] }
 0x286   : > { %v2183_v8 = vmul.f32 %v2181_v16, %v2143_v32  ;;  %3223 = vmatmul.msk.f32.vlgmr.msra.gmra.mxu0 %vm2208_vm4, %v793_v14  ;;  %v2565_v32 = vld [vmem:[#allocation8 + $0x68] sm:$0xff] }
 0x287   : > { %2547 = vmatpush.msrb.mxu0 %v2535_v15 }
 0x288   : > { %v2190_v19 = vmul.f32 %v2187_v56, %v2183_v8  ;;  %v2656_v56 = vld [vmem:[#allocation8 + $0x100] sm:$0xff] }
 0x289   : > { %2548 = vmatpush.msrb.mxu0 %v2534_v17 }
 0x28a   : > { %v2197_v23 = vadd.f32 %v2194_v7, %v2190_v19 }
 0x28b   : > { %2549 = vmatpush.msrb.mxu0 %v2533_v18 }
 0x28c   : > { %2253 = vmatpush.msra.mxu1 %v2197_v23 }
 0x28d   : > { %3225 = vmatmul.msk.f32.vlgmr.msra.gmra.mxu1 %vm2208_vm4, %v793_v14  ;;  %2550 = vmatpush.msrb.mxu0 %v2532_v24 }
 0x28e   : > { %2579 = vmatpush.msrb.mxu1 %v2567_v25  ;;  %3224 = vmatmul.msk.f32.gmra.mxu0 %vm2208_vm4, %v794_v26 }
 0x28f   : > { %2551 = vmatpush.msrb.mxu0 %v2531_v27 }
 0x290   : > { %2580 = vmatpush.msrb.mxu1 %v2566_v29 }
 0x291   : > { %2552 = vmatpush.msrb.mxu0 %v2530_v31 }
 0x292   : > { %2581 = vmatpush.msrb.mxu1 %v2565_v32 }
 0x293   : > { %2553 = vmatpush.msrb.mxu0 %v2529_v34 }
 0x294   : > { %2582 = vmatpush.msrb.mxu1 %v2564_v20 }
 0x295   : > { %3226 = vmatmul.msk.f32.gmra.mxu1 %vm2208_vm4, %v794_v26  ;;  %2554 = vmatpush.msrb.mxu0 %v2528_v37 }
 0x296   : > { %2583 = vmatpush.msrb.mxu1 %v2563_v38  ;;  %3229 = vmatmul.msk.f32.vlgmr.msrb.gmra.mxu0 %vm2485_vm7, %v4135_v40 }
 0x297   : > { %2675 = vmatpush.msra.mxu0 %v2663_v39 }
 0x298   : > { %2584 = vmatpush.msrb.mxu1 %v2562_v41 }
 0x299   : > { %2676 = vmatpush.msra.mxu0 %v2662_v42 }
 0x29a   : > { %2585 = vmatpush.msrb.mxu1 %v2561_v43 }
 0x29b   : > { %2677 = vmatpush.msra.mxu0 %v2661_v44 }
 0x29c   : > { %2586 = vmatpush.msrb.mxu1 %v2560_v11 }
 0x29d   : > { %2678 = vmatpush.msra.mxu0 %v2660_v45  ;;  %3230 = vmatmul.msk.f32.vlgmr.msrb.gmra.mxu1 %vm2485_vm7, %v2568_v49 }
 0x29e   : > { %2707 = vmatpush.msra.mxu1 %v2695_v47 }
 0x29f   : > { %2679 = vmatpush.msra.mxu0 %v2659_v48 }
 0x2a0   : > { %2708 = vmatpush.msra.mxu1 %v2694_v50 }
 0x2a1   : > { %2680 = vmatpush.msra.mxu0 %v2658_v51 }
 0x2a2   : > { %2709 = vmatpush.msra.mxu1 %v2693_v52 }
 0x2a3   : > { %2681 = vmatpush.msra.mxu0 %v2657_v54 }
 0x2a4   : > { %2710 = vmatpush.msra.mxu1 %v2692_v55 }
 0x2a5   : > { %2682 = vmatpush.msra.mxu0 %v2656_v56 }
 0x2a6   : > { %2711 = vmatpush.msra.mxu1 %v2691_v57  ;;  %3233 = vmatmul.msk.f32.vlgmr.msra.gmra.mxu0 %vm2485_vm7, %v2664_v58 }
 0x2a8   : > { %2712 = vmatpush.msra.mxu1 %v2690_v59 }
 0x2aa   : > { %2713 = vmatpush.msra.mxu1 %v2689_v60 }
 0x2ac   : > { %2714 = vmatpush.msra.mxu1 %v2688_v61  ;;  %v2201_v0 = vpop.permute.xlu2 %2200 }
 0x2ad   : > { %3234 = vmatmul.msk.f32.vlgmr.msra.gmra.mxu1 %vm2485_vm7, %v2696_v62 }
 0x303   : > { %v2232_v1 = vpop.f32.mrf.mxu0 }
 0x304   : > { %v4146_v2 = vadd.f32 %v2232_v1, %v2201_v0 }
 0x306   : > { %v4149_v3 = vmul.f32 0.70710677, %v4146_v2 }
 0x308   : > { %v4152_v12 = vand.u32 2147483647, %v4149_v3 }
 0x30a   : > { %v2281_v46 = vmul.f32 0.3275911, %v4152_v12  ;;  %v2255_v4 = vpop.f32.mrf.mxu1  ;;  %v2385_v44 = vsub.f32 0.0, %v4152_v12 }
 0x30b   : > { %v4155_v6 = vadd.f32 %v2255_v4, %v2201_v0  ;;  %v2235_v7 = vpop.f32.mrf.mxu0 }
 0x30c   : > { %v2285_v9 = vadd.f32 1.0, %v2281_v46  ;;  %v4157_v10 = vadd.f32 %v2235_v7, %v2206_v63  ;;  %v2389_v55 = vmul.f32 %v2385_v44, %v4152_v12 }
 0x30d   : > { %v4160_v13 = vmul.f32 0.70710677, %v4155_v6 }
 0x30e   : > { %3369 = vrcp.f32 %v2285_v9  ;;  %v4166_v15 = vmul.f32 0.70710677, %v4157_v10  ;;  %v2300_v27 = vand.u32 2147483648, %v2285_v9  ;;  %v2298_v29 = vand.u32 2147483647, %v2285_v9 }
 0x30f   : > { %v4163_v14 = vand.u32 2147483647, %v4160_v13  ;;  %vm2294_vm2 = vweird.f32 %v2285_v9  ;;  %v2393_v46 = vmul.f32 1.442695, %v2389_v55 }
 0x310   : > { %v4170_v5 = vand.u32 2147483647, %v4166_v15  ;;  %v2301_v35 = vor.u32 1.1754944e-38, %v2300_v27  ;;  %vm2299_vm5 = vcmp.eq.f32.partialorder %v2298_v29, 8.507059e+37 }
 0x311   : > { %v2282_v16 = vmul.f32 0.3275911, %v4163_v14 }
 0x312   : > { %v2258_v8 = vpop.f32.mrf.mxu1  ;;  %v2283_v18 = vmul.f32 0.3275911, %v4170_v5  ;;  %v2387_v12 = vsub.f32 0.0, %v4170_v5 }
 0x313   : > { %v2286_v17 = vadd.f32 1.0, %v2282_v16  ;;  %v4173_v21 = vadd.f32 %v2258_v8, %v2206_v63 }
 0x314   : > { %v3370_v19 = vpop.eup %3369  ;;  %v2287_v23 = vadd.f32 1.0, %v2283_v18 }
 0x315   : > { %v2290_v22 = vmul.f32 %v3370_v19, %v2285_v9  ;;  %3371 = vrcp.f32 %v2286_v17  ;;  %v4176_v25 = vmul.f32 0.70710677, %v4173_v21  ;;  %vm2295_vm1 = vweird.f32 %v3370_v19 }
 0x316   : > { %3373 = vrcp.f32 %v2287_v23  ;;  %vm2296_vm3 = vmor %vm2294_vm2, %vm2295_vm1  ;;  %v2315_v38 = vand.u32 2147483648, %v2286_v17  ;;  %v2313_v41 = vand.u32 2147483647, %v2286_v17  ;;  %vm2309_vm15 = vweird.f32 %v2286_v17 }
 0x317   : > { %v2291_v24 = vsub.f32 1.0, %v2290_v22  ;;  %v4179_v28 = vand.u32 2147483647, %v4176_v25  ;;  %v2328_v48 = vand.u32 2147483647, %v2287_v23  ;;  %v2330_v49 = vand.u32 2147483648, %v2287_v23 }
 0x318   : > { %vm2314_vm1 = vcmp.eq.f32.partialorder %v2313_v41, 8.507059e+37  ;;  %v2316_v50 = vor.u32 1.1754944e-38, %v2315_v38  ;;  %v2386_v9 = vsub.f32 0.0, %v4163_v14 }
 0x319   : > { %v2292_v26 = vmul.f32 %v3370_v19, %v2291_v24  ;;  %v2284_v33 = vmul.f32 0.3275911, %v4179_v28  ;;  %v2331_v61 = vor.u32 1.1754944e-38, %v2330_v49 }
 0x31b   : > { %v3372_v30 = vpop.eup %3371  ;;  %v2293_v31 = vadd.f32 %v3370_v19, %v2292_v26  ;;  %v4182_v36 = vadd.f32 1.0, %v2284_v33  ;;  %v2391_v26 = vmul.f32 %v2387_v12, %v4170_v5  ;;  %v2388_v5 = vsub.f32 0.0, %v4179_v28 }
 0x31c   : > { %v2305_v32 = vmul.f32 %v3372_v30, %v2286_v17  ;;  %v3374_v37 = vpop.eup %3373  ;;  %vm2310_vm6 = vweird.f32 %v3372_v30 }
 0x31d   : > { %v2297_v34 = vsel %vm2296_vm3, %v3370_v19, %v2293_v31  ;;  %v2320_v43 = vmul.f32 %v3374_v37, %v2287_v23  ;;  %3375 = vrcp.f32 %v4182_v36  ;;  %vm2311_vm0 = vmor %vm2309_vm15, %vm2310_vm6  ;;  %vm2325_vm2 = vweird.f32 %v3374_v37 }
 0x31e   : > { %v2306_v20 = vsub.f32 1.0, %v2305_v32  ;;  %v4184_v39 = vsel %vm2299_vm5, %v2301_v35, %v2297_v34  ;;  %vm2324_vm3 = vweird.f32 %v2287_v23  ;;  %vm2329_vm6 = vcmp.eq.f32.partialorder %v2328_v48, 8.507059e+37 }
 0x31f   : > { %v2321_v11 = vsub.f32 1.0, %v2320_v43  ;;  %v2349_v45 = vmul.f32 1.0614054, %v4184_v39  ;;  %vm2326_vm5 = vmor %vm2324_vm3, %vm2325_vm2  ;;  %v2345_v8 = vand.u32 2147483648, %v4182_v36  ;;  %v2343_v19 = vand.u32 2147483647, %v4182_v36 }
 0x320   : > { %v2307_v42 = vmul.f32 %v3372_v30, %v2306_v20  ;;  %3377 = vpow2.f32 %v2393_v46  ;;  %v2397_v41 = vmul.f32 1.442695, %v2391_v26  ;;  %v2392_v48 = vmul.f32 %v2388_v5, %v4179_v28  ;;  %v2597_v5 = vld [vmem:[#allocation8 + $0xa8] sm:$0xff] }
 0x321   : > { %v2322_v51 = vmul.f32 %v3374_v37, %v2321_v11  ;;  %v2353_v52 = vadd.f32 -1.4531521, %v2349_v45  ;;  %v2346_v32 = vor.u32 1.1754944e-38, %v2345_v8  ;;  %vm2344_vm2 = vcmp.eq.f32.partialorder %v2343_v19, 8.507059e+37 }
 0x322   : > { %v2308_v47 = vadd.f32 %v3372_v30, %v2307_v42  ;;  %3379 = vpow2.f32 %v2397_v41  ;;  %vm2269_vm3 = vcmp.ge.f32.partialorder %v4149_v3, 0.0  ;;  %v2596_v41 = vld [vmem:[#allocation8 + $0xa0] sm:$0xff] }
 0x323   : > { %v3376_v57 = vpop.eup %3375  ;;  %v2323_v58 = vadd.f32 %v3374_v37, %v2322_v51  ;;  %v2357_v59 = vmul.f32 %v2353_v52, %v4184_v39 }
 0x324   : > { %v2312_v54 = vsel %vm2311_vm0, %v3372_v30, %v2308_v47  ;;  %v2335_v62 = vmul.f32 %v3376_v57, %v4182_v36  ;;  %vm2340_vm15 = vweird.f32 %v3376_v57  ;;  %vm2339_vm0 = vweird.f32 %v4182_v36 }
 0x325   : > { %v4190_v56 = vsel %vm2314_vm1, %v2316_v50, %v2312_v54  ;;  %v2327_v63 = vsel %vm2326_vm5, %v3374_v37, %v2323_v58  ;;  %v2361_v0 = vadd.f32 1.4214138, %v2357_v59  ;;  %v2390_v30 = vmul.f32 %v2386_v9, %v4163_v14  ;;  %vm2341_vm1 = vmor %vm2339_vm0, %vm2340_vm15 }
 0x326   : > { %v2350_v60 = vmul.f32 1.0614054, %v4190_v56  ;;  %v2332_v4 = vsel %vm2329_vm6, %v2331_v61, %v2327_v63  ;;  %v2336_v7 = vsub.f32 1.0, %v2335_v62  ;;  %v3378_v49 = vpop.eup %3377  ;;  %v2399_v58 = vmul.f32 1.442695, %v2392_v48  ;;  %v2727_v48 = vld [vmem:[#allocation8 + $0x1b8] sm:$0xff] }
 0x327   : > { %v2351_v16 = vmul.f32 1.0614054, %v2332_v4  ;;  %v2365_v17 = vmul.f32 %v2361_v0, %v4184_v39  ;;  %v2395_v43 = vmul.f32 1.442695, %v2390_v30  ;;  %vm2271_vm5 = vcmp.ge.f32.partialorder %v4166_v15, 0.0 }
 0x328   : > { %v2354_v1 = vadd.f32 -1.4531521, %v2350_v60  ;;  %v2337_v18 = vmul.f32 %v3376_v57, %v2336_v7  ;;  %v3380_v62 = vpop.eup %3379  ;;  %vm2270_vm6 = vcmp.ge.f32.partialorder %v4160_v13, 0.0  ;;  %v2263_v15 = vmul.f32 0.5, %v4157_v10  ;;  %v2599_v10 = vld [vmem:[#allocation8 + $0xb8] sm:$0xff] }
 0x329   : > { %v2355_v23 = vadd.f32 -1.4531521, %v2351_v16  ;;  %v2369_v24 = vadd.f32 -0.28449672, %v2365_v17  ;;  %3381 = vpow2.f32 %v2395_v43  ;;  %vm2272_vm15 = vcmp.ge.f32.partialorder %v4176_v25, 0.0  ;;  %v2594_v43 = vld [vmem:[#allocation8 + $0x90] sm:$0xff] }
 0x32a   : > { %v2358_v22 = vmul.f32 %v2354_v1, %v4190_v56  ;;  %v2338_v27 = vadd.f32 %v3376_v57, %v2337_v18  ;;  %3383 = vpow2.f32 %v2399_v58  ;;  %v3704_v1 = vmov -1.0   ;;  %v2759_v58 = vld [vmem:[#allocation8 + $0x1f8] sm:$0xff] }
 0x32b   : > { %v2359_v31 = vmul.f32 %v2355_v23, %v2332_v4  ;;  %v2373_v33 = vmul.f32 %v2369_v24, %v4184_v39  ;;  %v2273_v46 = vsel %vm2269_vm3, 1.0, %v3704_v1  ;;  %v2261_v24 = vmul.f32 0.5, %v4146_v2  ;;  %v2598_v2 = vld [vmem:[#allocation8 + $0xb0] sm:$0xff] }
 0x32c   : > { %v2362_v29 = vadd.f32 1.4214138, %v2358_v22  ;;  %v2342_v34 = vsel %vm2341_vm1, %v3376_v57, %v2338_v27  ;;  %v2274_v26 = vsel %vm2270_vm6, 1.0, %v3704_v1  ;;  %vm2426_vm0 = vcmask 130048  }
 0x32d   : > { %v2363_v20 = vadd.f32 1.4214138, %v2359_v31  ;;  %v2347_v37 = vsel %vm2344_vm2, %v2346_v32, %v2342_v34  ;;  %v2377_v38 = vadd.f32 0.2548296, %v2373_v33  ;;  %v2276_v31 = vsel %vm2272_vm15, 1.0, %v3704_v1  ;;  %v797_v32 = vld [vmem:[#allocation10] sm:$0xff] }
 0x32e   : > { %v2366_v35 = vmul.f32 %v2362_v29, %v4190_v56  ;;  %v2352_v36 = vmul.f32 1.0614054, %v2347_v37  ;;  %v2264_v34 = vmul.f32 0.5, %v4173_v21  ;;  %v2630_v21 = vld [vmem:[#allocation8 + $0xf0] sm:$0xff] }
 0x32f   : > { %v2367_v14 = vmul.f32 %v2363_v20, %v2332_v4  ;;  %v2381_v44 = vmul.f32 %v2377_v38, %v4184_v39  ;;  %v3382_v28 = vpop.eup %3381  ;;  %v2262_v20 = vmul.f32 0.5, %v4155_v6  ;;  %v2593_v6 = vld [vmem:[#allocation8 + $0x88] sm:$0xff] }
 0x330   : > { %v2370_v42 = vadd.f32 -0.28449672, %v2366_v35  ;;  %v2356_v11 = vadd.f32 -1.4531521, %v2352_v36  ;;  %v3384_v18 = vpop.eup %3383  ;;  %v2631_v36 = vld [vmem:[#allocation8 + $0xf8] sm:$0xff] }
 0x331   : > { %v2371_v47 = vadd.f32 -0.28449672, %v2367_v14  ;;  %v2401_v54 = vmul.f32 %v3378_v49, %v2381_v44  ;;  %v2629_v14 = vld [vmem:[#allocation8 + $0xe8] sm:$0xff]  ;;  %v2628_v44 = vld [vmem:[#allocation8 + $0xe0] sm:$0xff]  ;;  %v2626_v49 = vld [vmem:[#allocation8 + $0xd0] sm:$0xff] }
 0x332   : > { %v2374_v45 = vmul.f32 %v2370_v42, %v4190_v56  ;;  %v2360_v50 = vmul.f32 %v2356_v11, %v2347_v37  ;;  %v2595_v42 = vld [vmem:[#allocation8 + $0x98] sm:$0xff]  ;;  %v2592_v11 = vld [vmem:[#allocation8 + $0x80] sm:$0xff] }
 0x333   : > { %v2375_v52 = vmul.f32 %v2371_v47, %v2332_v4  ;;  %v2405_v61 = vsub.f32 1.0, %v2401_v54  ;;  %v2600_v47 = vrot.slane %v4135_v40, 2  ;;  %v2624_v54 = vld [vmem:[#allocation8 + $0xc0] sm:$0xff] }
 0x334   : > { %v2378_v51 = vadd.f32 0.2548296, %v2374_v45  ;;  %v2364_v55 = vadd.f32 1.4214138, %v2360_v50  ;;  %v2627_v45 = vld [vmem:[#allocation8 + $0xd8] sm:$0xff]  ;;  %v2726_v50 = vld [vmem:[#allocation8 + $0x1b0] sm:$0xff] }
 0x335   : > { %v2379_v57 = vadd.f32 0.2548296, %v2375_v52  ;;  %v2409_v16 = vmul.f32 %v2405_v61, %v2273_v46  ;;  %v2725_v52 = vld [vmem:[#allocation8 + $0x1a8] sm:$0xff]  ;;  %v2728_v46 = vrot.slane %v4135_v40, 6 }
 0x336   : > { %v2368_v59 = vmul.f32 %v2364_v55, %v2347_v37  ;;  %v2382_v60 = vmul.f32 %v2378_v51, %v4190_v56  ;;  %v2275_v56 = vsel %vm2271_vm5, 1.0, %v3704_v1  ;;  %v2625_v51 = vld [vmem:[#allocation8 + $0xc8] sm:$0xff]  ;;  %v2724_v55 = vld [vmem:[#allocation8 + $0x1a0] sm:$0xff] }
 0x337   : > { %v2383_v39 = vmul.f32 %v2379_v57, %v2332_v4  ;;  %v2413_v22 = vadd.f32 1.0, %v2409_v16  ;;  %v2632_v57 = vrot.slane %v4135_v40, 3  ;;  %v2757_v61 = vld [vmem:[#allocation8 + $0x1e8] sm:$0xff]  ;;  %v2760_v16 = vrot.slane %v4135_v40, 7 }
 0x338   : > { %v2372_v63 = vadd.f32 -0.28449672, %v2368_v59  ;;  %v2402_v7 = vmul.f32 %v3382_v28, %v2382_v60  ;;  %v2723_v59 = vld [vmem:[#allocation8 + $0x198] sm:$0xff]  ;;  %v2758_v60 = vld [vmem:[#allocation8 + $0x1f0] sm:$0xff]  ;;  %v2720_v28 = vld [vmem:[#allocation8 + $0x180] sm:$0xff] }
 0x339   : > { %v2403_v0 = vmul.f32 %v3380_v62, %v2383_v39  ;;  %v2417_v13 = vmul.f32 %v2413_v22, %v2261_v24  ;;  %v2722_v39 = vld [vmem:[#allocation8 + $0x190] sm:$0xff]  ;;  %v2721_v62 = vld [vmem:[#allocation8 + $0x188] sm:$0xff]  ;;  %v2588_v24 = vpop.f32.mrf.mxu1 }
 0x33a   : > { %v2376_v12 = vmul.f32 %v2372_v63, %v2347_v37  ;;  %v2406_v17 = vsub.f32 1.0, %v2402_v7  ;;  %v2756_v63 = vld [vmem:[#allocation8 + $0x1e0] sm:$0xff]  ;;  %v2753_v7 = vld [vmem:[#allocation8 + $0x1c8] sm:$0xff] }
 0x33b   : > { %v2407_v9 = vsub.f32 1.0, %v2403_v0  ;;  %v2755_v0 = vld [vmem:[#allocation8 + $0x1d8] sm:$0xff] }
 0x33c   : > { %v2380_v8 = vadd.f32 0.2548296, %v2376_v12  ;;  %v2410_v30 = vmul.f32 %v2406_v17, %v2274_v26  ;;  %v2754_v12 = vld [vmem:[#allocation8 + $0x1d0] sm:$0xff]  ;;  %v3396_v22 = vld [vmem:[%s3963_s20 + $0x8] sm:$0xff] }
 0x33d   : > { %v2411_v3 = vmul.f32 %v2407_v9, %v2275_v56  ;;  %v2752_v9 = vld [vmem:[#allocation8 + $0x1c0] sm:$0xff]  ;;  %v4233_v56 = vpop.permute.xlu0 %2849 }
 0x33e   : > { %v2384_v4 = vmul.f32 %v2380_v8, %v2347_v37  ;;  %v2414_v35 = vadd.f32 1.0, %v2410_v30  ;;  %v3395_v17 = vld [vmem:[%s3963_s20] sm:$0xff]  ;;  %s3592_s20 = sshra.s32 %s3024_s14, 4  ;;  %s3593_s20 = int_to_ptr.hbm [resolvable:$true] %s3592_s20 }
 0x33f   : > { %v2415_v19 = vadd.f32 1.0, %v2411_v3  ;;  %s3594_s17 = scalar_lea.hbm %s3593_s20, 16  ;;  %p3599_p7 = scmp.lt.s32.totalorder %s3593_s20, %s4422_s5 }
 0x340   : > { %v2404_v23 = vmul.f32 %v3384_v18, %v2384_v4  ;;  %v2418_v38 = vmul.f32 %v2414_v35, %v2262_v20  ;;  %p3595_p1 = scmp.ne.s32.totalorder %s3593_s20, %s3594_s17  ;;  %p3600_p9 = scmp.lt.s32.totalorder %s3598_s3, %s3594_s17 }
 0x341   : > { %v2419_v27 = vmul.f32 %v2415_v19, %v2263_v15 }
 0x342   : > { %v2408_v29 = vsub.f32 1.0, %v2404_v23  ;;  %v2556_v23 = vpop.f32.mrf.mxu0  ;;  %p3596_p3 = pnand %p3595_p1, %p3904_p4  ;;  %p3601_p5 = por %p3600_p9, %p3599_p7 }
 0x343   : > { %2444 = vmatpush.msra.mxu2 %v2419_v27 }
 0x344   : > { %v2412_v33 = vmul.f32 %v2408_v29, %v2276_v31  ;;  %v2784_v29 = vrot.slane %v2588_v24, 7  ;;  %p3597_p12 = pneg %p3596_p3 }
 0x345   : > { %2445 = vmatpush.msra.mxu2 %v2417_v13  ;;  %v2424_v8 = vpop.permute.xlu0 %2423 }
 0x346   : > { %v2416_v25 = vadd.f32 1.0, %v2412_v33  ;;  %3227 = vmatmul.msk.f32.vlgmr.msra.gmra.mxu2 %vm2426_vm0, %v797_v32  ;;  %v2804_v13 = vsel %vm2107_vm8, %v2556_v23, %v2784_v29  ;;  %p3602_p8 = pnand %p3601_p5, %p3597_p12 }
 0x347   : > { %2611 = vmatpush.msrb.mxu2 %v2599_v10 }
 0x348   : > { %v2420_v37 = vmul.f32 %v2416_v25, %v2264_v34 }
 0x349   : > { %2612 = vmatpush.msrb.mxu2 %v2598_v2  ;;  %v2716_v2 = vpop.f32.mrf.mxu1 }
 0x34a   : > { %2464 = vmatpush.msra.mxu3 %v2420_v37  ;;  %v2796_v37 = vrot.slane %v2716_v2, 3 }
 0x34b   : > { %2613 = vmatpush.msrb.mxu2 %v2597_v5 }
 0x34c   : > { %2465 = vmatpush.msra.mxu3 %v2418_v38 }
 0x34d   : > { %3228 = vmatmul.msk.f32.vlgmr.msra.gmra.mxu3 %vm2426_vm0, %v797_v32  ;;  %2614 = vmatpush.msrb.mxu2 %v2596_v41  ;;  %v2684_v32 = vpop.f32.mrf.mxu0 }
 0x34e   : > { %2643 = vmatpush.msrb.mxu3 %v2631_v36  ;;  %v2793_v25 = vrot.slane %v2684_v32, 4 }
 0x34f   : > { %2615 = vmatpush.msrb.mxu2 %v2595_v42 }
 0x350   : > { %2644 = vmatpush.msrb.mxu3 %v2630_v21 }
 0x351   : > { %2616 = vmatpush.msrb.mxu2 %v2594_v43 }
 0x352   : > { %2645 = vmatpush.msrb.mxu3 %v2629_v14 }
 0x353   : > { %2617 = vmatpush.msrb.mxu2 %v2593_v6 }
 0x354   : > { %2646 = vmatpush.msrb.mxu3 %v2628_v44 }
 0x355   : > { %2618 = vmatpush.msrb.mxu2 %v2592_v11 }
 0x356   : > { %2647 = vmatpush.msrb.mxu3 %v2627_v45  ;;  %3231 = vmatmul.msk.f32.vlgmr.msrb.gmra.mxu2 %vm2485_vm7, %v2600_v47 }
 0x357   : > { %2739 = vmatpush.msra.mxu2 %v2727_v48 }
 0x358   : > { %2648 = vmatpush.msrb.mxu3 %v2626_v49 }
 0x359   : > { %2740 = vmatpush.msra.mxu2 %v2726_v50 }
 0x35a   : > { %2649 = vmatpush.msrb.mxu3 %v2625_v51 }
 0x35b   : > { %2741 = vmatpush.msra.mxu2 %v2725_v52 }
 0x35c   : > { %2650 = vmatpush.msrb.mxu3 %v2624_v54 }
 0x35d   : > { %3232 = vmatmul.msk.f32.vlgmr.msrb.gmra.mxu3 %vm2485_vm7, %v2632_v57  ;;  %2742 = vmatpush.msra.mxu2 %v2724_v55 }
 0x35e   : > { %2771 = vmatpush.msra.mxu3 %v2759_v58 }
 0x35f   : > { %2743 = vmatpush.msra.mxu2 %v2723_v59 }
 0x360   : > { %2772 = vmatpush.msra.mxu3 %v2758_v60 }
 0x361   : > { %2744 = vmatpush.msra.mxu2 %v2722_v39 }
 0x362   : > { %2773 = vmatpush.msra.mxu3 %v2757_v61 }
 0x363   : > { %2745 = vmatpush.msra.mxu2 %v2721_v62 }
 0x364   : > { %2774 = vmatpush.msra.mxu3 %v2756_v63 }
 0x365   : > { %2746 = vmatpush.msra.mxu2 %v2720_v28 }
 0x366   : > { %2775 = vmatpush.msra.mxu3 %v2755_v0  ;;  %3235 = vmatmul.msk.f32.vlgmr.msra.gmra.mxu2 %vm2485_vm7, %v2728_v46 }
 0x368   : > { %2776 = vmatpush.msra.mxu3 %v2754_v12 }
 0x36a   : > { %2777 = vmatpush.msra.mxu3 %v2753_v7  ;;  %v2844_v7 = vpop.permute.xlu2 %2843 }
 0x36c   : > { %2778 = vmatpush.msra.mxu3 %v2752_v9 }
 0x36d   : > { %3236 = vmatmul.msk.f32.vlgmr.msra.gmra.mxu3 %vm2485_vm7, %v2760_v16 }
 0x3c9   : > { %v2447_v3 = vpop.f32.mrf.mxu2 }
 0x3ca   : > { %v2448_v4 = vadd.f32 %v2447_v3, %v2424_v8  ;;  %v2856_v3 = vpop.permute.xlu2 %2855 }
 0x3cc   : > { %v2470_v18 = vadd.f32 %v3395_v17, %v2448_v4 }
 0x3ce   : > { %2472 = vst [vmem:[%s4238_s16] sm:$0xff] %v2470_v18 }
 0x3d0   : > { %v2467_v15 = vpop.f32.mrf.mxu3 }
 0x3d1   : > { %v2468_v19 = vadd.f32 %v2467_v15, %v2424_v8  ;;  %v2480_v8 = vld [vmem:[%s4420_s22 + $0x8] sm:$0xff]  ;;  %v2861_v15 = vpop.permute.xlu1 %2860 }
 0x3d3   : > { %v2471_v40 = vadd.f32 %v3396_v22, %v2468_v19 }
 0x3d5   : > { %2473 = vst [vmem:[%s4238_s16 + $0x8] sm:$0xff] %v2471_v40 }
 0x3d9   : > { %v2620_v26 = vpop.f32.mrf.mxu2 }
 0x3da   : > { %v2787_v30 = vrot.slane %v2620_v26, 6 }
 0x3dc   : > { %v2805_v33 = vsel %vm2110_vm9, %v2804_v13, %v2787_v30 }
 0x3e0   : > { %v2652_v27 = vpop.f32.mrf.mxu3 }
 0x3e1   : > { %v2790_v31 = vrot.slane %v2652_v27, 5 }
 0x3e3   : > { %v2806_v10 = vsel %vm2113_vm10, %v2805_v33, %v2790_v31 }
 0x3e4   : > { %v2807_v35 = vsel %vm2116_vm11, %v2806_v10, %v2793_v25 }
 0x3e5   : > { %v2808_v38 = vsel %vm2119_vm12, %v2807_v35, %v2796_v37 }
 0x3e9   : > { %v2748_v34 = vpop.f32.mrf.mxu2 }
 0x3ea   : > { %v2799_v20 = vrot.slane %v2748_v34, 2 }
 0x3ec   : > { %v2809_v36 = vsel %vm2122_vm13, %v2808_v38, %v2799_v20 }
 0x3f0   : > { %v2780_v5 = vpop.f32.mrf.mxu3 }
 0x3f1   : > { %v2802_v41 = vrot.slane %v2780_v5, 1 }
 0x3f3   : > { %v2810_v42 = vsel %vm2125_vm14, %v2809_v36, %v2802_v41 }
 0x3f4   : > { %v2811_v21 = vsel %vm2485_vm7, %v2810_v42, 0.0 }
 0x3f5   : > { %v2812_v43 = vrot.slane %v2811_v21, 4 }
 0x3f7   : > { %v2813_v14 = vadd.f32 %v2812_v43, %v2811_v21 }
 0x3f9   : > { %v2814_v6 = vrot.slane %v2813_v14, 2 }
 0x3fb   : > { %v2815_v44 = vadd.f32 %v2814_v6, %v2813_v14 }
 0x3fd   : > { %v2816_v11 = vrot.slane %v2815_v44, 1 }
 0x3ff   : > { %v2817_v45 = vadd.f32 %v2816_v11, %v2815_v44 }
 0x401   : > { %v2818_v47 = vmul.f32 %v2817_v45, %v4034_v53 }
 0x403   : > { %v2819_v48 = vsub.f32 %v2810_v42, %v2818_v47 }
 0x405   : > { %v2820_v49 = vmul.f32 %v2819_v48, %v2819_v48 }
 0x407   : > { %v2821_v50 = vsel %vm2485_vm7, %v2820_v49, 0.0 }
 0x408   : > { %v2822_v51 = vrot.slane %v2821_v50, 4 }
 0x40a   : > { %v2823_v52 = vadd.f32 %v2822_v51, %v2821_v50 }
 0x40c   : > { %v2824_v54 = vrot.slane %v2823_v52, 2 }
 0x40e   : > { %v2825_v55 = vadd.f32 %v2824_v54, %v2823_v52 }
 0x410   : > { %v2826_v57 = vrot.slane %v2825_v55, 1 }
 0x412   : > { %v2827_v58 = vadd.f32 %v2826_v57, %v2825_v55 }
 0x414   : > { %v2828_v59 = vmul.f32 %v2827_v58, %v4034_v53  ;;  %v2479_v53 = vld [vmem:[%s4420_s22] sm:$0xff] }
 0x416   : > { %v2829_v60 = vadd.f32 1e-05, %v2828_v59 }
 0x418   : > { %3385 = vrsqrt.f32 %v2829_v60  ;;  %vm2836_vm9 = vweird.f32 %v2829_v60 }
 0x41e   : > { %v3386_v39 = vpop.eup %3385 }
 0x41f   : > { %v2831_v61 = vmul.f32 %v3386_v39, %v2829_v60  ;;  %vm2837_vm8 = vweird.f32 %v3386_v39 }
 0x420   : > { %vm2838_vm10 = vmor %vm2836_vm9, %vm2837_vm8 }
 0x421   : > { %v2832_v62 = vmul.f32 %v3386_v39, %v2831_v61 }
 0x423   : > { %v2833_v63 = vmul.f32 0.5, %v2832_v62 }
 0x425   : > { %v2834_v28 = vsub.f32 1.5, %v2833_v63 }
 0x427   : > { %v2835_v0 = vmul.f32 %v3386_v39, %v2834_v28 }
 0x429   : > { %v2839_v46 = vsel %vm2838_vm10, %v3386_v39, %v2835_v0 }
 0x42a   : > { %v2840_v12 = vmul.f32 %v2839_v46, %v2819_v48 }
 0x42c   : > { %v2846_v9 = vmul.f32 %v2844_v7, %v2840_v12 }
 0x42e   : > { %v2852_v16 = vadd.f32 %v4233_v56, %v2846_v9 }
 0x430   : > { %2884 = vmatpush.msrb.mxu0 %v2852_v16  ;;  %3249 = vmatpush.msrb.mxu2 %v2852_v16 }
 0x431   : > { %3237 = vmatmul.msk.f32.vlgmr.msrb.gmra.mxu0 %vm2208_vm4, %v2479_v53  ;;  %3238 = vmatmul.msk.f32.vlgmr.msrb.gmra.mxu2 %vm2208_vm4, %v2480_v8 }
 0x4ae   : > { %v2886_v4 = vpop.f32.mrf.mxu0 }
 0x4af   : > { %v4263_v17 = vadd.f32 %v2886_v4, %v2856_v3 }
 0x4b1   : > { %v4266_v56 = vmul.f32 0.70710677, %v4263_v17 }
 0x4b3   : > { %v2900_v18 = vand.u32 2147483647, %v4266_v56  ;;  %vm2896_vm5 = vcmp.ge.f32.partialorder %v4266_v56, 0.0 }
 0x4b4   : > { %v2889_v19 = vpop.f32.mrf.mxu2  ;;  %v2898_v3 = vsel %vm2896_vm5, 1.0, %v3704_v1 }
 0x4b5   : > { %v2902_v22 = vmul.f32 0.3275911, %v2900_v18  ;;  %v4269_v40 = vadd.f32 %v2889_v19, %v2861_v15  ;;  %v2954_v38 = vsub.f32 0.0, %v2900_v18 }
 0x4b7   : > { %v2904_v23 = vadd.f32 1.0, %v2902_v22  ;;  %v4272_v24 = vmul.f32 0.70710677, %v4269_v40  ;;  %v2956_v6 = vmul.f32 %v2954_v38, %v2900_v18  ;;  %v2893_v22 = vmul.f32 0.5, %v4269_v40 }
 0x4b9   : > { %3387 = vrcp.f32 %v2904_v23  ;;  %v2901_v26 = vand.u32 2147483647, %v4272_v24  ;;  %v2917_v32 = vand.u32 2147483648, %v2904_v23  ;;  %v2915_v10 = vand.u32 2147483647, %v2904_v23 }
 0x4ba   : > { %vm2911_vm12 = vweird.f32 %v2904_v23  ;;  %v2958_v51 = vmul.f32 1.442695, %v2956_v6  ;;  %vm2897_vm6 = vcmp.ge.f32.partialorder %v4272_v24, 0.0 }
 0x4bb   : > { %v2903_v27 = vmul.f32 0.3275911, %v2901_v26  ;;  %v2918_v35 = vor.u32 1.1754944e-38, %v2917_v32  ;;  %vm2916_vm14 = vcmp.eq.f32.partialorder %v2915_v10, 8.507059e+37  ;;  %v2955_v48 = vsub.f32 0.0, %v2901_v26 }
 0x4bc   : > { %v2899_v15 = vsel %vm2897_vm6, 1.0, %v3704_v1 }
 0x4bd   : > { %v2905_v29 = vadd.f32 1.0, %v2903_v27  ;;  %v2957_v55 = vmul.f32 %v2955_v48, %v2901_v26  ;;  %v2892_v26 = vmul.f32 0.5, %v4263_v17 }
 0x4bf   : > { %v3388_v30 = vpop.eup %3387  ;;  %3389 = vrcp.f32 %v2905_v29  ;;  %v2932_v41 = vand.u32 2147483648, %v2905_v29  ;;  %v2930_v21 = vand.u32 2147483647, %v2905_v29  ;;  %vm2926_vm1 = vweird.f32 %v2905_v29 }
 0x4c0   : > { %v2907_v31 = vmul.f32 %v3388_v30, %v2904_v23  ;;  %vm2912_vm11 = vweird.f32 %v3388_v30  ;;  %3391 = vpow2.f32 %v2958_v51  ;;  %v2960_v39 = vmul.f32 1.442695, %v2957_v55 }
 0x4c1   : > { %vm2913_vm13 = vmor %vm2911_vm12, %vm2912_vm11  ;;  %v2933_v44 = vor.u32 1.1754944e-38, %v2932_v41  ;;  %vm2931_vm3 = vcmp.eq.f32.partialorder %v2930_v21, 8.507059e+37 }
 0x4c2   : > { %v2908_v13 = vsub.f32 1.0, %v2907_v31  ;;  %3393 = vpow2.f32 %v2960_v39 }
 0x4c4   : > { %v2909_v33 = vmul.f32 %v3388_v30, %v2908_v13 }
 0x4c5   : > { %v3390_v34 = vpop.eup %3389 }
 0x4c6   : > { %v2910_v25 = vadd.f32 %v3388_v30, %v2909_v33  ;;  %v2922_v2 = vmul.f32 %v3390_v34, %v2905_v29  ;;  %vm2927_vm4 = vweird.f32 %v3390_v34  ;;  %v3392_v0 = vpop.eup %3391  ;;  %v2483_v29 = vld [vmem:[#allocation11] sm:$0xff] }
 0x4c7   : > { %vm2928_vm2 = vmor %vm2926_vm1, %vm2927_vm4 }
 0x4c8   : > { %v2914_v20 = vsel %vm2913_vm13, %v3388_v30, %v2910_v25  ;;  %v2923_v37 = vsub.f32 1.0, %v2922_v2  ;;  %v3394_v53 = vpop.eup %3393 }
 0x4c9   : > { %v2919_v5 = vsel %vm2916_vm14, %v2918_v35, %v2914_v20 }
 0x4ca   : > { %v2936_v36 = vmul.f32 1.0614054, %v2919_v5  ;;  %v2924_v42 = vmul.f32 %v3390_v34, %v2923_v37 }
 0x4cc   : > { %v2938_v43 = vadd.f32 -1.4531521, %v2936_v36  ;;  %v2925_v14 = vadd.f32 %v3390_v34, %v2924_v42 }
 0x4ce   : > { %v2940_v11 = vmul.f32 %v2938_v43, %v2919_v5  ;;  %v2929_v45 = vsel %vm2928_vm2, %v3390_v34, %v2925_v14 }
 0x4cf   : > { %v2934_v47 = vsel %vm2931_vm3, %v2933_v44, %v2929_v45 }
 0x4d0   : > { %v2942_v49 = vadd.f32 1.4214138, %v2940_v11  ;;  %v2937_v50 = vmul.f32 1.0614054, %v2934_v47 }
 0x4d2   : > { %v2944_v52 = vmul.f32 %v2942_v49, %v2919_v5  ;;  %v2939_v54 = vadd.f32 -1.4531521, %v2937_v50 }
 0x4d4   : > { %v2946_v57 = vadd.f32 -0.28449672, %v2944_v52  ;;  %v2941_v58 = vmul.f32 %v2939_v54, %v2934_v47 }
 0x4d6   : > { %v2948_v59 = vmul.f32 %v2946_v57, %v2919_v5  ;;  %v2943_v60 = vadd.f32 1.4214138, %v2941_v58 }
 0x4d8   : > { %v2950_v61 = vadd.f32 0.2548296, %v2948_v59  ;;  %v2945_v62 = vmul.f32 %v2943_v60, %v2934_v47 }
 0x4da   : > { %v2952_v63 = vmul.f32 %v2950_v61, %v2919_v5  ;;  %v2947_v28 = vadd.f32 -0.28449672, %v2945_v62 }
 0x4dc   : > { %v2949_v46 = vmul.f32 %v2947_v28, %v2934_v47  ;;  %v2962_v12 = vmul.f32 %v3392_v0, %v2952_v63 }
 0x4de   : > { %v2951_v7 = vadd.f32 0.2548296, %v2949_v46  ;;  %v2964_v16 = vsub.f32 1.0, %v2962_v12 }
 0x4e0   : > { %v2953_v9 = vmul.f32 %v2951_v7, %v2934_v47  ;;  %v2966_v18 = vmul.f32 %v2964_v16, %v2898_v3 }
 0x4e2   : > { %v2963_v8 = vmul.f32 %v3394_v53, %v2953_v9  ;;  %v2968_v56 = vadd.f32 1.0, %v2966_v18 }
 0x4e4   : > { %v2965_v4 = vsub.f32 1.0, %v2963_v8  ;;  %v2970_v24 = vmul.f32 %v2968_v56, %v2892_v26 }
 0x4e6   : > { %v2967_v19 = vmul.f32 %v2965_v4, %v2899_v15 }
 0x4e8   : > { %v2969_v23 = vadd.f32 1.0, %v2967_v19 }
 0x4ea   : > { %v2971_v27 = vmul.f32 %v2969_v23, %v2893_v22 }
 0x4ec   : > { %2994 = vmatpush.msrb.mxu1 %v2971_v27 }
 0x4ee   : > { %2995 = vmatpush.msrb.mxu1 %v2970_v24 }
 0x4ef   : > { %3239 = vmatmul.msk.f32.vlgmr.msrb.gmra.mxu1 %vm2426_vm0, %v2483_v29 }
 0x4f0   : > { %3605 = shalt.err (!%p3602_p8)
}
 0x4f1   : > { %3270 = dma.vmem_to_hbm [thread:$0]  (%p3904_p4), %s3022_s2, 256, %s3024_s14, %s3003_s23   ;;  %v2975_v1 = vpop.permute.xlu1 %2974  ;;  %v3397_v30 = vld [vmem:[%s3973_s1] sm:$0xff] }
 0x4f2   : > { %s3244_s16 = sshll.u32 %s3839_s4, 3  ;;  %s4423_s26 = sld [smem:[#allocation46_spill]] }
 0x4f3   : > { %s4425_s6 = sshll.u32 %s3957_s19, 3  ;;  %s3008_s2 = scalar_lea.sflag [#allocation15], %s3957_s19 }
 0x4f4   : > { %s786_s7 = scalar_lea.vmem [#allocation14], %s4425_s6 }
 0x4f5   : > { %s3035_s3 = sshll.u32 %s786_s7, 4  ;;  %s3036_s3 = int_to_ptr.vmem [resolvable:$true] %s3035_s3 }
 0x4f8   : > { %s4424_s0 = smov %s4423_s26  ;;  %s3033_s18 = scalar_lea.hbm %s4423_s26, %s3244_s16 }
 0x4f9   : > { %s3037_s20 = sshll.u32 %s3033_s18, 4  ;;  %s3626_s30 = scalar_lea.hbm %s4424_s0, 16  ;;  %s3038_s20 = int_to_ptr.hbm [resolvable:$true] %s3037_s20 }
 0x4fa   : > { %s3620_s4 = sshra.s32 %s3038_s20, 4  ;;  %s3621_s4 = int_to_ptr.hbm [resolvable:$true] %s3620_s4 }
 0x4fb   : > { %s3622_s14 = scalar_lea.hbm %s3621_s4, 8  ;;  %p3627_p0 = scmp.lt.s32.totalorder %s3621_s4, %s4424_s0 }
 0x4fc   : > { %p3623_p10 = scmp.ne.s32.totalorder %s3621_s4, %s3622_s14  ;;  %p3628_p2 = scmp.lt.s32.totalorder %s3626_s30, %s3622_s14 }
 0x4fe   : > { %p3624_p13 = pnand %p3623_p10, %p3904_p4  ;;  %p3629_p1 = por %p3628_p2, %p3627_p0 }
 0x500   : > { %p3625_p11 = pneg %p3624_p13 }
 0x502   : > { %p3630_p3 = pnand %p3629_p1, %p3625_p11 }
 0x56c   : > { %v2997_v17 = vpop.f32.mrf.mxu1 }
 0x56d   : > { %v2998_v40 = vadd.f32 %v2997_v17, %v2975_v1 }
 0x56f   : > { %v3000_v31 = vadd.f32 %v3397_v30, %v2998_v40 }
 0x571   : > { %3001 = vst.msk [vmem:[%s786_s7] sm:$0xff] %vm2485_vm7, %v3000_v31 }
 0x572   : > { %3633 = shalt.err (!%p3630_p3)
}
 0x573   : > { %3271 = dma.vmem_to_hbm [thread:$0]  (%p3904_p4), %s3036_s3, 128, %s3038_s20, %s3008_s2  }
 0x574 PF: > { %s4426_s19 = sld [smem:[#allocation23_spill]]  ;;  %p4428_p12 = scmp.ge.s32.totalorder %s3692_s27, 2 }
 0x576   : > { %p3295_p7 = pnand %p4428_p12, %p3908_p6 }
 0x578   : > { %p3296_p9 = pneg %p3295_p7 }
 0x57a   : > { %s3049_s29 = sand.u32 1, %s4426_s19  }
 0x57b   : > { %s3050_s26 = scalar_lea.sflag [#allocation4], %s3049_s29 }
 0x57c   : > { %3671 = dma.done.wait (%p3296_p9), %s3050_s26, 256  }
 0x57d   : > { %3673 = vsyncadd (%p3296_p9), %s3050_s26, 4294967040  ;;  %s3060_s18 = scalar_lea.sflag [#allocation15], %s3049_s29 }
 0x57e   : > { %3675 = dma.done.wait (%p3296_p9), %s3060_s18, 128  }
 0x57f   : > { %3677 = vsyncadd (%p3296_p9), %s3060_s18, 4294967168  ;;  %s4429_s27 = sld [smem:[#allocation25_spill]]  ;;  %s4432_s2 = smov %s3684_s25 }
 0x580   : > { %s4430_s6 = sld [smem:[#allocation24_spill]] }
 0x581   : > { %s4431_s26 = sld [smem:[#allocation26_spill]] }
 0x585   : > { %p43_p4 = scmp.ge.s32.totalorder %s4429_s27, 4  }
 0x586   : > { %s4433_s25 = smov %s4430_s6 }
 0x587   :  { %45 = sbr.rel (!%p43_p4) target bundleno = 30 (0x1e), region = 205 }
 0x58c   :  { %3066 = vsyncpa [#allocation3], 1 }
 0x58d   :  { %3068 = vsyncpa [#allocation3 + $0x1], 1 }
 0x58e   :  { %3069 = vsyncpa [#allocation6], 1 }
 0x58f   :  { %3071 = vsyncpa [#allocation6 + $0x1], 1 }
 0x590   :  { %3072 = vsyncpa [#allocation9], 1 }
 0x591   :  { %3073 = vsyncpa [#allocation12], 1 }
 0x592   :  { %3074 = vsyncpa [#allocation4], 1 }
 0x593   :  { %3076 = vsyncpa [#allocation4 + $0x1], 1 }
 0x594   :  { %3077 = vsyncpa [#allocation15], 1 }
 0x595   :  { %3079 = vsyncpa [#allocation15 + $0x1], 1 }

</bundles_post_ra>
